<compile_context>
chip_gen: v6e
topology: v6e:2x2x1
jax: 0.10.0
libtpu: 0.0.40
codegen_flags: <defaults>
</compile_context>

<pallas_src>
import jax
import jax.numpy as jnp
from jax import lax
from jax.experimental import pallas as pl
from jax.experimental.pallas import tpu as pltpu

BN_EPS = 1e-5
_HIGH = lax.Precision.HIGHEST


# ---------------------------------------------------------------------------
# In-kernel helpers
# ---------------------------------------------------------------------------
def _row_selector(nb, h_out, h_src):
    # one-hot (nb, h_out, h_src) with S[., o, h] = 1 iff h == 2*o  (pick even rows)
    o = lax.broadcasted_iota(jnp.int32, (nb, h_out, h_src), 1)
    h = lax.broadcasted_iota(jnp.int32, (nb, h_out, h_src), 2)
    return (h == 2 * o).astype(jnp.float32)


def _col_selector(nb, w_src, w_out):
    # one-hot (nb, w_src, w_out) with S[., w, o] = 1 iff w == 2*o  (pick even cols)
    w = lax.broadcasted_iota(jnp.int32, (nb, w_src, w_out), 1)
    o = lax.broadcasted_iota(jnp.int32, (nb, w_src, w_out), 2)
    return (w == 2 * o).astype(jnp.float32)


def _maxpool2x2(a, r_sel, c_sel):
    # MaxPool2d(2,2), stride 2, floor mode, batched over the leading axis.
    # 2x1 neighbour maxes are pure VPU work (non-strided shifted slices); the stride-2
    # down-select is one batched one-hot matmul per axis (selectors built once by caller).
    nb, h_in, w_in = a.shape
    rm = jnp.maximum(a[:, :h_in - 1, :], a[:, 1:, :])            # (nb, h_in-1, w_in)
    rs = jnp.einsum('boh,bhw->bow', r_sel, rm,
                    preferred_element_type=jnp.float32,
                    precision=_HIGH)                             # (nb, h_out, w_in)
    cm = jnp.maximum(rs[:, :, :w_in - 1], rs[:, :, 1:])          # (nb, h_out, w_in-1)
    return jnp.einsum('bhw,bwo->bho', cm, c_sel,
                      preferred_element_type=jnp.float32,
                      precision=_HIGH)                           # (nb, h_out, w_out)


def _batchnorm_train(a, gamma, beta, inv_n):
    # Training-mode BatchNorm over one channel's full (B, H, W) slab:
    # single fused sum / sum-of-squares reductions, biased variance, eps inside rsqrt.
    mean = jnp.sum(jnp.sum(a, axis=0), keepdims=True) * inv_n    # (1, 1)
    cent = a - mean                                              # (B, H, W)
    var = jnp.sum(jnp.sum(cent * cent, axis=0), keepdims=True) * inv_n
    return cent * (lax.rsqrt(var + BN_EPS) * gamma) + beta


# ---------------------------------------------------------------------------
# Pallas kernel: whole forward pass for the full (small) batch in one invocation,
# so BatchNorm batch statistics are exact.
# ---------------------------------------------------------------------------
def _encode_conv_kernel(x_ref, w1_ref, b1_ref, g1_ref, be1_ref,
                        w2_ref, b2_ref, g2_ref, be2_ref,
                        wl_ref, bl_ref, out_ref, p2_scr):
    B, H, W = x_ref.shape
    C1 = 3
    Hc1, Wc1 = H - 2, W - 2
    Hp1, Wp1 = Hc1 // 2, Wc1 // 2
    Hc2, Wc2 = Hp1 - 2, Wp1 - 2
    Hp2, Wp2 = Hc2 // 2, Wc2 // 2

    x = x_ref[...]                                               # (B, H, W)

    # ---- Hoisted SMEM scalar parameter reads (each read exactly once) ----
    w1 = [w1_ref[i] for i in range(C1 * 9)]
    b1 = [b1_ref[c] for c in range(C1)]
    g1 = [g1_ref[c] for c in range(C1)]
    be1 = [be1_ref[c] for c in range(C1)]
    w2 = [w2_ref[i] for i in range(C1 * 9)]
    b2 = b2_ref[0]
    g2 = g2_ref[0]
    be2 = be2_ref[0]

    # ---- Conv2d(1,3,3x3) + ReLU + BatchNorm2d(3), batched over the whole batch ----
    # 9 shifted views of the (B, H, W) slab, computed once, shared by the 3 out channels.
    xs = [x[:, dy:dy + Hc1, dx:dx + Wc1] for dy in range(3) for dx in range(3)]
    inv_n1 = 1.0 / float(B * Hc1 * Wc1)
    bn1 = []
    for c in range(C1):
        acc = xs[0] * w1[c * 9]
        for t in range(1, 9):
            acc = acc + xs[t] * w1[c * 9 + t]
        a = jnp.maximum(acc + b1[c], 0.0)                        # (B, Hc1, Wc1)
        bn1.append(_batchnorm_train(a, g1[c], be1[c], inv_n1))

    # ---- MaxPool2d(2,2): all 3 channels pooled in one batched call ----
    stack1 = jnp.concatenate(bn1, axis=0)                        # (C1*B, Hc1, Wc1)
    p1 = _maxpool2x2(stack1,
                     _row_selector(C1 * B, Hp1, Hc1 - 1),
                     _col_selector(C1 * B, Wc1 - 1, Wp1))        # (C1*B, Hp1, Wp1)

    # ---- Conv2d(3,1,3x3) + ReLU, batched over B ----
    acc = None
    for c in range(C1):
        pc = p1[c * B:(c + 1) * B]                               # (B, Hp1, Wp1)
        for dy in range(3):
            for dx in range(3):
                term = pc[:, dy:dy + Hc2, dx:dx + Wc2] * w2[c * 9 + dy * 3 + dx]
                acc = term if acc is None else acc + term
    a2 = jnp.maximum(acc + b2, 0.0)                              # (B, Hc2, Wc2)

    # ---- BatchNorm2d(1) + MaxPool2d(2,2) ----
    bn2 = _batchnorm_train(a2, g2, be2, 1.0 / float(B * Hc2 * Wc2))
    p2 = _maxpool2x2(bn2,
                     _row_selector(B, Hp2, Hc2 - 1),
                     _col_selector(B, Wc2 - 1, Wp2))             # (B, Hp2, Wp2)

    # ---- Flatten (PyTorch row-major over (Hp2, Wp2)) + Linear ----
    # One (B, F) @ (F, emb) matmul and one dense output store.  A tiny VMEM scratch
    # round-trip produces the flattened (B, F) operand via ref-indexed (squeezing) loads,
    # avoiding value reshapes entirely.
    p2_scr[...] = p2
    flat = jnp.concatenate([p2_scr[:, i, :] for i in range(Hp2)], axis=1)   # (B, F)
    out = jnp.dot(flat, wl_ref[...],
                  preferred_element_type=jnp.float32, precision=_HIGH) + bl_ref[...]
    out_ref[...] = out.astype(out_ref.dtype)


# ---------------------------------------------------------------------------
# Wrapper (glue: parameter reshapes + pallas_call)
# ---------------------------------------------------------------------------
def encode_embedding_features_conv(x, params):
    B, H, W = x.shape
    emb_dim = params["bl"].shape[0]
    Hp1, Wp1 = (H - 2) // 2, (W - 2) // 2
    Hp2, Wp2 = (Hp1 - 2) // 2, (Wp1 - 2) // 2
    assert Hp2 >= 1 and Wp2 >= 1, "input too small for the conv encoder branch"
    assert params["wl"].shape == (emb_dim, Hp2 * Wp2)

    wl2 = params["wl"].T                       # (F, emb); F indexed h-major (PyTorch flatten)
    bl2 = params["bl"].reshape(1, emb_dim)

    smem = pl.BlockSpec(memory_space=pltpu.MemorySpace.SMEM)
    vmem = pl.BlockSpec(memory_space=pltpu.MemorySpace.VMEM)

    return pl.pallas_call(
        _encode_conv_kernel,
        out_shape=jax.ShapeDtypeStruct((B, emb_dim), jnp.float32),
        in_specs=[vmem,                                    # x
                  smem, smem, smem, smem,                  # w1, b1, gamma1, beta1
                  smem, smem, smem, smem,                  # w2, b2, gamma2, beta2
                  vmem, vmem],                             # wl (F, emb), bl (1, emb)
        out_specs=vmem,
        scratch_shapes=[pltpu.VMEM((B, Hp2, Wp2), jnp.float32)],
    )(x,
      params["w1"].reshape(-1), params["b1"], params["g1"], params["be1"],
      params["w2"].reshape(-1), params["b2"], params["g2"], params["be2"],
      wl2, bl2)


# ---------------------------------------------------------------------------
# Deterministic parameter init (shapes follow the PyTorch __init__)
# ---------------------------------------------------------------------------
def init_params(key, input_dim, input_embed_dim, emb_dim):
    Hp1, Wp1 = (input_dim - 2) // 2, (input_embed_dim - 2) // 2
    Hp2, Wp2 = (Hp1 - 2) // 2, (Wp1 - 2) // 2     # == final_h, final_w of the module
    assert Hp2 >= 1 and Wp2 >= 1
    fan = Hp2 * Wp2

    ks = jax.random.split(key, 10)
    u = lambda k, shape, b: jax.random.uniform(k, shape, jnp.float32, -b, b)
    return dict(
        w1=u(ks[0], (3, 1, 3, 3), 1.0 / 3.0),
        b1=u(ks[1], (3,), 1.0 / 3.0),
        g1=jax.random.uniform(ks[2], (3,), jnp.float32, 0.5, 1.5),
        be1=u(ks[3], (3,), 0.5),
        w2=u(ks[4], (1, 3, 3, 3), 1.0 / (27.0 ** 0.5)),
        b2=u(ks[5], (1,), 1.0 / (27.0 ** 0.5)),
        g2=jax.random.uniform(ks[6], (1,), jnp.float32, 0.5, 1.5),
        be2=u(ks[7], (1,), 0.5),
        wl=u(ks[8], (emb_dim, fan), 1.0 / (fan ** 0.5)),
        bl=u(ks[9], (emb_dim,), 1.0 / (fan ** 0.5)),
    )


# ---------------------------------------------------------------------------
# Pure-JAX reference (for a sanity check)
# ---------------------------------------------------------------------------
def _bn_train(y, gamma, beta):
    mean = y.mean(axis=(0, 2, 3), keepdims=True)
    var = y.var(axis=(0, 2, 3), keepdims=True)   # biased, as BN uses for normalization
    g = gamma.reshape(1, -1, 1, 1)
    b = beta.reshape(1, -1, 1, 1)
    return (y - mean) / jnp.sqrt(var + BN_EPS) * g + b


def _maxpool_nchw(y):
    return lax.reduce_window(y, -jnp.inf, lax.max, (1, 1, 2, 2), (1, 1, 2, 2), "VALID")


def reference_forward(x, params):
    B = x.shape[0]
    y = x[:, None, :, :]                                       # (B, 1, H, W)
    dn = ("NCHW", "OIHW", "NCHW")
    y = lax.conv_general_dilated(y, params["w1"], (1, 1), "VALID", dimension_numbers=dn,
                                 precision=lax.Precision.HIGHEST)
    y = jnp.maximum(y + params["b1"].reshape(1, -1, 1, 1), 0.0)
    y = _bn_train(y, params["g1"], params["be1"])
    y = _maxpool_nchw(y)
    y = lax.conv_general_dilated(y, params["w2"], (1, 1), "VALID", dimension_numbers=dn,
                                 precision=lax.Precision.HIGHEST)
    y = jnp.maximum(y + params["b2"].reshape(1, -1, 1, 1), 0.0)
    y = _bn_train(y, params["g2"], params["be2"])
    y = _maxpool_nchw(y)
    flat = y.reshape(B, -1)
    return jnp.dot(flat, params["wl"].T, precision=lax.Precision.HIGHEST) + params["bl"]


if __name__ == "__main__":
    B, input_dim, input_embed_dim, emb_dim = 2, 16, 64, 32

    key = jax.random.PRNGKey(0)
    kx, kp = jax.random.split(key)
    x = jax.random.normal(kx, (B, input_dim, input_embed_dim), jnp.float32)
    params = init_params(kp, input_dim, input_embed_dim, emb_dim)

    out = encode_embedding_features_conv(x, params)
    out = jax.block_until_ready(out)

    assert out.shape == (B, emb_dim), out.shape

    ref = reference_forward(x, params)
    max_err = float(jnp.max(jnp.abs(out - ref)))
    # f32 everywhere (VPU MAC convs, fused BN reductions, HIGHEST-precision matmuls);
    # tolerance leaves margin only for summation-order effects.
    assert max_err < 5e-3, f"max abs error too large: {max_err}"

    print("KERNEL_OK")
</pallas_src>

<mosaic_0001>
module attributes {stable_mosaic.version = 11 : i64} {
  func.func @_encode_conv_kernel(%arg0: memref<2x16x64xf32, #tpu.memory_space<vmem>>, %arg1: memref<27xf32, #tpu.memory_space<smem>>, %arg2: memref<3xf32, #tpu.memory_space<smem>>, %arg3: memref<3xf32, #tpu.memory_space<smem>>, %arg4: memref<3xf32, #tpu.memory_space<smem>>, %arg5: memref<27xf32, #tpu.memory_space<smem>>, %arg6: memref<1xf32, #tpu.memory_space<smem>>, %arg7: memref<1xf32, #tpu.memory_space<smem>>, %arg8: memref<1xf32, #tpu.memory_space<smem>>, %arg9: memref<28x32xf32, #tpu.memory_space<vmem>>, %arg10: memref<1x32xf32, #tpu.memory_space<vmem>>, %arg11: memref<2x32xf32, #tpu.memory_space<vmem>>, %arg12: memref<2x2x14xf32, #tpu.memory_space<vmem>>) attributes {dimension_semantics = [], scalar_prefetch = 0 : i64, scratch_operands = 1 : i64, tpu.core_type = #tpu.core_type<tc>} {
    %c0 = arith.constant 0 : index
    %c0_0 = arith.constant 0 : index
    %c0_1 = arith.constant 0 : index
    %0 = vector.load %arg0[%c0, %c0_0, %c0_1] : memref<2x16x64xf32, #tpu.memory_space<vmem>>, vector<2x16x64xf32>
    %c0_2 = arith.constant 0 : index
    %1 = memref.load %arg1[%c0_2] : memref<27xf32, #tpu.memory_space<smem>>
    %c1 = arith.constant 1 : index
    %2 = memref.load %arg1[%c1] : memref<27xf32, #tpu.memory_space<smem>>
    %c2 = arith.constant 2 : index
    %3 = memref.load %arg1[%c2] : memref<27xf32, #tpu.memory_space<smem>>
    %c3 = arith.constant 3 : index
    %4 = memref.load %arg1[%c3] : memref<27xf32, #tpu.memory_space<smem>>
    %c4 = arith.constant 4 : index
    %5 = memref.load %arg1[%c4] : memref<27xf32, #tpu.memory_space<smem>>
    %c5 = arith.constant 5 : index
    %6 = memref.load %arg1[%c5] : memref<27xf32, #tpu.memory_space<smem>>
    %c6 = arith.constant 6 : index
    %7 = memref.load %arg1[%c6] : memref<27xf32, #tpu.memory_space<smem>>
    %c7 = arith.constant 7 : index
    %8 = memref.load %arg1[%c7] : memref<27xf32, #tpu.memory_space<smem>>
    %c8 = arith.constant 8 : index
    %9 = memref.load %arg1[%c8] : memref<27xf32, #tpu.memory_space<smem>>
    %c9 = arith.constant 9 : index
    %10 = memref.load %arg1[%c9] : memref<27xf32, #tpu.memory_space<smem>>
    %c10 = arith.constant 10 : index
    %11 = memref.load %arg1[%c10] : memref<27xf32, #tpu.memory_space<smem>>
    %c11 = arith.constant 11 : index
    %12 = memref.load %arg1[%c11] : memref<27xf32, #tpu.memory_space<smem>>
    %c12 = arith.constant 12 : index
    %13 = memref.load %arg1[%c12] : memref<27xf32, #tpu.memory_space<smem>>
    %c13 = arith.constant 13 : index
    %14 = memref.load %arg1[%c13] : memref<27xf32, #tpu.memory_space<smem>>
    %c14 = arith.constant 14 : index
    %15 = memref.load %arg1[%c14] : memref<27xf32, #tpu.memory_space<smem>>
    %c15 = arith.constant 15 : index
    %16 = memref.load %arg1[%c15] : memref<27xf32, #tpu.memory_space<smem>>
    %c16 = arith.constant 16 : index
    %17 = memref.load %arg1[%c16] : memref<27xf32, #tpu.memory_space<smem>>
    %c17 = arith.constant 17 : index
    %18 = memref.load %arg1[%c17] : memref<27xf32, #tpu.memory_space<smem>>
    %c18 = arith.constant 18 : index
    %19 = memref.load %arg1[%c18] : memref<27xf32, #tpu.memory_space<smem>>
    %c19 = arith.constant 19 : index
    %20 = memref.load %arg1[%c19] : memref<27xf32, #tpu.memory_space<smem>>
    %c20 = arith.constant 20 : index
    %21 = memref.load %arg1[%c20] : memref<27xf32, #tpu.memory_space<smem>>
    %c21 = arith.constant 21 : index
    %22 = memref.load %arg1[%c21] : memref<27xf32, #tpu.memory_space<smem>>
    %c22 = arith.constant 22 : index
    %23 = memref.load %arg1[%c22] : memref<27xf32, #tpu.memory_space<smem>>
    %c23 = arith.constant 23 : index
    %24 = memref.load %arg1[%c23] : memref<27xf32, #tpu.memory_space<smem>>
    %c24 = arith.constant 24 : index
    %25 = memref.load %arg1[%c24] : memref<27xf32, #tpu.memory_space<smem>>
    %c25 = arith.constant 25 : index
    %26 = memref.load %arg1[%c25] : memref<27xf32, #tpu.memory_space<smem>>
    %c26 = arith.constant 26 : index
    %27 = memref.load %arg1[%c26] : memref<27xf32, #tpu.memory_space<smem>>
    %c0_3 = arith.constant 0 : index
    %28 = memref.load %arg2[%c0_3] : memref<3xf32, #tpu.memory_space<smem>>
    %c1_4 = arith.constant 1 : index
    %29 = memref.load %arg2[%c1_4] : memref<3xf32, #tpu.memory_space<smem>>
    %c2_5 = arith.constant 2 : index
    %30 = memref.load %arg2[%c2_5] : memref<3xf32, #tpu.memory_space<smem>>
    %c0_6 = arith.constant 0 : index
    %31 = memref.load %arg3[%c0_6] : memref<3xf32, #tpu.memory_space<smem>>
    %c1_7 = arith.constant 1 : index
    %32 = memref.load %arg3[%c1_7] : memref<3xf32, #tpu.memory_space<smem>>
    %c2_8 = arith.constant 2 : index
    %33 = memref.load %arg3[%c2_8] : memref<3xf32, #tpu.memory_space<smem>>
    %c0_9 = arith.constant 0 : index
    %34 = memref.load %arg4[%c0_9] : memref<3xf32, #tpu.memory_space<smem>>
    %c1_10 = arith.constant 1 : index
    %35 = memref.load %arg4[%c1_10] : memref<3xf32, #tpu.memory_space<smem>>
    %c2_11 = arith.constant 2 : index
    %36 = memref.load %arg4[%c2_11] : memref<3xf32, #tpu.memory_space<smem>>
    %c0_12 = arith.constant 0 : index
    %37 = memref.load %arg5[%c0_12] : memref<27xf32, #tpu.memory_space<smem>>
    %c1_13 = arith.constant 1 : index
    %38 = memref.load %arg5[%c1_13] : memref<27xf32, #tpu.memory_space<smem>>
    %c2_14 = arith.constant 2 : index
    %39 = memref.load %arg5[%c2_14] : memref<27xf32, #tpu.memory_space<smem>>
    %c3_15 = arith.constant 3 : index
    %40 = memref.load %arg5[%c3_15] : memref<27xf32, #tpu.memory_space<smem>>
    %c4_16 = arith.constant 4 : index
    %41 = memref.load %arg5[%c4_16] : memref<27xf32, #tpu.memory_space<smem>>
    %c5_17 = arith.constant 5 : index
    %42 = memref.load %arg5[%c5_17] : memref<27xf32, #tpu.memory_space<smem>>
    %c6_18 = arith.constant 6 : index
    %43 = memref.load %arg5[%c6_18] : memref<27xf32, #tpu.memory_space<smem>>
    %c7_19 = arith.constant 7 : index
    %44 = memref.load %arg5[%c7_19] : memref<27xf32, #tpu.memory_space<smem>>
    %c8_20 = arith.constant 8 : index
    %45 = memref.load %arg5[%c8_20] : memref<27xf32, #tpu.memory_space<smem>>
    %c9_21 = arith.constant 9 : index
    %46 = memref.load %arg5[%c9_21] : memref<27xf32, #tpu.memory_space<smem>>
    %c10_22 = arith.constant 10 : index
    %47 = memref.load %arg5[%c10_22] : memref<27xf32, #tpu.memory_space<smem>>
    %c11_23 = arith.constant 11 : index
    %48 = memref.load %arg5[%c11_23] : memref<27xf32, #tpu.memory_space<smem>>
    %c12_24 = arith.constant 12 : index
    %49 = memref.load %arg5[%c12_24] : memref<27xf32, #tpu.memory_space<smem>>
    %c13_25 = arith.constant 13 : index
    %50 = memref.load %arg5[%c13_25] : memref<27xf32, #tpu.memory_space<smem>>
    %c14_26 = arith.constant 14 : index
    %51 = memref.load %arg5[%c14_26] : memref<27xf32, #tpu.memory_space<smem>>
    %c15_27 = arith.constant 15 : index
    %52 = memref.load %arg5[%c15_27] : memref<27xf32, #tpu.memory_space<smem>>
    %c16_28 = arith.constant 16 : index
    %53 = memref.load %arg5[%c16_28] : memref<27xf32, #tpu.memory_space<smem>>
    %c17_29 = arith.constant 17 : index
    %54 = memref.load %arg5[%c17_29] : memref<27xf32, #tpu.memory_space<smem>>
    %c18_30 = arith.constant 18 : index
    %55 = memref.load %arg5[%c18_30] : memref<27xf32, #tpu.memory_space<smem>>
    %c19_31 = arith.constant 19 : index
    %56 = memref.load %arg5[%c19_31] : memref<27xf32, #tpu.memory_space<smem>>
    %c20_32 = arith.constant 20 : index
    %57 = memref.load %arg5[%c20_32] : memref<27xf32, #tpu.memory_space<smem>>
    %c21_33 = arith.constant 21 : index
    %58 = memref.load %arg5[%c21_33] : memref<27xf32, #tpu.memory_space<smem>>
    %c22_34 = arith.constant 22 : index
    %59 = memref.load %arg5[%c22_34] : memref<27xf32, #tpu.memory_space<smem>>
    %c23_35 = arith.constant 23 : index
    %60 = memref.load %arg5[%c23_35] : memref<27xf32, #tpu.memory_space<smem>>
    %c24_36 = arith.constant 24 : index
    %61 = memref.load %arg5[%c24_36] : memref<27xf32, #tpu.memory_space<smem>>
    %c25_37 = arith.constant 25 : index
    %62 = memref.load %arg5[%c25_37] : memref<27xf32, #tpu.memory_space<smem>>
    %c26_38 = arith.constant 26 : index
    %63 = memref.load %arg5[%c26_38] : memref<27xf32, #tpu.memory_space<smem>>
    %c0_39 = arith.constant 0 : index
    %64 = memref.load %arg6[%c0_39] : memref<1xf32, #tpu.memory_space<smem>>
    %c0_40 = arith.constant 0 : index
    %65 = memref.load %arg7[%c0_40] : memref<1xf32, #tpu.memory_space<smem>>
    %c0_41 = arith.constant 0 : index
    %66 = memref.load %arg8[%c0_41] : memref<1xf32, #tpu.memory_space<smem>>
    %67 = vector.extract_strided_slice %0 {offsets = [0, 0, 0], sizes = [2, 14, 62], strides = [1, 1, 1]} : vector<2x16x64xf32> to vector<2x14x62xf32>
    %68 = vector.extract_strided_slice %0 {offsets = [0, 0, 1], sizes = [2, 14, 62], strides = [1, 1, 1]} : vector<2x16x64xf32> to vector<2x14x62xf32>
    %69 = vector.extract_strided_slice %0 {offsets = [0, 0, 2], sizes = [2, 14, 62], strides = [1, 1, 1]} : vector<2x16x64xf32> to vector<2x14x62xf32>
    %70 = vector.extract_strided_slice %0 {offsets = [0, 1, 0], sizes = [2, 14, 62], strides = [1, 1, 1]} : vector<2x16x64xf32> to vector<2x14x62xf32>
    %71 = vector.extract_strided_slice %0 {offsets = [0, 1, 1], sizes = [2, 14, 62], strides = [1, 1, 1]} : vector<2x16x64xf32> to vector<2x14x62xf32>
    %72 = vector.extract_strided_slice %0 {offsets = [0, 1, 2], sizes = [2, 14, 62], strides = [1, 1, 1]} : vector<2x16x64xf32> to vector<2x14x62xf32>
    %73 = vector.extract_strided_slice %0 {offsets = [0, 2, 0], sizes = [2, 14, 62], strides = [1, 1, 1]} : vector<2x16x64xf32> to vector<2x14x62xf32>
    %74 = vector.extract_strided_slice %0 {offsets = [0, 2, 1], sizes = [2, 14, 62], strides = [1, 1, 1]} : vector<2x16x64xf32> to vector<2x14x62xf32>
    %75 = vector.extract_strided_slice %0 {offsets = [0, 2, 2], sizes = [2, 14, 62], strides = [1, 1, 1]} : vector<2x16x64xf32> to vector<2x14x62xf32>
    %76 = vector.broadcast %1 : f32 to vector<2x14x62xf32>
    %77 = arith.mulf %67, %76 : vector<2x14x62xf32>
    %78 = vector.broadcast %2 : f32 to vector<2x14x62xf32>
    %79 = arith.mulf %68, %78 : vector<2x14x62xf32>
    %80 = arith.addf %77, %79 : vector<2x14x62xf32>
    %81 = vector.broadcast %3 : f32 to vector<2x14x62xf32>
    %82 = arith.mulf %69, %81 : vector<2x14x62xf32>
    %83 = arith.addf %80, %82 : vector<2x14x62xf32>
    %84 = vector.broadcast %4 : f32 to vector<2x14x62xf32>
    %85 = arith.mulf %70, %84 : vector<2x14x62xf32>
    %86 = arith.addf %83, %85 : vector<2x14x62xf32>
    %87 = vector.broadcast %5 : f32 to vector<2x14x62xf32>
    %88 = arith.mulf %71, %87 : vector<2x14x62xf32>
    %89 = arith.addf %86, %88 : vector<2x14x62xf32>
    %90 = vector.broadcast %6 : f32 to vector<2x14x62xf32>
    %91 = arith.mulf %72, %90 : vector<2x14x62xf32>
    %92 = arith.addf %89, %91 : vector<2x14x62xf32>
    %93 = vector.broadcast %7 : f32 to vector<2x14x62xf32>
    %94 = arith.mulf %73, %93 : vector<2x14x62xf32>
    %95 = arith.addf %92, %94 : vector<2x14x62xf32>
    %96 = vector.broadcast %8 : f32 to vector<2x14x62xf32>
    %97 = arith.mulf %74, %96 : vector<2x14x62xf32>
    %98 = arith.addf %95, %97 : vector<2x14x62xf32>
    %99 = vector.broadcast %9 : f32 to vector<2x14x62xf32>
    %100 = arith.mulf %75, %99 : vector<2x14x62xf32>
    %101 = arith.addf %98, %100 : vector<2x14x62xf32>
    %102 = vector.broadcast %28 : f32 to vector<2x14x62xf32>
    %103 = arith.addf %101, %102 : vector<2x14x62xf32>
    %cst = arith.constant 0.000000e+00 : f32
    %104 = vector.broadcast %cst : f32 to vector<2x14x62xf32>
    %105 = arith.maximumf %103, %104 : vector<2x14x62xf32>
    %cst_42 = arith.constant dense<0.000000e+00> : vector<14x62xf32>
    %106 = vector.multi_reduction <add>, %105, %cst_42 [0] : vector<2x14x62xf32> to vector<14x62xf32>
    %107 = vector.shape_cast %106 : vector<14x62xf32> to vector<1x14x62xf32>
    %cst_43 = arith.constant dense<0.000000e+00> : vector<1xf32>
    %108 = vector.multi_reduction <add>, %107, %cst_43 [1, 2] : vector<1x14x62xf32> to vector<1xf32>
    %109 = vector.shape_cast %108 : vector<1xf32> to vector<1x1x1xf32>
    %110 = vector.extract %109[0, 0, 0] : f32 from vector<1x1x1xf32>
    %111 = vector.broadcast %110 : f32 to vector<1x1xf32>
    %cst_44 = arith.constant 5.76036866E-4 : f32
    %112 = vector.broadcast %cst_44 : f32 to vector<1x1xf32>
    %113 = arith.mulf %111, %112 : vector<1x1xf32>
    %114 = vector.shape_cast %113 : vector<1x1xf32> to vector<1x1x1xf32>
    %115 = vector.broadcast %114 : vector<1x1x1xf32> to vector<2x14x62xf32>
    %116 = arith.subf %105, %115 : vector<2x14x62xf32>
    %117 = arith.mulf %116, %116 : vector<2x14x62xf32>
    %cst_45 = arith.constant dense<0.000000e+00> : vector<14x62xf32>
    %118 = vector.multi_reduction <add>, %117, %cst_45 [0] : vector<2x14x62xf32> to vector<14x62xf32>
    %119 = vector.shape_cast %118 : vector<14x62xf32> to vector<1x14x62xf32>
    %cst_46 = arith.constant dense<0.000000e+00> : vector<1xf32>
    %120 = vector.multi_reduction <add>, %119, %cst_46 [1, 2] : vector<1x14x62xf32> to vector<1xf32>
    %121 = vector.shape_cast %120 : vector<1xf32> to vector<1x1x1xf32>
    %122 = vector.extract %121[0, 0, 0] : f32 from vector<1x1x1xf32>
    %123 = vector.broadcast %122 : f32 to vector<1x1xf32>
    %cst_47 = arith.constant 5.76036866E-4 : f32
    %124 = vector.broadcast %cst_47 : f32 to vector<1x1xf32>
    %125 = arith.mulf %123, %124 : vector<1x1xf32>
    %cst_48 = arith.constant 9.99999974E-6 : f32
    %126 = vector.broadcast %cst_48 : f32 to vector<1x1xf32>
    %127 = arith.addf %125, %126 : vector<1x1xf32>
    %128 = math.rsqrt %127 : vector<1x1xf32>
    %129 = vector.broadcast %31 : f32 to vector<1x1xf32>
    %130 = arith.mulf %128, %129 : vector<1x1xf32>
    %131 = vector.shape_cast %130 : vector<1x1xf32> to vector<1x1x1xf32>
    %132 = vector.broadcast %131 : vector<1x1x1xf32> to vector<2x14x62xf32>
    %133 = arith.mulf %116, %132 : vector<2x14x62xf32>
    %134 = vector.broadcast %34 : f32 to vector<2x14x62xf32>
    %135 = arith.addf %133, %134 : vector<2x14x62xf32>
    %136 = vector.broadcast %10 : f32 to vector<2x14x62xf32>
    %137 = arith.mulf %67, %136 : vector<2x14x62xf32>
    %138 = vector.broadcast %11 : f32 to vector<2x14x62xf32>
    %139 = arith.mulf %68, %138 : vector<2x14x62xf32>
    %140 = arith.addf %137, %139 : vector<2x14x62xf32>
    %141 = vector.broadcast %12 : f32 to vector<2x14x62xf32>
    %142 = arith.mulf %69, %141 : vector<2x14x62xf32>
    %143 = arith.addf %140, %142 : vector<2x14x62xf32>
    %144 = vector.broadcast %13 : f32 to vector<2x14x62xf32>
    %145 = arith.mulf %70, %144 : vector<2x14x62xf32>
    %146 = arith.addf %143, %145 : vector<2x14x62xf32>
    %147 = vector.broadcast %14 : f32 to vector<2x14x62xf32>
    %148 = arith.mulf %71, %147 : vector<2x14x62xf32>
    %149 = arith.addf %146, %148 : vector<2x14x62xf32>
    %150 = vector.broadcast %15 : f32 to vector<2x14x62xf32>
    %151 = arith.mulf %72, %150 : vector<2x14x62xf32>
    %152 = arith.addf %149, %151 : vector<2x14x62xf32>
    %153 = vector.broadcast %16 : f32 to vector<2x14x62xf32>
    %154 = arith.mulf %73, %153 : vector<2x14x62xf32>
    %155 = arith.addf %152, %154 : vector<2x14x62xf32>
    %156 = vector.broadcast %17 : f32 to vector<2x14x62xf32>
    %157 = arith.mulf %74, %156 : vector<2x14x62xf32>
    %158 = arith.addf %155, %157 : vector<2x14x62xf32>
    %159 = vector.broadcast %18 : f32 to vector<2x14x62xf32>
    %160 = arith.mulf %75, %159 : vector<2x14x62xf32>
    %161 = arith.addf %158, %160 : vector<2x14x62xf32>
    %162 = vector.broadcast %29 : f32 to vector<2x14x62xf32>
    %163 = arith.addf %161, %162 : vector<2x14x62xf32>
    %cst_49 = arith.constant 0.000000e+00 : f32
    %164 = vector.broadcast %cst_49 : f32 to vector<2x14x62xf32>
    %165 = arith.maximumf %163, %164 : vector<2x14x62xf32>
    %cst_50 = arith.constant dense<0.000000e+00> : vector<14x62xf32>
    %166 = vector.multi_reduction <add>, %165, %cst_50 [0] : vector<2x14x62xf32> to vector<14x62xf32>
    %167 = vector.shape_cast %166 : vector<14x62xf32> to vector<1x14x62xf32>
    %cst_51 = arith.constant dense<0.000000e+00> : vector<1xf32>
    %168 = vector.multi_reduction <add>, %167, %cst_51 [1, 2] : vector<1x14x62xf32> to vector<1xf32>
    %169 = vector.shape_cast %168 : vector<1xf32> to vector<1x1x1xf32>
    %170 = vector.extract %169[0, 0, 0] : f32 from vector<1x1x1xf32>
    %171 = vector.broadcast %170 : f32 to vector<1x1xf32>
    %cst_52 = arith.constant 5.76036866E-4 : f32
    %172 = vector.broadcast %cst_52 : f32 to vector<1x1xf32>
    %173 = arith.mulf %171, %172 : vector<1x1xf32>
    %174 = vector.shape_cast %173 : vector<1x1xf32> to vector<1x1x1xf32>
    %175 = vector.broadcast %174 : vector<1x1x1xf32> to vector<2x14x62xf32>
    %176 = arith.subf %165, %175 : vector<2x14x62xf32>
    %177 = arith.mulf %176, %176 : vector<2x14x62xf32>
    %cst_53 = arith.constant dense<0.000000e+00> : vector<14x62xf32>
    %178 = vector.multi_reduction <add>, %177, %cst_53 [0] : vector<2x14x62xf32> to vector<14x62xf32>
    %179 = vector.shape_cast %178 : vector<14x62xf32> to vector<1x14x62xf32>
    %cst_54 = arith.constant dense<0.000000e+00> : vector<1xf32>
    %180 = vector.multi_reduction <add>, %179, %cst_54 [1, 2] : vector<1x14x62xf32> to vector<1xf32>
    %181 = vector.shape_cast %180 : vector<1xf32> to vector<1x1x1xf32>
    %182 = vector.extract %181[0, 0, 0] : f32 from vector<1x1x1xf32>
    %183 = vector.broadcast %182 : f32 to vector<1x1xf32>
    %cst_55 = arith.constant 5.76036866E-4 : f32
    %184 = vector.broadcast %cst_55 : f32 to vector<1x1xf32>
    %185 = arith.mulf %183, %184 : vector<1x1xf32>
    %cst_56 = arith.constant 9.99999974E-6 : f32
    %186 = vector.broadcast %cst_56 : f32 to vector<1x1xf32>
    %187 = arith.addf %185, %186 : vector<1x1xf32>
    %188 = math.rsqrt %187 : vector<1x1xf32>
    %189 = vector.broadcast %32 : f32 to vector<1x1xf32>
    %190 = arith.mulf %188, %189 : vector<1x1xf32>
    %191 = vector.shape_cast %190 : vector<1x1xf32> to vector<1x1x1xf32>
    %192 = vector.broadcast %191 : vector<1x1x1xf32> to vector<2x14x62xf32>
    %193 = arith.mulf %176, %192 : vector<2x14x62xf32>
    %194 = vector.broadcast %35 : f32 to vector<2x14x62xf32>
    %195 = arith.addf %193, %194 : vector<2x14x62xf32>
    %196 = vector.broadcast %19 : f32 to vector<2x14x62xf32>
    %197 = arith.mulf %67, %196 : vector<2x14x62xf32>
    %198 = vector.broadcast %20 : f32 to vector<2x14x62xf32>
    %199 = arith.mulf %68, %198 : vector<2x14x62xf32>
    %200 = arith.addf %197, %199 : vector<2x14x62xf32>
    %201 = vector.broadcast %21 : f32 to vector<2x14x62xf32>
    %202 = arith.mulf %69, %201 : vector<2x14x62xf32>
    %203 = arith.addf %200, %202 : vector<2x14x62xf32>
    %204 = vector.broadcast %22 : f32 to vector<2x14x62xf32>
    %205 = arith.mulf %70, %204 : vector<2x14x62xf32>
    %206 = arith.addf %203, %205 : vector<2x14x62xf32>
    %207 = vector.broadcast %23 : f32 to vector<2x14x62xf32>
    %208 = arith.mulf %71, %207 : vector<2x14x62xf32>
    %209 = arith.addf %206, %208 : vector<2x14x62xf32>
    %210 = vector.broadcast %24 : f32 to vector<2x14x62xf32>
    %211 = arith.mulf %72, %210 : vector<2x14x62xf32>
    %212 = arith.addf %209, %211 : vector<2x14x62xf32>
    %213 = vector.broadcast %25 : f32 to vector<2x14x62xf32>
    %214 = arith.mulf %73, %213 : vector<2x14x62xf32>
    %215 = arith.addf %212, %214 : vector<2x14x62xf32>
    %216 = vector.broadcast %26 : f32 to vector<2x14x62xf32>
    %217 = arith.mulf %74, %216 : vector<2x14x62xf32>
    %218 = arith.addf %215, %217 : vector<2x14x62xf32>
    %219 = vector.broadcast %27 : f32 to vector<2x14x62xf32>
    %220 = arith.mulf %75, %219 : vector<2x14x62xf32>
    %221 = arith.addf %218, %220 : vector<2x14x62xf32>
    %222 = vector.broadcast %30 : f32 to vector<2x14x62xf32>
    %223 = arith.addf %221, %222 : vector<2x14x62xf32>
    %cst_57 = arith.constant 0.000000e+00 : f32
    %224 = vector.broadcast %cst_57 : f32 to vector<2x14x62xf32>
    %225 = arith.maximumf %223, %224 : vector<2x14x62xf32>
    %cst_58 = arith.constant dense<0.000000e+00> : vector<14x62xf32>
    %226 = vector.multi_reduction <add>, %225, %cst_58 [0] : vector<2x14x62xf32> to vector<14x62xf32>
    %227 = vector.shape_cast %226 : vector<14x62xf32> to vector<1x14x62xf32>
    %cst_59 = arith.constant dense<0.000000e+00> : vector<1xf32>
    %228 = vector.multi_reduction <add>, %227, %cst_59 [1, 2] : vector<1x14x62xf32> to vector<1xf32>
    %229 = vector.shape_cast %228 : vector<1xf32> to vector<1x1x1xf32>
    %230 = vector.extract %229[0, 0, 0] : f32 from vector<1x1x1xf32>
    %231 = vector.broadcast %230 : f32 to vector<1x1xf32>
    %cst_60 = arith.constant 5.76036866E-4 : f32
    %232 = vector.broadcast %cst_60 : f32 to vector<1x1xf32>
    %233 = arith.mulf %231, %232 : vector<1x1xf32>
    %234 = vector.shape_cast %233 : vector<1x1xf32> to vector<1x1x1xf32>
    %235 = vector.broadcast %234 : vector<1x1x1xf32> to vector<2x14x62xf32>
    %236 = arith.subf %225, %235 : vector<2x14x62xf32>
    %237 = arith.mulf %236, %236 : vector<2x14x62xf32>
    %cst_61 = arith.constant dense<0.000000e+00> : vector<14x62xf32>
    %238 = vector.multi_reduction <add>, %237, %cst_61 [0] : vector<2x14x62xf32> to vector<14x62xf32>
    %239 = vector.shape_cast %238 : vector<14x62xf32> to vector<1x14x62xf32>
    %cst_62 = arith.constant dense<0.000000e+00> : vector<1xf32>
    %240 = vector.multi_reduction <add>, %239, %cst_62 [1, 2] : vector<1x14x62xf32> to vector<1xf32>
    %241 = vector.shape_cast %240 : vector<1xf32> to vector<1x1x1xf32>
    %242 = vector.extract %241[0, 0, 0] : f32 from vector<1x1x1xf32>
    %243 = vector.broadcast %242 : f32 to vector<1x1xf32>
    %cst_63 = arith.constant 5.76036866E-4 : f32
    %244 = vector.broadcast %cst_63 : f32 to vector<1x1xf32>
    %245 = arith.mulf %243, %244 : vector<1x1xf32>
    %cst_64 = arith.constant 9.99999974E-6 : f32
    %246 = vector.broadcast %cst_64 : f32 to vector<1x1xf32>
    %247 = arith.addf %245, %246 : vector<1x1xf32>
    %248 = math.rsqrt %247 : vector<1x1xf32>
    %249 = vector.broadcast %33 : f32 to vector<1x1xf32>
    %250 = arith.mulf %248, %249 : vector<1x1xf32>
    %251 = vector.shape_cast %250 : vector<1x1xf32> to vector<1x1x1xf32>
    %252 = vector.broadcast %251 : vector<1x1x1xf32> to vector<2x14x62xf32>
    %253 = arith.mulf %236, %252 : vector<2x14x62xf32>
    %254 = vector.broadcast %36 : f32 to vector<2x14x62xf32>
    %255 = arith.addf %253, %254 : vector<2x14x62xf32>
    %256 = tpu.concatenate %135, %195, %255 in 0 : vector<2x14x62xf32>, vector<2x14x62xf32>, vector<2x14x62xf32> -> vector<6x14x62xf32>
    %257 = tpu.iota {dimensions = array<i32: 1>} : vector<6x7x13xi32>
    %258 = tpu.iota {dimensions = array<i32: 2>} : vector<6x7x13xi32>
    %c2_i32 = arith.constant 2 : i32
    %259 = vector.broadcast %c2_i32 : i32 to vector<6x7x13xi32>
    %260 = arith.muli %259, %257 : vector<6x7x13xi32>
    %261 = arith.cmpi eq, %258, %260 : vector<6x7x13xi32>
    %262 = arith.extui %261 : vector<6x7x13xi1> to vector<6x7x13xi32>
    %263 = arith.sitofp %262 : vector<6x7x13xi32> to vector<6x7x13xf32>
    %264 = tpu.iota {dimensions = array<i32: 1>} : vector<6x61x31xi32>
    %265 = tpu.iota {dimensions = array<i32: 2>} : vector<6x61x31xi32>
    %c2_i32_65 = arith.constant 2 : i32
    %266 = vector.broadcast %c2_i32_65 : i32 to vector<6x61x31xi32>
    %267 = arith.muli %266, %265 : vector<6x61x31xi32>
    %268 = arith.cmpi eq, %264, %267 : vector<6x61x31xi32>
    %269 = arith.extui %268 : vector<6x61x31xi1> to vector<6x61x31xi32>
    %270 = arith.sitofp %269 : vector<6x61x31xi32> to vector<6x61x31xf32>
    %271 = vector.extract_strided_slice %256 {offsets = [0, 0, 0], sizes = [6, 13, 62], strides = [1, 1, 1]} : vector<6x14x62xf32> to vector<6x13x62xf32>
    %272 = vector.extract_strided_slice %256 {offsets = [0, 1, 0], sizes = [6, 13, 62], strides = [1, 1, 1]} : vector<6x14x62xf32> to vector<6x13x62xf32>
    %273 = arith.maximumf %271, %272 : vector<6x13x62xf32>
    "tpu.trace_start"() <{level = 10 : i32, message = "boh,bhw->bow"}> : () -> ()
    %cst_66 = arith.constant dense<0.000000e+00> : vector<6x7x62xf32>
    %274 = tpu.matmul %263, %273, %cst_66 {dimension_numbers = #tpu.dot_dimension_numbers<[2], [1], [1], [2], [0, 0, 0, 1, 1, 2], [0], [0]>, precision = #tpu.contract_precision<fp32>} : vector<6x7x13xf32>, vector<6x13x62xf32>, vector<6x7x62xf32> -> vector<6x7x62xf32>
    "tpu.trace_stop"() : () -> ()
    %275 = vector.extract_strided_slice %274 {offsets = [0, 0, 0], sizes = [6, 7, 61], strides = [1, 1, 1]} : vector<6x7x62xf32> to vector<6x7x61xf32>
    %276 = vector.extract_strided_slice %274 {offsets = [0, 0, 1], sizes = [6, 7, 61], strides = [1, 1, 1]} : vector<6x7x62xf32> to vector<6x7x61xf32>
    %277 = arith.maximumf %275, %276 : vector<6x7x61xf32>
    "tpu.trace_start"() <{level = 10 : i32, message = "bhw,bwo->bho"}> : () -> ()
    %cst_67 = arith.constant dense<0.000000e+00> : vector<6x7x31xf32>
    %278 = tpu.matmul %277, %270, %cst_67 {dimension_numbers = #tpu.dot_dimension_numbers<[2], [1], [1], [2], [0, 0, 0, 1, 1, 2], [0], [0]>, precision = #tpu.contract_precision<fp32>} : vector<6x7x61xf32>, vector<6x61x31xf32>, vector<6x7x31xf32> -> vector<6x7x31xf32>
    "tpu.trace_stop"() : () -> ()
    %279 = vector.extract_strided_slice %278 {offsets = [0, 0, 0], sizes = [2, 7, 31], strides = [1, 1, 1]} : vector<6x7x31xf32> to vector<2x7x31xf32>
    %280 = vector.extract_strided_slice %279 {offsets = [0, 0, 0], sizes = [2, 5, 29], strides = [1, 1, 1]} : vector<2x7x31xf32> to vector<2x5x29xf32>
    %281 = vector.broadcast %37 : f32 to vector<2x5x29xf32>
    %282 = arith.mulf %280, %281 : vector<2x5x29xf32>
    %283 = vector.extract_strided_slice %279 {offsets = [0, 0, 1], sizes = [2, 5, 29], strides = [1, 1, 1]} : vector<2x7x31xf32> to vector<2x5x29xf32>
    %284 = vector.broadcast %38 : f32 to vector<2x5x29xf32>
    %285 = arith.mulf %283, %284 : vector<2x5x29xf32>
    %286 = arith.addf %282, %285 : vector<2x5x29xf32>
    %287 = vector.extract_strided_slice %279 {offsets = [0, 0, 2], sizes = [2, 5, 29], strides = [1, 1, 1]} : vector<2x7x31xf32> to vector<2x5x29xf32>
    %288 = vector.broadcast %39 : f32 to vector<2x5x29xf32>
    %289 = arith.mulf %287, %288 : vector<2x5x29xf32>
    %290 = arith.addf %286, %289 : vector<2x5x29xf32>
    %291 = vector.extract_strided_slice %279 {offsets = [0, 1, 0], sizes = [2, 5, 29], strides = [1, 1, 1]} : vector<2x7x31xf32> to vector<2x5x29xf32>
    %292 = vector.broadcast %40 : f32 to vector<2x5x29xf32>
    %293 = arith.mulf %291, %292 : vector<2x5x29xf32>
    %294 = arith.addf %290, %293 : vector<2x5x29xf32>
    %295 = vector.extract_strided_slice %279 {offsets = [0, 1, 1], sizes = [2, 5, 29], strides = [1, 1, 1]} : vector<2x7x31xf32> to vector<2x5x29xf32>
    %296 = vector.broadcast %41 : f32 to vector<2x5x29xf32>
    %297 = arith.mulf %295, %296 : vector<2x5x29xf32>
    %298 = arith.addf %294, %297 : vector<2x5x29xf32>
    %299 = vector.extract_strided_slice %279 {offsets = [0, 1, 2], sizes = [2, 5, 29], strides = [1, 1, 1]} : vector<2x7x31xf32> to vector<2x5x29xf32>
    %300 = vector.broadcast %42 : f32 to vector<2x5x29xf32>
    %301 = arith.mulf %299, %300 : vector<2x5x29xf32>
    %302 = arith.addf %298, %301 : vector<2x5x29xf32>
    %303 = vector.extract_strided_slice %279 {offsets = [0, 2, 0], sizes = [2, 5, 29], strides = [1, 1, 1]} : vector<2x7x31xf32> to vector<2x5x29xf32>
    %304 = vector.broadcast %43 : f32 to vector<2x5x29xf32>
    %305 = arith.mulf %303, %304 : vector<2x5x29xf32>
    %306 = arith.addf %302, %305 : vector<2x5x29xf32>
    %307 = vector.extract_strided_slice %279 {offsets = [0, 2, 1], sizes = [2, 5, 29], strides = [1, 1, 1]} : vector<2x7x31xf32> to vector<2x5x29xf32>
    %308 = vector.broadcast %44 : f32 to vector<2x5x29xf32>
    %309 = arith.mulf %307, %308 : vector<2x5x29xf32>
    %310 = arith.addf %306, %309 : vector<2x5x29xf32>
    %311 = vector.extract_strided_slice %279 {offsets = [0, 2, 2], sizes = [2, 5, 29], strides = [1, 1, 1]} : vector<2x7x31xf32> to vector<2x5x29xf32>
    %312 = vector.broadcast %45 : f32 to vector<2x5x29xf32>
    %313 = arith.mulf %311, %312 : vector<2x5x29xf32>
    %314 = arith.addf %310, %313 : vector<2x5x29xf32>
    %315 = vector.extract_strided_slice %278 {offsets = [2, 0, 0], sizes = [2, 7, 31], strides = [1, 1, 1]} : vector<6x7x31xf32> to vector<2x7x31xf32>
    %316 = vector.extract_strided_slice %315 {offsets = [0, 0, 0], sizes = [2, 5, 29], strides = [1, 1, 1]} : vector<2x7x31xf32> to vector<2x5x29xf32>
    %317 = vector.broadcast %46 : f32 to vector<2x5x29xf32>
    %318 = arith.mulf %316, %317 : vector<2x5x29xf32>
    %319 = arith.addf %314, %318 : vector<2x5x29xf32>
    %320 = vector.extract_strided_slice %315 {offsets = [0, 0, 1], sizes = [2, 5, 29], strides = [1, 1, 1]} : vector<2x7x31xf32> to vector<2x5x29xf32>
    %321 = vector.broadcast %47 : f32 to vector<2x5x29xf32>
    %322 = arith.mulf %320, %321 : vector<2x5x29xf32>
    %323 = arith.addf %319, %322 : vector<2x5x29xf32>
    %324 = vector.extract_strided_slice %315 {offsets = [0, 0, 2], sizes = [2, 5, 29], strides = [1, 1, 1]} : vector<2x7x31xf32> to vector<2x5x29xf32>
    %325 = vector.broadcast %48 : f32 to vector<2x5x29xf32>
    %326 = arith.mulf %324, %325 : vector<2x5x29xf32>
    %327 = arith.addf %323, %326 : vector<2x5x29xf32>
    %328 = vector.extract_strided_slice %315 {offsets = [0, 1, 0], sizes = [2, 5, 29], strides = [1, 1, 1]} : vector<2x7x31xf32> to vector<2x5x29xf32>
    %329 = vector.broadcast %49 : f32 to vector<2x5x29xf32>
    %330 = arith.mulf %328, %329 : vector<2x5x29xf32>
    %331 = arith.addf %327, %330 : vector<2x5x29xf32>
    %332 = vector.extract_strided_slice %315 {offsets = [0, 1, 1], sizes = [2, 5, 29], strides = [1, 1, 1]} : vector<2x7x31xf32> to vector<2x5x29xf32>
    %333 = vector.broadcast %50 : f32 to vector<2x5x29xf32>
    %334 = arith.mulf %332, %333 : vector<2x5x29xf32>
    %335 = arith.addf %331, %334 : vector<2x5x29xf32>
    %336 = vector.extract_strided_slice %315 {offsets = [0, 1, 2], sizes = [2, 5, 29], strides = [1, 1, 1]} : vector<2x7x31xf32> to vector<2x5x29xf32>
    %337 = vector.broadcast %51 : f32 to vector<2x5x29xf32>
    %338 = arith.mulf %336, %337 : vector<2x5x29xf32>
    %339 = arith.addf %335, %338 : vector<2x5x29xf32>
    %340 = vector.extract_strided_slice %315 {offsets = [0, 2, 0], sizes = [2, 5, 29], strides = [1, 1, 1]} : vector<2x7x31xf32> to vector<2x5x29xf32>
    %341 = vector.broadcast %52 : f32 to vector<2x5x29xf32>
    %342 = arith.mulf %340, %341 : vector<2x5x29xf32>
    %343 = arith.addf %339, %342 : vector<2x5x29xf32>
    %344 = vector.extract_strided_slice %315 {offsets = [0, 2, 1], sizes = [2, 5, 29], strides = [1, 1, 1]} : vector<2x7x31xf32> to vector<2x5x29xf32>
    %345 = vector.broadcast %53 : f32 to vector<2x5x29xf32>
    %346 = arith.mulf %344, %345 : vector<2x5x29xf32>
    %347 = arith.addf %343, %346 : vector<2x5x29xf32>
    %348 = vector.extract_strided_slice %315 {offsets = [0, 2, 2], sizes = [2, 5, 29], strides = [1, 1, 1]} : vector<2x7x31xf32> to vector<2x5x29xf32>
    %349 = vector.broadcast %54 : f32 to vector<2x5x29xf32>
    %350 = arith.mulf %348, %349 : vector<2x5x29xf32>
    %351 = arith.addf %347, %350 : vector<2x5x29xf32>
    %352 = vector.extract_strided_slice %278 {offsets = [4, 0, 0], sizes = [2, 7, 31], strides = [1, 1, 1]} : vector<6x7x31xf32> to vector<2x7x31xf32>
    %353 = vector.extract_strided_slice %352 {offsets = [0, 0, 0], sizes = [2, 5, 29], strides = [1, 1, 1]} : vector<2x7x31xf32> to vector<2x5x29xf32>
    %354 = vector.broadcast %55 : f32 to vector<2x5x29xf32>
    %355 = arith.mulf %353, %354 : vector<2x5x29xf32>
    %356 = arith.addf %351, %355 : vector<2x5x29xf32>
    %357 = vector.extract_strided_slice %352 {offsets = [0, 0, 1], sizes = [2, 5, 29], strides = [1, 1, 1]} : vector<2x7x31xf32> to vector<2x5x29xf32>
    %358 = vector.broadcast %56 : f32 to vector<2x5x29xf32>
    %359 = arith.mulf %357, %358 : vector<2x5x29xf32>
    %360 = arith.addf %356, %359 : vector<2x5x29xf32>
    %361 = vector.extract_strided_slice %352 {offsets = [0, 0, 2], sizes = [2, 5, 29], strides = [1, 1, 1]} : vector<2x7x31xf32> to vector<2x5x29xf32>
    %362 = vector.broadcast %57 : f32 to vector<2x5x29xf32>
    %363 = arith.mulf %361, %362 : vector<2x5x29xf32>
    %364 = arith.addf %360, %363 : vector<2x5x29xf32>
    %365 = vector.extract_strided_slice %352 {offsets = [0, 1, 0], sizes = [2, 5, 29], strides = [1, 1, 1]} : vector<2x7x31xf32> to vector<2x5x29xf32>
    %366 = vector.broadcast %58 : f32 to vector<2x5x29xf32>
    %367 = arith.mulf %365, %366 : vector<2x5x29xf32>
    %368 = arith.addf %364, %367 : vector<2x5x29xf32>
    %369 = vector.extract_strided_slice %352 {offsets = [0, 1, 1], sizes = [2, 5, 29], strides = [1, 1, 1]} : vector<2x7x31xf32> to vector<2x5x29xf32>
    %370 = vector.broadcast %59 : f32 to vector<2x5x29xf32>
    %371 = arith.mulf %369, %370 : vector<2x5x29xf32>
    %372 = arith.addf %368, %371 : vector<2x5x29xf32>
    %373 = vector.extract_strided_slice %352 {offsets = [0, 1, 2], sizes = [2, 5, 29], strides = [1, 1, 1]} : vector<2x7x31xf32> to vector<2x5x29xf32>
    %374 = vector.broadcast %60 : f32 to vector<2x5x29xf32>
    %375 = arith.mulf %373, %374 : vector<2x5x29xf32>
    %376 = arith.addf %372, %375 : vector<2x5x29xf32>
    %377 = vector.extract_strided_slice %352 {offsets = [0, 2, 0], sizes = [2, 5, 29], strides = [1, 1, 1]} : vector<2x7x31xf32> to vector<2x5x29xf32>
    %378 = vector.broadcast %61 : f32 to vector<2x5x29xf32>
    %379 = arith.mulf %377, %378 : vector<2x5x29xf32>
    %380 = arith.addf %376, %379 : vector<2x5x29xf32>
    %381 = vector.extract_strided_slice %352 {offsets = [0, 2, 1], sizes = [2, 5, 29], strides = [1, 1, 1]} : vector<2x7x31xf32> to vector<2x5x29xf32>
    %382 = vector.broadcast %62 : f32 to vector<2x5x29xf32>
    %383 = arith.mulf %381, %382 : vector<2x5x29xf32>
    %384 = arith.addf %380, %383 : vector<2x5x29xf32>
    %385 = vector.extract_strided_slice %352 {offsets = [0, 2, 2], sizes = [2, 5, 29], strides = [1, 1, 1]} : vector<2x7x31xf32> to vector<2x5x29xf32>
    %386 = vector.broadcast %63 : f32 to vector<2x5x29xf32>
    %387 = arith.mulf %385, %386 : vector<2x5x29xf32>
    %388 = arith.addf %384, %387 : vector<2x5x29xf32>
    %389 = vector.broadcast %64 : f32 to vector<2x5x29xf32>
    %390 = arith.addf %388, %389 : vector<2x5x29xf32>
    %cst_68 = arith.constant 0.000000e+00 : f32
    %391 = vector.broadcast %cst_68 : f32 to vector<2x5x29xf32>
    %392 = arith.maximumf %390, %391 : vector<2x5x29xf32>
    %cst_69 = arith.constant dense<0.000000e+00> : vector<5x29xf32>
    %393 = vector.multi_reduction <add>, %392, %cst_69 [0] : vector<2x5x29xf32> to vector<5x29xf32>
    %394 = vector.shape_cast %393 : vector<5x29xf32> to vector<1x5x29xf32>
    %cst_70 = arith.constant dense<0.000000e+00> : vector<1xf32>
    %395 = vector.multi_reduction <add>, %394, %cst_70 [1, 2] : vector<1x5x29xf32> to vector<1xf32>
    %396 = vector.shape_cast %395 : vector<1xf32> to vector<1x1x1xf32>
    %397 = vector.extract %396[0, 0, 0] : f32 from vector<1x1x1xf32>
    %398 = vector.broadcast %397 : f32 to vector<1x1xf32>
    %cst_71 = arith.constant 0.00344827585 : f32
    %399 = vector.broadcast %cst_71 : f32 to vector<1x1xf32>
    %400 = arith.mulf %398, %399 : vector<1x1xf32>
    %401 = vector.shape_cast %400 : vector<1x1xf32> to vector<1x1x1xf32>
    %402 = vector.broadcast %401 : vector<1x1x1xf32> to vector<2x5x29xf32>
    %403 = arith.subf %392, %402 : vector<2x5x29xf32>
    %404 = arith.mulf %403, %403 : vector<2x5x29xf32>
    %cst_72 = arith.constant dense<0.000000e+00> : vector<5x29xf32>
    %405 = vector.multi_reduction <add>, %404, %cst_72 [0] : vector<2x5x29xf32> to vector<5x29xf32>
    %406 = vector.shape_cast %405 : vector<5x29xf32> to vector<1x5x29xf32>
    %cst_73 = arith.constant dense<0.000000e+00> : vector<1xf32>
    %407 = vector.multi_reduction <add>, %406, %cst_73 [1, 2] : vector<1x5x29xf32> to vector<1xf32>
    %408 = vector.shape_cast %407 : vector<1xf32> to vector<1x1x1xf32>
    %409 = vector.extract %408[0, 0, 0] : f32 from vector<1x1x1xf32>
    %410 = vector.broadcast %409 : f32 to vector<1x1xf32>
    %cst_74 = arith.constant 0.00344827585 : f32
    %411 = vector.broadcast %cst_74 : f32 to vector<1x1xf32>
    %412 = arith.mulf %410, %411 : vector<1x1xf32>
    %cst_75 = arith.constant 9.99999974E-6 : f32
    %413 = vector.broadcast %cst_75 : f32 to vector<1x1xf32>
    %414 = arith.addf %412, %413 : vector<1x1xf32>
    %415 = math.rsqrt %414 : vector<1x1xf32>
    %416 = vector.broadcast %65 : f32 to vector<1x1xf32>
    %417 = arith.mulf %415, %416 : vector<1x1xf32>
    %418 = vector.shape_cast %417 : vector<1x1xf32> to vector<1x1x1xf32>
    %419 = vector.broadcast %418 : vector<1x1x1xf32> to vector<2x5x29xf32>
    %420 = arith.mulf %403, %419 : vector<2x5x29xf32>
    %421 = vector.broadcast %66 : f32 to vector<2x5x29xf32>
    %422 = arith.addf %420, %421 : vector<2x5x29xf32>
    %423 = tpu.iota {dimensions = array<i32: 1>} : vector<2x2x4xi32>
    %424 = tpu.iota {dimensions = array<i32: 2>} : vector<2x2x4xi32>
    %c2_i32_76 = arith.constant 2 : i32
    %425 = vector.broadcast %c2_i32_76 : i32 to vector<2x2x4xi32>
    %426 = arith.muli %425, %423 : vector<2x2x4xi32>
    %427 = arith.cmpi eq, %424, %426 : vector<2x2x4xi32>
    %428 = arith.extui %427 : vector<2x2x4xi1> to vector<2x2x4xi32>
    %429 = arith.sitofp %428 : vector<2x2x4xi32> to vector<2x2x4xf32>
    %430 = tpu.iota {dimensions = array<i32: 1>} : vector<2x28x14xi32>
    %431 = tpu.iota {dimensions = array<i32: 2>} : vector<2x28x14xi32>
    %c2_i32_77 = arith.constant 2 : i32
    %432 = vector.broadcast %c2_i32_77 : i32 to vector<2x28x14xi32>
    %433 = arith.muli %432, %431 : vector<2x28x14xi32>
    %434 = arith.cmpi eq, %430, %433 : vector<2x28x14xi32>
    %435 = arith.extui %434 : vector<2x28x14xi1> to vector<2x28x14xi32>
    %436 = arith.sitofp %435 : vector<2x28x14xi32> to vector<2x28x14xf32>
    %437 = vector.extract_strided_slice %422 {offsets = [0, 0, 0], sizes = [2, 4, 29], strides = [1, 1, 1]} : vector<2x5x29xf32> to vector<2x4x29xf32>
    %438 = vector.extract_strided_slice %422 {offsets = [0, 1, 0], sizes = [2, 4, 29], strides = [1, 1, 1]} : vector<2x5x29xf32> to vector<2x4x29xf32>
    %439 = arith.maximumf %437, %438 : vector<2x4x29xf32>
    "tpu.trace_start"() <{level = 10 : i32, message = "boh,bhw->bow"}> : () -> ()
    %cst_78 = arith.constant dense<0.000000e+00> : vector<2x2x29xf32>
    %440 = tpu.matmul %429, %439, %cst_78 {dimension_numbers = #tpu.dot_dimension_numbers<[2], [1], [1], [2], [0, 0, 0, 1, 1, 2], [0], [0]>, precision = #tpu.contract_precision<fp32>} : vector<2x2x4xf32>, vector<2x4x29xf32>, vector<2x2x29xf32> -> vector<2x2x29xf32>
    "tpu.trace_stop"() : () -> ()
    %441 = vector.extract_strided_slice %440 {offsets = [0, 0, 0], sizes = [2, 2, 28], strides = [1, 1, 1]} : vector<2x2x29xf32> to vector<2x2x28xf32>
    %442 = vector.extract_strided_slice %440 {offsets = [0, 0, 1], sizes = [2, 2, 28], strides = [1, 1, 1]} : vector<2x2x29xf32> to vector<2x2x28xf32>
    %443 = arith.maximumf %441, %442 : vector<2x2x28xf32>
    "tpu.trace_start"() <{level = 10 : i32, message = "bhw,bwo->bho"}> : () -> ()
    %cst_79 = arith.constant dense<0.000000e+00> : vector<2x2x14xf32>
    %444 = tpu.matmul %443, %436, %cst_79 {dimension_numbers = #tpu.dot_dimension_numbers<[2], [1], [1], [2], [0, 0, 0, 1, 1, 2], [0], [0]>, precision = #tpu.contract_precision<fp32>} : vector<2x2x28xf32>, vector<2x28x14xf32>, vector<2x2x14xf32> -> vector<2x2x14xf32>
    "tpu.trace_stop"() : () -> ()
    %c0_80 = arith.constant 0 : index
    %c0_81 = arith.constant 0 : index
    %c0_82 = arith.constant 0 : index
    %445 = vector.load %arg12[%c0_80, %c0_81, %c0_82] : memref<2x2x14xf32, #tpu.memory_space<vmem>>, vector<2x2x14xf32>
    tpu.vector_store %arg12[%c0_80, %c0_81, %c0_82], %444 {strides = array<i32>} : memref<2x2x14xf32, #tpu.memory_space<vmem>>, vector<2x2x14xf32>,
    %c0_83 = arith.constant 0 : index
    %c0_84 = arith.constant 0 : index
    %c0_85 = arith.constant 0 : index
    %446 = vector.load %arg12[%c0_83, %c0_84, %c0_85] : memref<2x2x14xf32, #tpu.memory_space<vmem>>, vector<2x1x14xf32>
    %447 = vector.shape_cast %446 : vector<2x1x14xf32> to vector<2x14xf32>
    %c0_86 = arith.constant 0 : index
    %c1_87 = arith.constant 1 : index
    %c0_88 = arith.constant 0 : index
    %448 = vector.load %arg12[%c0_86, %c1_87, %c0_88] : memref<2x2x14xf32, #tpu.memory_space<vmem>>, vector<2x1x14xf32>
    %449 = vector.shape_cast %448 : vector<2x1x14xf32> to vector<2x14xf32>
    %450 = tpu.concatenate %447, %449 in 1 : vector<2x14xf32>, vector<2x14xf32> -> vector<2x28xf32>
    %c0_89 = arith.constant 0 : index
    %c0_90 = arith.constant 0 : index
    %451 = vector.load %arg9[%c0_89, %c0_90] : memref<28x32xf32, #tpu.memory_space<vmem>>, vector<28x32xf32>
    %cst_91 = arith.constant dense<0.000000e+00> : vector<2x32xf32>
    %452 = tpu.matmul %450, %451, %cst_91 {dimension_numbers = #tpu.dot_dimension_numbers<[1], [0], [0], [1], [0, 0, 1, 1], [], []>, precision = #tpu.contract_precision<fp32>} : vector<2x28xf32>, vector<28x32xf32>, vector<2x32xf32> -> vector<2x32xf32>
    %c0_92 = arith.constant 0 : index
    %c0_93 = arith.constant 0 : index
    %453 = vector.load %arg10[%c0_92, %c0_93] : memref<1x32xf32, #tpu.memory_space<vmem>>, vector<1x32xf32>
    %454 = vector.broadcast %453 : vector<1x32xf32> to vector<2x32xf32>
    %455 = arith.addf %452, %454 : vector<2x32xf32>
    %c0_94 = arith.constant 0 : index
    %c0_95 = arith.constant 0 : index
    %456 = vector.load %arg11[%c0_94, %c0_95] : memref<2x32xf32, #tpu.memory_space<vmem>>, vector<2x32xf32>
    tpu.vector_store %arg11[%c0_94, %c0_95], %455 {strides = array<i32>} : memref<2x32xf32, #tpu.memory_space<vmem>>, vector<2x32xf32>,
    return
  }
}

</mosaic_0001>

<bundles_post_ra>
// kernel: tpu_custom_call.1
= control target key start
LH: loop header
LB: loop body
LE: loop exit
PB: predicated region body
PF: predicated region fallthrough
CT: control target
= control target key end

     0   :  { %19 = vsyncpa [#allocation7], 0  ;;  %s14870_s0 = inlined_call_operand.hbm [shape: f32[2,16,64], index: 0, kind: input, shape index: {}]   ;;  %s14871_s1 = inlined_call_operand.vmem [shape: f32[27], index: 1, kind: input, shape index: {}]   ;;  %s14872_s2 = inlined_call_operand.vmem [shape: f32[3], index: 2, kind: input, shape index: {}]   ;;  %s14873_s3 = inlined_call_operand.vmem [shape: f32[3], index: 3, kind: input, shape index: {}]   ;;  %s14874_s4 = inlined_call_operand.vmem [shape: f32[3], index: 4, kind: input, shape index: {}]   ;;  %s14875_s5 = inlined_call_operand.vmem [shape: f32[27], index: 5, kind: input, shape index: {}]   ;;  %s14876_s6 = inlined_call_operand.<no memory space> [shape: f32[1], index: 6, kind: input, shape index: {}]   ;;  %s14877_s7 = inlined_call_operand.<no memory space> [shape: f32[1], index: 7, kind: input, shape index: {}]   ;;  %s14878_s8 = inlined_call_operand.<no memory space> [shape: f32[1], index: 8, kind: input, shape index: {}]   ;;  %s14879_s9 = inlined_call_operand.hbm [shape: f32[28,32], index: 9, kind: input, shape index: {}]   ;;  %s14880_s10 = inlined_call_operand.vmem [shape: f32[1,32], index: 10, kind: input, shape index: {}]   ;;  %s14881_s11 = inlined_call_operand.hbm [shape: f32[2,32], index: 11, kind: output, shape index: {}]  }
   0x1   :  { %20 = vsyncpa [#allocation9], 0 }
   0x2   :  { %21 = vsyncpa [#allocation12], 0 }
   0x3   :  { %22 = vsyncpa [#allocation15], 0 }
   0x4   :  { %23 = vsyncpa [#allocation18], 0  ;;  %s53_s19 = sshll.u32 %s14872_s2, 4  ;;  %s54_s19 = int_to_ptr.vmem [resolvable:$true] %s53_s19 }
   0x5   :  { %24 = vsyncpa [#allocation8], 0  ;;  %s73_s22 = sshll.u32 %s14874_s4, 4  ;;  %s12108_s23 = scalar_lea.vmem %s54_s19, 16  ;;  %s74_s22 = int_to_ptr.vmem [resolvable:$true] %s73_s22 }
   0x6   :  { %p12109_p0 = scmp.ne.s32.totalorder %s54_s19, %s12108_s23  ;;  %p12113_p1 = scmp.lt.s32.totalorder %s54_s19, %s54_s19 }
   0x7   :  { %p12114_p2 = scmp.lt.s32.totalorder %s12108_s23, %s12108_s23 }
   0x9   :  { %p12115_p3 = por %p12114_p2, %p12113_p1 }
   0xb   :  { %p12116_p4 = pnand %p12115_p3, %p12109_p0 }
   0xd   :  { %12119 = shalt.err (!%p12116_p4)
}
   0xe   :  { %s12240_s24 = smov [#allocation11]   ;;  %s12120_s25 = scalar_lea.vmem %s74_s22, 16 }
   0xf   :  { %56 = dma.vmem_to_smem %s54_s19, 16, %s12240_s24, [#allocation12]  }
  0x10   :  { %p12121_p5 = scmp.ne.s32.totalorder %s74_s22, %s12120_s25  ;;  %p12125_p6 = scmp.lt.s32.totalorder %s74_s22, %s74_s22 }
  0x11   :  { %p12126_p7 = scmp.lt.s32.totalorder %s12120_s25, %s12120_s25 }
  0x13   :  { %p12127_p8 = por %p12126_p7, %p12125_p6 }
  0x15   :  { %p12128_p9 = pnand %p12127_p8, %p12121_p5 }
  0x17   :  { %12131 = shalt.err (!%p12128_p9)
}
  0x18   :  { %s12241_s2 = smov [#allocation14]   ;;  %s12242_s4 = smov [#allocation6]  }
  0x19   :  { %76 = dma.vmem_to_smem %s74_s22, 16, %s12241_s2, [#allocation15]  }
  0x1a   :  { %s30_s26 = sshll.u32 %s12242_s4, 4  ;;  %s43_s29 = sshll.u32 %s14871_s1, 4  ;;  %s31_s26 = int_to_ptr.vmem [resolvable:$true] %s30_s26  ;;  %s44_s29 = int_to_ptr.vmem [resolvable:$true] %s43_s29 }
  0x1b   :  { %s12140_s30 = scalar_lea.vmem %s31_s26, 512  ;;  %p12145_p11 = scmp.lt.s32.totalorder %s31_s26, %s31_s26 }
  0x1c   :  { %p12141_p10 = scmp.ne.s32.totalorder %s31_s26, %s12140_s30  ;;  %p12146_p12 = scmp.lt.s32.totalorder %s12140_s30, %s12140_s30 }
  0x1e   :  { %p12147_p13 = por %p12146_p12, %p12145_p11 }
  0x20   :  { %p12148_p0 = pnand %p12147_p13, %p12141_p10 }
  0x22   :  { %12151 = shalt.err (!%p12148_p0)
}
  0x23   :  { %s12243_s12 = smov 128   ;;  %s12244_s13 = smov 8  }
  0x24   :  { %36 = dma.hbm_to_vmem [thread:$0]  %s14870_s0, 512, %s31_s26, [#allocation7], %s12243_s12, %s12243_s12, %s12244_s13  }
  0x25   :  { %s12152_s16 = scalar_lea.vmem %s44_s29, 16  ;;  %p12157_p2 = scmp.lt.s32.totalorder %s44_s29, %s44_s29 }
  0x26   :  { %p12153_p1 = scmp.ne.s32.totalorder %s44_s29, %s12152_s16  ;;  %p12158_p3 = scmp.lt.s32.totalorder %s12152_s16, %s12152_s16 }
  0x28   :  { %p12159_p4 = por %p12158_p3, %p12157_p2 }
  0x2a   :  { %p12160_p5 = pnand %p12159_p4, %p12153_p1 }
  0x2c   :  { %12163 = shalt.err (!%p12160_p5)
}
  0x2d   :  { %s12245_s1 = smov [#allocation10]   ;;  %s63_s19 = sshll.u32 %s14873_s3, 4  ;;  %s64_s19 = int_to_ptr.vmem [resolvable:$true] %s63_s19 }
  0x2e   :  { %46 = dma.vmem_to_smem %s44_s29, 16, %s12245_s1, [#allocation9]  }
  0x2f   :  { %s83_s22 = sshll.u32 %s14875_s5, 4  ;;  %s12164_s0 = scalar_lea.vmem %s64_s19, 16  ;;  %s84_s22 = int_to_ptr.vmem [resolvable:$true] %s83_s22 }
  0x30   :  { %p12165_p6 = scmp.ne.s32.totalorder %s64_s19, %s12164_s0  ;;  %p12169_p7 = scmp.lt.s32.totalorder %s64_s19, %s64_s19 }
  0x31   :  { %p12170_p8 = scmp.lt.s32.totalorder %s12164_s0, %s12164_s0 }
  0x33   :  { %p12171_p9 = por %p12170_p8, %p12169_p7 }
  0x35   :  { %p12172_p10 = pnand %p12171_p9, %p12165_p6 }
  0x37   :  { %12175 = shalt.err (!%p12172_p10)
}
  0x38   :  { %s12246_s23 = smov [#allocation13]   ;;  %s12176_s24 = scalar_lea.vmem %s84_s22, 16 }
  0x39   :  { %66 = dma.vmem_to_smem %s64_s19, 16, %s12246_s23, [#allocation12]  }
  0x3a   :  { %p12177_p11 = scmp.ne.s32.totalorder %s84_s22, %s12176_s24  ;;  %p12181_p12 = scmp.lt.s32.totalorder %s84_s22, %s84_s22 }
  0x3b   :  { %p12182_p13 = scmp.lt.s32.totalorder %s12176_s24, %s12176_s24 }
  0x3d   :  { %p12183_p0 = por %p12182_p13, %p12181_p12 }
  0x3f   :  { %p12184_p1 = pnand %p12183_p0, %p12177_p11 }
  0x41   :  { %12187 = shalt.err (!%p12184_p1)
}
  0x42   :  { %s12247_s3 = smov [#allocation16]   ;;  %s12248_s5 = smov [#allocation17]  }
  0x43   :  { %86 = dma.vmem_to_smem %s84_s22, 16, %s12247_s3, [#allocation15]  }
  0x44   :  { %s98_s25 = sshll.u32 %s12248_s5, 4  ;;  %s99_s25 = int_to_ptr.vmem [resolvable:$true] %s98_s25 }
  0x45   :  { %s12196_s2 = scalar_lea.vmem %s99_s25, 512  ;;  %p12201_p3 = scmp.lt.s32.totalorder %s99_s25, %s99_s25 }
  0x46   :  { %p12197_p2 = scmp.ne.s32.totalorder %s99_s25, %s12196_s2  ;;  %p12202_p4 = scmp.lt.s32.totalorder %s12196_s2, %s12196_s2 }
  0x48   :  { %p12203_p5 = por %p12202_p4, %p12201_p3 }
  0x4a   :  { %p12204_p6 = pnand %p12203_p5, %p12197_p2 }
  0x4c   :  { %12207 = shalt.err (!%p12204_p6)
}
  0x4d   :  { %104 = dma.hbm_to_vmem [thread:$0]  %s14879_s9, 512, %s99_s25, [#allocation18], %s12243_s12, %s12243_s12, %s12244_s13  }
  0x4e   :  { %12228 = dma.done.wait [#allocation7], 512  }
  0x4f   :  { %12229 = vsyncadd [#allocation7], 4294966784 }
  0x50   :  { %12230 = dma.done.wait [#allocation9], 16  }
  0x51   :  { %12231 = vsyncadd [#allocation9], 4294967280 }
  0x52   :  { %12232 = dma.done.wait [#allocation12], 32  }
  0x53   :  { %12233 = vsyncadd [#allocation12], 4294967264 }
  0x54   :  { %12234 = dma.done.wait [#allocation15], 32  }
  0x55   :  { %12235 = vsyncadd [#allocation15], 4294967264 }
  0x56   :  { %12236 = dma.done.wait [#allocation18], 512  }
  0x57   :  { %12237 = vsyncadd [#allocation18], 4294966784 }
  0x58   :  { %128 = sfence }
  0x59   :  { %s10064_s27 = sld [smem:[#allocation10 + $0x1]]  ;;  %v12343_v0 = vld [vmem:[#allocation6 + $0x10] sm:$0xff]  ;;  %v12345_v1 = vld [vmem:[#allocation6] sm:$0xff]  ;;  %v12347_v3 = vld [vmem:[#allocation6 + $0x18] sm:$0xff]  ;;  %s12249_s9 = smov 127   ;;  %vm263_vm0 = vcmask 1046528  }
  0x5a   :  { %s10065_s28 = sld [smem:[#allocation10 + $0x2]]  ;;  %v12349_v4 = vld [vmem:[#allocation6 + $0x8] sm:$0xff]  ;;  %s12250_s12 = smov 126   ;;  %vm349_vm1 = vcmask 1045504   ;;  %vm435_vm2 = vcmask 506880   ;;  %vm439_vm3 = vcmask 504832  }
  0x5b   :  { %s10067_s29 = sld [smem:[#allocation10 + $0x4]]  ;;  %vm12252_vm4 = vmmov 0   ;;  %vm1182_vm6 = vcmask 105472   ;;  %vm1186_vm7 = vcmask 1044480   ;;  %vm3989_vm11 = vcmask 498688  }
  0x5c   :  { %s10068_s30 = sld [smem:[#allocation10 + $0x5]] }
  0x5d   :  { %s10070_s13 = sld [smem:[#allocation10 + $0x7]] }
  0x5e   :  { %s10071_s14 = sld [smem:[#allocation10 + $0x8]] }
  0x5f   :  { %v204_v2 = vstv %s10064_s27  ;;  %s10076_s15 = sld [smem:[#allocation10 + $0xd]] }
  0x60   :  { %v207_v5 = vmul.f32 %v204_v2, %v12343_v0  ;;  %v205_v6 = vmul.f32 %v204_v2, %v12345_v1  ;;  %v208_v7 = vmul.f32 %v204_v2, %v12347_v3  ;;  %v206_v8 = vmul.f32 %v204_v2, %v12349_v4  ;;  %s10073_s16 = sld [smem:[#allocation10 + $0xa]] }
  0x61   :  { %v229_v9 = vstv %s10065_s28  ;;  %v278_v10 = vstv %s10067_s29  ;;  %s10074_s1 = sld [smem:[#allocation10 + $0xb]] }
  0x62   :  { %217 = vrot.lane.b32.xlu1 %v207_v5, %s12249_s9  ;;  %213 = vrot.lane.b32.xlu0 %v205_v6, %s12249_s9  ;;  %v231_v11 = vmul.f32 %v229_v9, %v12349_v4  ;;  %v230_v12 = vmul.f32 %v229_v9, %v12345_v1  ;;  %v280_v13 = vmul.f32 %v278_v10, %v12349_v4  ;;  %v309_v17 = vstv %s10068_s30  ;;  %s10077_s17 = sld [smem:[#allocation10 + $0xe]] }
  0x63   :  { %v279_v14 = vmul.f32 %v278_v10, %v12345_v1  ;;  %v233_v15 = vmul.f32 %v229_v9, %v12347_v3  ;;  %v232_v16 = vmul.f32 %v229_v9, %v12343_v0  ;;  %v282_v20 = vmul.f32 %v278_v10, %v12347_v3  ;;  %s10079_s18 = sld [smem:[#allocation10 + $0x10]] }
  0x64   :  { %v288_v18 = vrot.slane %v280_v13, 1  ;;  %v281_v21 = vmul.f32 %v278_v10, %v12343_v0  ;;  %v311_v22 = vmul.f32 %v309_v17, %v12349_v4  ;;  %v310_v26 = vmul.f32 %v309_v17, %v12345_v1  ;;  %s10080_s19 = sld [smem:[#allocation10 + $0x11]] }
  0x65   :  { %v287_v19 = vrot.slane %v279_v14, 1  ;;  %v291_v24 = vrot.slane %v282_v20, 1  ;;  %v313_v27 = vmul.f32 %v309_v17, %v12347_v3  ;;  %v312_v28 = vmul.f32 %v309_v17, %v12343_v0  ;;  %s10066_s20 = sld [smem:[#allocation10 + $0x3]] }
  0x66   :  { %219 = vrot.lane.b32.xlu1 %v208_v7, %s12249_s9  ;;  %215 = vrot.lane.b32.xlu0 %v206_v8, %s12249_s9  ;;  %v290_v25 = vrot.slane %v281_v21, 1  ;;  %v319_v30 = vrot.slane %v311_v22, 1  ;;  %v318_v31 = vrot.slane %v310_v26, 1  ;;  %v364_v32 = vstv %s10070_s13  ;;  %s133_s21 = sld [smem:[#allocation10]] }
  0x67   :  { %v289_v23 = vsel %vm263_vm0, %v287_v19, %v288_v18  ;;  %v322_v33 = vrot.slane %v313_v27, 1  ;;  %v321_v34 = vrot.slane %v312_v28, 1  ;;  %v366_v36 = vmul.f32 %v364_v32, %v12349_v4  ;;  %s10069_s22 = sld [smem:[#allocation10 + $0x6]] }
  0x68   :  { %v292_v29 = vsel %vm263_vm0, %v290_v25, %v291_v24  ;;  %v320_v35 = vsel %vm263_vm0, %v318_v31, %v319_v30  ;;  %v365_v37 = vmul.f32 %v364_v32, %v12345_v1  ;;  %v395_v39 = vstv %s10071_s14  ;;  %s160_s0 = sld [smem:[#allocation11]] }
  0x69   :  { %v323_v38 = vsel %vm263_vm0, %v321_v34, %v322_v33  ;;  %v374_v40 = vrot.slane %v366_v36, 2  ;;  %v368_v42 = vmul.f32 %v364_v32, %v12347_v3  ;;  %v367_v43 = vmul.f32 %v364_v32, %v12343_v0  ;;  %s10082_s23 = sld [smem:[#allocation10 + $0x13]] }
  0x6a   :  { %240 = vrot.lane.b32.xlu1 %v231_v11, %s12250_s12  ;;  %238 = vrot.lane.b32.xlu0 %v230_v12, %s12250_s12  ;;  %v373_v41 = vrot.slane %v365_v37, 2  ;;  %v397_v44 = vmul.f32 %v395_v39, %v12349_v4  ;;  %v396_v48 = vmul.f32 %v395_v39, %v12345_v1  ;;  %v399_v49 = vmul.f32 %v395_v39, %v12347_v3  ;;  %s10072_s24 = sld [smem:[#allocation10 + $0x9]] }
  0x6b   :  { %v377_v46 = vrot.slane %v368_v42, 2  ;;  %v376_v47 = vrot.slane %v367_v43, 2  ;;  %v398_v53 = vmul.f32 %v395_v39, %v12343_v0  ;;  %v576_v57 = vstv %s10076_s15  ;;  %s10075_s3 = sld [smem:[#allocation10 + $0xc]] }
  0x6c   :  { %v375_v45 = vsel %vm349_vm1, %v373_v41, %v374_v40  ;;  %v405_v51 = vrot.slane %v397_v44, 2  ;;  %v404_v52 = vrot.slane %v396_v48, 2  ;;  %v408_v55 = vrot.slane %v399_v49, 2  ;;  %s10078_s5 = sld [smem:[#allocation10 + $0xf]] }
  0x6d   :  { %v378_v50 = vsel %vm349_vm1, %v376_v47, %v377_v46  ;;  %v407_v56 = vrot.slane %v398_v53, 2  ;;  %v503_v59 = vstv %s10073_s16  ;;  %v578_v60 = vmul.f32 %v576_v57, %v12349_v4  ;;  %s10090_s25 = sld [smem:[#allocation11 + $0x1]] }
  0x6e   :  { %244 = vrot.lane.b32.xlu1 %v233_v15, %s12250_s12  ;;  %242 = vrot.lane.b32.xlu0 %v232_v16, %s12250_s12  ;;  %v406_v54 = vsel %vm349_vm1, %v404_v52, %v405_v51  ;;  %v577_v61 = vmul.f32 %v576_v57, %v12345_v1  ;;  %v504_v62 = vmul.f32 %v503_v59, %v12345_v1  ;;  %v528_v9 = vstv %s10074_s1  ;;  %s10083_s2 = sld [smem:[#allocation10 + $0x14]] }
  0x6f   :  { %v409_v58 = vsel %vm349_vm1, %v407_v56, %v408_v55  ;;  %v586_v63 = vrot.slane %v578_v60, 1  ;;  %v505_v6 = vmul.f32 %v503_v59, %v12349_v4  ;;  %v506_v7 = vmul.f32 %v503_v59, %v12343_v0  ;;  %s10085_s4 = sld [smem:[#allocation10 + $0x16]] }
  0x70   :  { %v585_v2 = vrot.slane %v577_v61, 1  ;;  %v507_v8 = vmul.f32 %v503_v59, %v12347_v3  ;;  %v529_v10 = vmul.f32 %v528_v9, %v12345_v1  ;;  %v530_v11 = vmul.f32 %v528_v9, %v12349_v4  ;;  %s10086_s27 = sld [smem:[#allocation10 + $0x17]] }
  0x71   :  { %v531_v12 = vmul.f32 %v528_v9, %v12343_v0  ;;  %v532_v13 = vmul.f32 %v528_v9, %v12347_v3  ;;  %v579_v14 = vmul.f32 %v576_v57, %v12343_v0  ;;  %v580_v15 = vmul.f32 %v576_v57, %v12347_v3  ;;  %s10088_s28 = sld [smem:[#allocation10 + $0x19]] }
  0x72   :  { %295 = vrot.lane.b32.xlu1 %v288_v18, %s12249_s9  ;;  %293 = vrot.lane.b32.xlu0 %v289_v23, %s12249_s9  ;;  %v12411_v5 = vsel %vm263_vm0, %v585_v2, %v586_v63  ;;  %v607_v18 = vstv %s10077_s17  ;;  %v661_v27 = vstv %s10079_s18  ;;  %s10089_s29 = sld [smem:[#allocation10 + $0x1a]] }
  0x73   :  { %v588_v16 = vrot.slane %v579_v14, 1  ;;  %v589_v17 = vrot.slane %v580_v15, 1  ;;  %v608_v20 = vmul.f32 %v607_v18, %v12345_v1  ;;  %v609_v21 = vmul.f32 %v607_v18, %v12349_v4  ;;  %s10081_s30 = sld [smem:[#allocation10 + $0x12]] }
  0x74   :  { %v610_v25 = vmul.f32 %v607_v18, %v12343_v0  ;;  %v12439_v26 = vmul.f32 %v607_v18, %v12347_v3  ;;  %v12445_v31 = vmul.f32 %v661_v27, %v12349_v4  ;;  %v664_v32 = vmul.f32 %v661_v27, %v12343_v0  ;;  %s10084_s13 = sld [smem:[#allocation10 + $0x15]] }
  0x75   :  { %v590_v19 = vsel %vm263_vm0, %v588_v16, %v589_v17  ;;  %v616_v22 = vrot.slane %v608_v20, 1  ;;  %v617_v23 = vrot.slane %v609_v21, 1  ;;  %v692_v37 = vstv %s10080_s19  ;;  %s10087_s14 = sld [smem:[#allocation10 + $0x18]] }
  0x76   :  { %299 = vrot.lane.b32.xlu1 %v291_v24, %s12249_s9  ;;  %297 = vrot.lane.b32.xlu0 %v292_v29, %s12249_s9  ;;  %v619_v28 = vrot.slane %v610_v25, 1  ;;  %v620_v29 = vrot.slane %v12439_v26, 1  ;;  %v671_v36 = vrot.slane %v12445_v31, 2  ;;  %v693_v41 = vmul.f32 %v692_v37, %v12345_v1  ;;  %s10091_s15 = sld [smem:[#allocation11 + $0x2]] }
  0x77   :  { %v618_v24 = vsel %vm263_vm0, %v616_v22, %v617_v23  ;;  %v12463_v42 = vmul.f32 %v692_v37, %v12349_v4  ;;  %v12472_v47 = vmul.f32 %v692_v37, %v12347_v3  ;;  %v254_v60 = vstv %s10066_s20  ;;  %s163_s17 = sld [smem:[#allocation13]] }
  0x78   :  { %v621_v34 = vsel %vm263_vm0, %v619_v28, %v620_v29  ;;  %v701_v44 = vrot.slane %v693_v41, 2  ;;  %v199_v61 = vstv %s133_s21  ;;  %v256_v2 = vmul.f32 %v254_v60, %v12349_v4  ;;  %s166_s18 = sld [smem:[#allocation14]] }
  0x79   :  { %v257_v15 = vmul.f32 %v254_v60, %v12343_v0  ;;  %s10092_s21 = sld [smem:[#allocation13 + $0x1]] }
  0x7a   :  { %326 = vrot.lane.b32.xlu1 %v319_v30, %s12250_s12  ;;  %324 = vrot.lane.b32.xlu0 %v320_v35, %s12250_s12  ;;  %v662_v30 = vmul.f32 %v661_v27, %v12345_v1 }
  0x7c   :  { %v670_v35 = vrot.slane %v662_v30, 2 }
  0x7e   :  { %330 = vrot.lane.b32.xlu1 %v322_v33, %s12250_s12  ;;  %328 = vrot.lane.b32.xlu0 %v323_v38, %s12250_s12  ;;  %v12450_v33 = vmul.f32 %v661_v27, %v12347_v3  ;;  %v673_v38 = vrot.slane %v664_v32, 2  ;;  %v267_v27 = vrot.slane %v257_v15, 1 }
  0x80   :  { %v674_v39 = vrot.slane %v12450_v33, 2 }
  0x82   :  { %381 = vrot.lane.b32.xlu1 %v374_v40, %s12249_s9  ;;  %379 = vrot.lane.b32.xlu0 %v375_v45, %s12249_s9  ;;  %v672_v40 = vsel %vm349_vm1, %v670_v35, %v671_v36  ;;  %v675_v43 = vsel %vm349_vm1, %v673_v38, %v674_v39  ;;  %v702_v45 = vrot.slane %v12463_v42, 2 }
  0x84   :  { %v703_v48 = vsel %vm349_vm1, %v701_v44, %v702_v45 }
  0x86   :  { %385 = vrot.lane.b32.xlu1 %v377_v46, %s12249_s9  ;;  %383 = vrot.lane.b32.xlu0 %v378_v50, %s12249_s9  ;;  %v695_v46 = vmul.f32 %v692_v37, %v12343_v0  ;;  %v705_v50 = vrot.slane %v12472_v47, 2 }
  0x88   :  { %v704_v49 = vrot.slane %v695_v46, 2 }
  0x8a   :  { %412 = vrot.lane.b32.xlu1 %v405_v51, %s12250_s12  ;;  %410 = vrot.lane.b32.xlu0 %v406_v54, %s12250_s12  ;;  %v706_v51 = vsel %vm349_vm1, %v704_v49, %v705_v50 }
  0x8e   :  { %416 = vrot.lane.b32.xlu1 %v408_v55, %s12250_s12  ;;  %414 = vrot.lane.b32.xlu0 %v409_v58, %s12250_s12 }
  0x92   :  { %512 = vrot.lane.b32.xlu1 %v504_v62, %s12249_s9 }
  0x96   :  { %514 = vrot.lane.b32.xlu1 %v505_v6, %s12249_s9  ;;  %v255_v6 = vmul.f32 %v254_v60, %v12345_v1 }
  0x98   :  { %v264_v14 = vrot.slane %v255_v6, 1 }
  0x9a   :  { %516 = vrot.lane.b32.xlu1 %v506_v7, %s12249_s9  ;;  %v200_v7 = vmul.f32 %v199_v61, %v12345_v1 }
  0x9e   :  { %518 = vrot.lane.b32.xlu1 %v507_v8, %s12249_s9  ;;  %v201_v8 = vmul.f32 %v199_v61, %v12349_v4 }
  0xa2   :  { %537 = vrot.lane.b32.xlu1 %v529_v10, %s12250_s12 }
  0xa6   :  { %539 = vrot.lane.b32.xlu1 %v530_v11, %s12250_s12  ;;  %v258_v11 = vmul.f32 %v254_v60, %v12347_v3 }
  0xaa   :  { %541 = vrot.lane.b32.xlu1 %v531_v12, %s12250_s12  ;;  %v202_v12 = vmul.f32 %v199_v61, %v12343_v0 }
  0xae   :  { %543 = vrot.lane.b32.xlu1 %v532_v13, %s12250_s12  ;;  %v265_v13 = vrot.slane %v256_v2, 1 }
  0xb0   :  { %v266_v25 = vsel %vm263_vm0, %v264_v14, %v265_v13 }
  0xb2   :  { %593 = vrot.lane.b32.xlu1 %v586_v63, %s12249_s9 }
  0xb6   :  { %595 = vrot.lane.b32.xlu1 %v590_v19, %s12249_s9  ;;  %v340_v19 = vstv %s10069_s22  ;;  %s10094_s22 = sld [smem:[#allocation14 + $0x1]] }
  0xb7   :  { %v342_v28 = vmul.f32 %v340_v19, %v12349_v4  ;;  %v341_v30 = vmul.f32 %v340_v19, %v12345_v1  ;;  %v344_v38 = vmul.f32 %v340_v19, %v12347_v3 }
  0xb9   :  { %v350_v49 = vrot.slane %v341_v30, 2 }
  0xba   :  { %597 = vrot.lane.b32.xlu1 %v589_v17, %s12249_s9  ;;  %v203_v17 = vmul.f32 %v199_v61, %v12347_v3 }
  0xbe   :  { %622 = vrot.lane.b32.xlu1 %v618_v24, %s12250_s12  ;;  %v268_v24 = vrot.slane %v258_v11, 1 }
  0xc0   :  { %v269_v46 = vsel %vm263_vm0, %v267_v27, %v268_v24 }
  0xc2   :  { %624 = vrot.lane.b32.xlu1 %v617_v23, %s12250_s12 }
  0xc6   :  { %626 = vrot.lane.b32.xlu1 %v621_v34, %s12250_s12 }
  0xca   :  { %676 = vrot.lane.b32.xlu1 %v672_v40, %s12249_s9 }
  0xce   :  { %680 = vrot.lane.b32.xlu1 %v675_v43, %s12249_s9 }
  0xd2   :  { %707 = vrot.lane.b32.xlu1 %v703_v48, %s12250_s12  ;;  %v351_v48 = vrot.slane %v342_v28, 2 }
  0xd4   :  { %v218_v52 = vpop.permute.xlu1 %217  ;;  %v214_v53 = vpop.permute.xlu0 %213 }
  0xd5   :  { %v225_v16 = vadd.f32 %v214_v53, %v200_v7  ;;  %v227_v32 = vadd.f32 %v218_v52, %v202_v12 }
  0xd6   :  { %711 = vrot.lane.b32.xlu1 %v706_v51, %s12250_s12  ;;  %v343_v51 = vmul.f32 %v340_v19, %v12343_v0 }
  0xd8   :  { %v220_v54 = vpop.permute.xlu1 %219  ;;  %v216_v55 = vpop.permute.xlu0 %215  ;;  %v353_v2 = vrot.slane %v343_v51, 2 }
  0xd9   :  { %v226_v18 = vadd.f32 %v216_v55, %v201_v8  ;;  %v228_v34 = vadd.f32 %v220_v54, %v203_v17  ;;  %v426_v17 = vstv %s160_s0 }
  0xdc   :  { %v241_v56 = vpop.permute.xlu1 %240  ;;  %v239_v57 = vpop.permute.xlu0 %238 }
  0xdd   :  { %v251_v22 = vadd.f32 %v241_v56, %v226_v18  ;;  %v250_v23 = vadd.f32 %v239_v57, %v225_v16 }
  0xdf   :  { %v275_v43 = vadd.f32 %v265_v13, %v251_v22  ;;  %v274_v44 = vadd.f32 %v266_v25, %v250_v23 }
  0xe0   :  { %v245_v58 = vpop.permute.xlu1 %244  ;;  %v243_v59 = vpop.permute.xlu0 %242 }
  0xe1   :  { %v253_v40 = vadd.f32 %v245_v58, %v228_v34  ;;  %v252_v41 = vadd.f32 %v243_v59, %v227_v32  ;;  %v352_v58 = vsel %vm349_vm1, %v350_v49, %v351_v48  ;;  %v354_v59 = vrot.slane %v344_v38, 2 }
  0xe3   :  { %v277_v52 = vadd.f32 %v268_v24, %v253_v40  ;;  %v276_v54 = vadd.f32 %v269_v46, %v252_v41 }
  0xe4   :  { %v296_v62 = vpop.permute.xlu1 %295  ;;  %v294_v63 = vpop.permute.xlu0 %293 }
  0xe5   :  { %v306_v53 = vadd.f32 %v296_v62, %v275_v43  ;;  %v305_v55 = vadd.f32 %v294_v63, %v274_v44  ;;  %v355_v63 = vsel %vm349_vm1, %v353_v2, %v354_v59 }
  0xe8   :  { %v300_v9 = vpop.permute.xlu1 %299  ;;  %v298_v10 = vpop.permute.xlu0 %297 }
  0xe9   :  { %v308_v6 = vadd.f32 %v300_v9, %v277_v52  ;;  %v307_v7 = vadd.f32 %v298_v10, %v276_v54 }
  0xec   :  { %v327_v20 = vpop.permute.xlu1 %326  ;;  %v325_v21 = vpop.permute.xlu0 %324 }
  0xed   :  { %v337_v60 = vadd.f32 %v327_v20, %v306_v53  ;;  %v336_v61 = vadd.f32 %v325_v21, %v305_v55 }
  0xef   :  { %v361_v14 = vadd.f32 %v351_v48, %v337_v60  ;;  %v360_v62 = vadd.f32 %v352_v58, %v336_v61 }
  0xf0   :  { %v331_v35 = vpop.permute.xlu1 %330  ;;  %v329_v37 = vpop.permute.xlu0 %328 }
  0xf1   :  { %v339_v12 = vadd.f32 %v331_v35, %v308_v6  ;;  %v338_v13 = vadd.f32 %v329_v37, %v307_v7 }
  0xf3   :  { %v363_v20 = vadd.f32 %v354_v59, %v339_v12  ;;  %v362_v21 = vadd.f32 %v355_v63, %v338_v13  ;;  %v553_v59 = vstv %s10075_s3  ;;  %s14010_s3 = sld [smem:[#allocation16 + $0x1]] }
  0xf4   :  { %v382_v56 = vpop.permute.xlu1 %381  ;;  %v380_v57 = vpop.permute.xlu0 %379  ;;  %v556_v2 = vmul.f32 %v553_v59, %v12343_v0  ;;  %v557_v6 = vmul.f32 %v553_v59, %v12347_v3  ;;  %v555_v63 = vmul.f32 %v553_v59, %v12349_v4 }
  0xf5   :  { %v392_v15 = vadd.f32 %v382_v56, %v361_v14  ;;  %v391_v16 = vadd.f32 %v380_v57, %v360_v62 }
  0xf8   :  { %v386_v8 = vpop.permute.xlu1 %385  ;;  %v384_v11 = vpop.permute.xlu0 %383 }
  0xf9   :  { %v394_v24 = vadd.f32 %v386_v8, %v363_v20  ;;  %v393_v9 = vadd.f32 %v384_v11, %v362_v21  ;;  %v565_v8 = vrot.slane %v556_v2, 1  ;;  %v566_v11 = vrot.slane %v557_v6, 1 }
  0xfc   :  { %v413_v18 = vpop.permute.xlu1 %412  ;;  %v411_v19 = vpop.permute.xlu0 %410 }
  0xfd   :  { %v423_v22 = vadd.f32 %v413_v18, %v392_v15  ;;  %v422_v23 = vadd.f32 %v411_v19, %v391_v16  ;;  %v567_v15 = vsel %vm263_vm0, %v565_v8, %v566_v11  ;;  %v554_v16 = vmul.f32 %v553_v59, %v12345_v1 }
  0xff   :  { %v12500_v10 = vadd.f32 %v426_v17, %v423_v22  ;;  %v12502_v25 = vadd.f32 %v426_v17, %v422_v23  ;;  %v563_v23 = vrot.slane %v555_v63, 1 }
 0x100   :  { %v417_v27 = vpop.permute.xlu1 %416  ;;  %v415_v28 = vpop.permute.xlu0 %414 }
 0x101   :  { %v425_v30 = vadd.f32 %v417_v27, %v394_v24  ;;  %v424_v32 = vadd.f32 %v415_v28, %v393_v9  ;;  %v432_v34 = vmax.f32 %v12500_v10, 0.0  ;;  %v431_v35 = vmax.f32 %v12502_v25, 0.0 }
 0x102   :  { %v562_v27 = vrot.slane %v554_v16, 1 }
 0x103   :  { %v12506_v37 = vadd.f32 %v426_v17, %v425_v30  ;;  %v12508_v38 = vadd.f32 %v426_v17, %v424_v32  ;;  %v436_v43 = vsel %vm435_vm2, %v431_v35, 0.0  ;;  %v440_v46 = vsel %vm439_vm3, %v432_v34, 0.0 }
 0x104   :  { %v513_v26 = vpop.permute.xlu1 %512  ;;  %v638_v17 = vstv %s10078_s5  ;;  %s14013_s5 = sld [smem:[#allocation16 + $0x2]] }
 0x105   :  { %v434_v40 = vmax.f32 %v12506_v37, 0.0  ;;  %v433_v41 = vmax.f32 %v12508_v38, 0.0  ;;  %v641_v24 = vmul.f32 %v638_v17, %v12343_v0  ;;  %v642_v9 = vmul.f32 %v638_v17, %v12347_v3 }
 0x106   :  { %v639_v30 = vmul.f32 %v638_v17, %v12345_v1  ;;  %v640_v32 = vmul.f32 %v638_v17, %v12349_v4 }
 0x107   :  { %v437_v44 = vsel %vm435_vm2, %v433_v41, 0.0  ;;  %v441_v48 = vsel %vm439_vm3, %v434_v40, 0.0 }
 0x108   :  { %v438_v49 = vadd.f32 %v437_v44, %v436_v43  ;;  %v442_v51 = vadd.f32 %v441_v48, %v440_v46  ;;  %v515_v31 = vpop.permute.xlu1 %514 }
 0x10a   :  { %v443_v53 = vsel %vm435_vm2, %v438_v49, 0.0  ;;  %v444_v55 = vsel %vm439_vm3, %v442_v51, 0.0  ;;  %v650_v49 = vrot.slane %v641_v24, 2  ;;  %v651_v51 = vrot.slane %v642_v9, 2 }
 0x10b   :  { %v445_v56 = vadd.f32 %v444_v55, %v443_v53  ;;  %v564_v55 = vsel %vm263_vm0, %v562_v27, %v563_v23  ;;  %v723_v24 = vstv %s10090_s25  ;;  %s14015_s25 = sld [smem:[#allocation16 + $0x4]] }
 0x10c   :  { %v517_v33 = vpop.permute.xlu1 %516 }
 0x10d   :  { %446 = vadd.xlane.f32.xlu0 %v445_v56 }
 0x123   :  { %591 = vrot.lane.b32.xlu0 %v12411_v5, %s12249_s9  ;;  %v12543_v5 = vstv %s10082_s23  ;;  %s10093_s23 = sld [smem:[#allocation13 + $0x2]] }
 0x127   :  { %628 = vrot.lane.b32.xlu0 %v620_v29, %s12250_s12  ;;  %v800_v29 = vmul.f32 %v12543_v5, %v12349_v4 }
 0x129   :  { %809 = vrot.lane.b32.xlu1 %v800_v29, %s12249_s9  ;;  %v647_v29 = vrot.slane %v639_v30, 2 }
 0x12b   :  { %678 = vrot.lane.b32.xlu0 %v671_v36, %s12249_s9  ;;  %v519_v36 = vpop.permute.xlu1 %518 }
 0x12f   :  { %682 = vrot.lane.b32.xlu0 %v674_v39, %s12249_s9  ;;  %v538_v39 = vpop.permute.xlu1 %537 }
 0x133   :  { %709 = vrot.lane.b32.xlu0 %v702_v45, %s12250_s12  ;;  %v540_v57 = vpop.permute.xlu1 %539 }
 0x137   :  { %713 = vrot.lane.b32.xlu0 %v705_v50, %s12250_s12  ;;  %v542_v42 = vpop.permute.xlu1 %541  ;;  %v498_v50 = vstv %s10072_s24  ;;  %s10095_s24 = sld [smem:[#allocation14 + $0x2]] }
 0x138   :  { %v501_v58 = vmul.f32 %v498_v50, %v12343_v0  ;;  %v499_v13 = vmul.f32 %v498_v50, %v12345_v1  ;;  %v500_v14 = vmul.f32 %v498_v50, %v12349_v4  ;;  %v502_v18 = vmul.f32 %v498_v50, %v12347_v3 }
 0x13a   :  { %v526_v7 = vadd.f32 %v517_v33, %v501_v58  ;;  %v524_v20 = vadd.f32 %v513_v26, %v499_v13  ;;  %v525_v21 = vadd.f32 %v515_v31, %v500_v14  ;;  %v527_v28 = vadd.f32 %v519_v36, %v502_v18 }
 0x13b   :  { %v544_v45 = vpop.permute.xlu1 %543  ;;  %v648_v31 = vrot.slane %v640_v32, 2  ;;  %v652_v58 = vsel %vm349_vm1, %v650_v49, %v651_v51 }
 0x13c   :  { %v551_v62 = vadd.f32 %v542_v42, %v526_v7  ;;  %v549_v43 = vadd.f32 %v538_v39, %v524_v20  ;;  %v550_v44 = vadd.f32 %v540_v57, %v525_v21  ;;  %v552_v26 = vadd.f32 %v544_v45, %v527_v28 }
 0x13d   :  { %v649_v2 = vsel %vm349_vm1, %v647_v29, %v648_v31 }
 0x13e   :  { %v574_v22 = vadd.f32 %v567_v15, %v551_v62  ;;  %v573_v33 = vadd.f32 %v563_v23, %v550_v44  ;;  %v572_v50 = vadd.f32 %v564_v55, %v549_v43 }
 0x13f   :  { %v594_v52 = vpop.permute.xlu1 %593 }
 0x140   :  { %v604_v7 = vadd.f32 %v594_v52, %v573_v33 }
 0x143   :  { %v596_v54 = vpop.permute.xlu1 %595 }
 0x144   :  { %v605_v46 = vadd.f32 %v596_v54, %v574_v22  ;;  %v575_v54 = vadd.f32 %v566_v11, %v552_v26 }
 0x147   :  { %v12548_v60 = vpop.permute.xlu1 %597 }
 0x14b   :  { %v623_v47 = vpop.permute.xlu1 %622 }
 0x14f   :  { %v625_v61 = vpop.permute.xlu1 %624 }
 0x150   :  { %v635_v15 = vadd.f32 %v625_v61, %v604_v7 }
 0x152   :  { %v658_v52 = vadd.f32 %v648_v31, %v635_v15 }
 0x153   :  { %v627_v12 = vpop.permute.xlu1 %626 }
 0x154   :  { %v636_v42 = vadd.f32 %v627_v12, %v605_v46  ;;  %v606_v12 = vadd.f32 %v12548_v60, %v575_v54 }
 0x156   :  { %v659_v8 = vadd.f32 %v652_v58, %v636_v42  ;;  %v799_v58 = vmul.f32 %v12543_v5, %v12345_v1 }
 0x157   :  { %v677_v19 = vpop.permute.xlu1 %676 }
 0x15b   :  { %v681_v53 = vpop.permute.xlu1 %680 }
 0x15c   :  { %v690_v16 = vadd.f32 %v681_v53, %v659_v8 }
 0x15f   :  { %v708_v6 = vpop.permute.xlu1 %707 }
 0x163   :  { %v712_v20 = vpop.permute.xlu1 %711 }
 0x164   :  { %v721_v23 = vadd.f32 %v712_v20, %v690_v16 }
 0x166   :  { %v12569_v27 = vadd.f32 %v723_v24, %v721_v23 }
 0x168   :  { %v730_v32 = vmax.f32 %v12569_v27, 0.0 }
 0x16a   :  { %v733_v53 = vsel %vm435_vm2, %v730_v32, 0.0 }
 0x196   :  { %v447_v48 = vpop.xlane.xlu0 %446 }
 0x197   :  { %v448_v56 = vrot.slane %v447_v48, 4 }
 0x199   :  { %v449_v36 = vadd.f32 %v448_v56, %v447_v48 }
 0x19a   :  { %v592_v59 = vpop.permute.xlu0 %591 }
 0x19b   :  { %v450_v39 = vrot.slane %v449_v36, 2  ;;  %v603_v57 = vadd.f32 %v592_v59, %v572_v50  ;;  %v802_v59 = vmul.f32 %v12543_v5, %v12347_v3 }
 0x19d   :  { %v634_v13 = vadd.f32 %v623_v47, %v603_v57  ;;  %v451_v14 = vadd.f32 %v450_v39, %v449_v36  ;;  %v823_v39 = vstv %s10083_s2  ;;  %s14018_s2 = sld [smem:[#allocation16 + $0x5]] }
 0x19e   :  { %v629_v45 = vpop.permute.xlu0 %628  ;;  %v825_v54 = vmul.f32 %v823_v39, %v12349_v4 }
 0x19f   :  { %v657_v62 = vadd.f32 %v649_v2, %v634_v13  ;;  %v452_v63 = vrot.slane %v451_v14, 1  ;;  %v637_v22 = vadd.f32 %v629_v45, %v606_v12  ;;  %v827_v45 = vmul.f32 %v823_v39, %v12347_v3 }
 0x1a1   :  { %v688_v17 = vadd.f32 %v677_v19, %v657_v62  ;;  %v453_v18 = vadd.f32 %v452_v63, %v451_v14  ;;  %v660_v30 = vadd.f32 %v651_v51, %v637_v22 }
 0x1a2   :  { %v679_v21 = vpop.permute.xlu0 %678 }
 0x1a3   :  { %12064 = vpush %v453_v18  ;;  %v719_v11 = vadd.f32 %v708_v6, %v688_v17  ;;  %v689_v28 = vadd.f32 %v679_v21, %v658_v52  ;;  %v871_v6 = vstv %s10085_s4  ;;  %v902_v17 = vstv %s10086_s27  ;;  %s14025_s4 = sld [smem:[#allocation16 + $0x7]] }
 0x1a4   :  { %v873_v25 = vmul.f32 %v871_v6, %v12349_v4  ;;  %v875_v16 = vmul.f32 %v871_v6, %v12347_v3  ;;  %v904_v22 = vmul.f32 %v902_v17, %v12349_v4  ;;  %v906_v52 = vmul.f32 %v902_v17, %v12347_v3  ;;  %s14136_s27 = sld [smem:[#allocation16 + $0xa]] }
 0x1a5   :  { %v12567_v9 = vadd.f32 %v723_v24, %v719_v11 }
 0x1a6   :  { %v683_v47 = vpop.permute.xlu0 %682  ;;  %v881_v15 = vrot.slane %v873_v25, 1  ;;  %v884_v11 = vrot.slane %v875_v16, 1  ;;  %v912_v23 = vrot.slane %v904_v22, 1 }
 0x1a7   :  { %v728_v19 = vmax.f32 %v12567_v9, 0.0  ;;  %v691_v43 = vadd.f32 %v683_v47, %v660_v30  ;;  %v915_v47 = vrot.slane %v906_v52, 1 }
 0x1a9   :  { %v732_v49 = vsel %vm435_vm2, %v728_v19, 0.0 }
 0x1aa   :  { %v710_v60 = vpop.permute.xlu0 %709  ;;  %v734_v26 = vadd.f32 %v733_v53, %v732_v49  ;;  %v824_v49 = vmul.f32 %v823_v39, %v12345_v1  ;;  %v872_v53 = vmul.f32 %v871_v6, %v12345_v1 }
 0x1ab   :  { %v720_v61 = vadd.f32 %v710_v60, %v689_v28 }
 0x1ac   :  { %v738_v42 = vsel %vm435_vm2, %v734_v26, 0.0 }
 0x1ad   :  { %v12573_v44 = vadd.f32 %v723_v24, %v720_v61  ;;  %v987_v61 = vstv %s10089_s29  ;;  %s14150_s29 = sld [smem:[#allocation16 + $0x3]] }
 0x1ae   :  { %v714_v46 = vpop.permute.xlu0 %713 }
 0x1af   :  { %v722_v48 = vadd.f32 %v714_v46, %v691_v43  ;;  %v729_v51 = vmax.f32 %v12573_v44, 0.0  ;;  %v801_v43 = vmul.f32 %v12543_v5, %v12343_v0  ;;  %v826_v5 = vmul.f32 %v823_v39, %v12343_v0 }
 0x1b1   :  { %v12582_v55 = vadd.f32 %v723_v24, %v722_v48  ;;  %v735_v29 = vsel %vm439_vm3, %v729_v51, 0.0  ;;  %v956_v24 = vstv %s10088_s28  ;;  %v989_v48 = vmul.f32 %v987_v61, %v12349_v4  ;;  %s14144_s28 = sld [smem:[#allocation16]] }
 0x1b2   :  { %v958_v28 = vmul.f32 %v956_v24, %v12349_v4  ;;  %v960_v60 = vmul.f32 %v956_v24, %v12347_v3 }
 0x1b3   :  { %v731_v56 = vmax.f32 %v12582_v55, 0.0  ;;  %v997_v26 = vrot.slane %v989_v48, 2  ;;  %v848_v48 = vstv %s10084_s13  ;;  %s14172_s13 = sld [smem:[#allocation16 + $0xd]] }
 0x1b4   :  { %v966_v30 = vrot.slane %v958_v28, 2  ;;  %v969_v46 = vrot.slane %v960_v60, 2  ;;  %v12104_v28 = vld [vmem:[#allocation6 + $0x18] sm:$0xff] }
 0x1b5   :  { %v736_v31 = vsel %vm439_vm3, %v731_v56, 0.0 }
 0x1b6   :  { %v737_v33 = vadd.f32 %v736_v31, %v735_v29  ;;  %v991_v29 = vmul.f32 %v987_v61, %v12347_v3  ;;  %v880_v31 = vrot.slane %v872_v53, 1  ;;  %v852_v53 = vmul.f32 %v12104_v28, %v848_v48 }
 0x1b8   :  { %v739_v36 = vsel %vm439_vm3, %v737_v33, 0.0  ;;  %v874_v33 = vmul.f32 %v871_v6, %v12343_v0  ;;  %v1000_v4 = vrot.slane %v991_v29, 2 }
 0x1b9   :  { %v740_v50 = vadd.f32 %v739_v36, %v738_v42  ;;  %v882_v42 = vsel %vm263_vm0, %v880_v31, %v881_v15 }
 0x1ba   :  { %v883_v36 = vrot.slane %v874_v33, 1 }
 0x1bb   :  { %741 = vadd.xlane.f32.xlu0 %v740_v50  ;;  %v903_v50 = vmul.f32 %v902_v17, %v12345_v1 }
 0x1bc   :  { %v885_v3 = vsel %vm263_vm0, %v883_v36, %v884_v11 }
 0x1d1   :  { %807 = vrot.lane.b32.xlu0 %v799_v58, %s12249_s9  ;;  %v911_v58 = vrot.slane %v903_v50, 1  ;;  %v861_v50 = vrot.slane %v852_v53, 1 }
 0x1d3   :  { %v913_v39 = vsel %vm263_vm0, %v911_v58, %v912_v23 }
 0x1d4   :  { %s12065_s26 = spop %12064 }
 0x1d5   :  { %v455_v57 = vstv %s12065_s26  ;;  %813 = vrot.lane.b32.xlu0 %v802_v59, %s12249_s9  ;;  %v905_v59 = vmul.f32 %v902_v17, %v12343_v0  ;;  %s14031_s26 = sld [smem:[#allocation16 + $0x8]] }
 0x1d6   :  { %v456_v2 = vmul.f32 0.00057603687, %v455_v57 }
 0x1d7   :  { %v914_v57 = vrot.slane %v905_v59, 1 }
 0x1d8   :  { %v12602_v7 = vsub.f32 %v431_v35, %v456_v2  ;;  %v12606_v8 = vsub.f32 %v432_v34, %v456_v2  ;;  %v12610_v13 = vsub.f32 %v433_v41, %v456_v2  ;;  %v12614_v14 = vsub.f32 %v434_v40, %v456_v2 }
 0x1d9   :  { %834 = vrot.lane.b32.xlu0 %v825_v54, %s12250_s12  ;;  %v957_v54 = vmul.f32 %v956_v24, %v12345_v1  ;;  %v916_v2 = vsel %vm263_vm0, %v914_v57, %v915_v47  ;;  %v12106_v57 = vld [vmem:[#allocation6 + $0x8] sm:$0xff] }
 0x1da   :  { %v461_v35 = vmul.f32 %v12602_v7, %v12602_v7  ;;  %v462_v10 = vmul.f32 %v12606_v8, %v12606_v8  ;;  %v463_v34 = vmul.f32 %v12610_v13, %v12610_v13  ;;  %v464_v37 = vmul.f32 %v12614_v14, %v12614_v14 }
 0x1db   :  { %v965_v6 = vrot.slane %v957_v54, 2 }
 0x1dc   :  { %v465_v38 = vsel %vm435_vm2, %v461_v35, 0.0  ;;  %v466_v40 = vsel %vm435_vm2, %v463_v34, 0.0  ;;  %v468_v41 = vsel %vm439_vm3, %v462_v10, 0.0  ;;  %v469_v62 = vsel %vm439_vm3, %v464_v37, 0.0 }
 0x1dd   :  { %v467_v63 = vadd.f32 %v466_v40, %v465_v38  ;;  %v470_v12 = vadd.f32 %v469_v62, %v468_v41  ;;  %838 = vrot.lane.b32.xlu0 %v827_v45, %s12250_s12  ;;  %v959_v45 = vmul.f32 %v956_v24, %v12343_v0  ;;  %v967_v25 = vsel %vm349_vm1, %v965_v6, %v966_v30 }
 0x1de   :  { %v988_v10 = vmul.f32 %v987_v61, %v12345_v1  ;;  %v990_v38 = vmul.f32 %v987_v61, %v12343_v0  ;;  %v793_v24 = vstv %s10081_s30  ;;  %s14167_s30 = sld [smem:[#allocation16 + $0xb]] }
 0x1df   :  { %v471_v18 = vsel %vm435_vm2, %v467_v63, 0.0  ;;  %v472_v20 = vsel %vm439_vm3, %v470_v12, 0.0  ;;  %v968_v35 = vrot.slane %v959_v45, 2  ;;  %v12251_v63 = vmov 0.0  }
 0x1e0   :  { %v473_v21 = vadd.f32 %v472_v20, %v471_v18  ;;  %v996_v37 = vrot.slane %v988_v10, 2  ;;  %v999_v41 = vrot.slane %v990_v38, 2  ;;  %10870 = vmatprep.subr.mxu0 %v12251_v63  ;;  %10877 = vmatprep.subr.mxu1 %v12251_v63  ;;  %v810_v20 = vpop.permute.xlu1 %809  ;;  %v795_v54 = vmul.f32 %v12106_v57, %v793_v24 }
 0x1e1   :  { %888 = vrot.lane.b32.xlu0 %v881_v15, %s12249_s9  ;;  %v970_v34 = vsel %vm349_vm1, %v968_v35, %v969_v46  ;;  %10874 = vmatprep.mubr.msk.f32.mxu0 %vm12252_vm4, %v12251_v63  ;;  %v12107_v35 = vld [vmem:[#allocation6 + $0x10] sm:$0xff] }
 0x1e2   :  { %474 = vadd.xlane.f32.xlu1 %v473_v21  ;;  %v998_v40 = vsel %vm349_vm1, %v996_v37, %v997_v26  ;;  %v1001_v62 = vsel %vm349_vm1, %v999_v41, %v1000_v4  ;;  %10881 = vmatprep.mubr.msk.f32.mxu1 %vm12252_vm4, %v12251_v63  ;;  %v796_v10 = vmul.f32 %v12107_v35, %v793_v24 }
 0x1e3   :  { %v851_v38 = vmul.f32 %v12107_v35, %v848_v48 }
 0x1e5   :  { %892 = vrot.lane.b32.xlu0 %v884_v11, %s12249_s9 }
 0x1e9   :  { %919 = vrot.lane.b32.xlu0 %v912_v23, %s12250_s12 }
 0x1ed   :  { %923 = vrot.lane.b32.xlu0 %v915_v47, %s12250_s12 }
 0x1f1   :  { %973 = vrot.lane.b32.xlu0 %v966_v30, %s12249_s9  ;;  %v797_v30 = vmul.f32 %v12104_v28, %v793_v24 }
 0x1f3   :  { %811 = vrot.lane.b32.xlu1 %v801_v43, %s12249_s9 }
 0x1f5   :  { %977 = vrot.lane.b32.xlu0 %v969_v46, %s12249_s9 }
 0x1f7   :  { %832 = vrot.lane.b32.xlu1 %v824_v49, %s12250_s12 }
 0x1f9   :  { %1004 = vrot.lane.b32.xlu0 %v997_v26, %s12250_s12 }
 0x1fb   :  { %836 = vrot.lane.b32.xlu1 %v826_v5, %s12250_s12 }
 0x1fd   :  { %1008 = vrot.lane.b32.xlu0 %v1000_v4, %s12250_s12  ;;  %v12105_v4 = vld [vmem:[#allocation6] sm:$0xff] }
 0x1ff   :  { %886 = vrot.lane.b32.xlu1 %v882_v42, %s12249_s9  ;;  %v794_v42 = vmul.f32 %v12105_v4, %v793_v24 }
 0x203   :  { %890 = vrot.lane.b32.xlu1 %v885_v3, %s12249_s9 }
 0x207   :  { %917 = vrot.lane.b32.xlu1 %v913_v39, %s12250_s12  ;;  %v849_v39 = vmul.f32 %v12105_v4, %v848_v48 }
 0x20b   :  { %921 = vrot.lane.b32.xlu1 %v916_v2, %s12250_s12  ;;  %v850_v2 = vmul.f32 %v12106_v57, %v848_v48 }
 0x20d   :  { %v858_v41 = vrot.slane %v850_v2, 1 }
 0x20f   :  { %971 = vrot.lane.b32.xlu1 %v967_v25, %s12249_s9 }
 0x213   :  { %975 = vrot.lane.b32.xlu1 %v970_v34, %s12249_s9  ;;  %v857_v34 = vrot.slane %v849_v39, 1 }
 0x217   :  { %1002 = vrot.lane.b32.xlu1 %v998_v40, %s12250_s12  ;;  %v820_v40 = vadd.f32 %v810_v20, %v795_v54 }
 0x21b   :  { %1006 = vrot.lane.b32.xlu1 %v1001_v62, %s12250_s12  ;;  %v933_v62 = vstv %s10087_s14  ;;  %s14187_s14 = sld [smem:[#allocation16 + $0x6]] }
 0x21c   :  { %v934_v20 = vmul.f32 %v12105_v4, %v933_v62  ;;  %v935_v53 = vmul.f32 %v12106_v57, %v933_v62 }
 0x244   :  { %v742_v1 = vpop.xlane.xlu0 %741 }
 0x245   :  { %v743_v18 = vrot.slane %v742_v1, 4 }
 0x247   :  { %v744_v21 = vadd.f32 %v743_v18, %v742_v1 }
 0x248   :  { %v808_v12 = vpop.permute.xlu0 %807 }
 0x249   :  { %v745_v22 = vrot.slane %v744_v21, 2  ;;  %v819_v45 = vadd.f32 %v808_v12, %v794_v42  ;;  %v936_v42 = vmul.f32 %v12107_v35, %v933_v62 }
 0x24b   :  { %v746_v43 = vadd.f32 %v745_v22, %v744_v21  ;;  %v859_v22 = vsel %vm263_vm0, %v857_v34, %v858_v41  ;;  %v945_v39 = vrot.slane %v936_v42, 2 }
 0x24c   :  { %v814_v0 = vpop.permute.xlu0 %813 }
 0x24d   :  { %v822_v49 = vadd.f32 %v814_v0, %v797_v30  ;;  %v747_v31 = vrot.slane %v746_v43, 1  ;;  %v937_v0 = vmul.f32 %v12104_v28, %v933_v62 }
 0x24f   :  { %v748_v59 = vadd.f32 %v747_v31, %v746_v43 }
 0x250   :  { %v835_v15 = vpop.permute.xlu0 %834 }
 0x251   :  { %v845_v30 = vadd.f32 %v835_v15, %v820_v40 }
 0x254   :  { %v839_v16 = vpop.permute.xlu0 %838 }
 0x255   :  { %v847_v36 = vadd.f32 %v839_v16, %v822_v49  ;;  %v868_v49 = vadd.f32 %v858_v41, %v845_v30 }
 0x257   :  { %v870_v25 = vadd.f32 %v861_v50, %v847_v36 }
 0x258   :  { %v12686_v17 = vpop.permute.xlu0 %888 }
 0x259   :  { %v899_v28 = vadd.f32 %v12686_v17, %v868_v49 }
 0x25c   :  { %v893_v11 = vpop.permute.xlu0 %892 }
 0x25d   :  { %v901_v1 = vadd.f32 %v893_v11, %v870_v25 }
 0x260   :  { %v12688_v47 = vpop.permute.xlu0 %919 }
 0x261   :  { %v930_v15 = vadd.f32 %v12688_v47, %v899_v28  ;;  %v1018_v47 = vstv %s10091_s15  ;;  %s14196_s15 = sld [smem:[#allocation16 + $0xe]] }
 0x264   :  { %v924_v29 = vpop.permute.xlu0 %923 }
 0x265   :  { %v932_v12 = vadd.f32 %v924_v29, %v901_v1  ;;  %v943_v29 = vrot.slane %v935_v53, 2  ;;  %v1088_v53 = vlaneseq }
 0x267   :  { %v953_v57 = vadd.f32 %v943_v29, %v930_v15 }
 0x268   :  { %v974_v6 = vpop.permute.xlu0 %973 }
 0x269   :  { %v984_v17 = vadd.f32 %v974_v6, %v953_v57 }
 0x26b   :  { %v475_v23 = vpop.xlane.xlu1 %474 }
 0x26c   :  { %v476_v52 = vrot.slane %v475_v23, 4  ;;  %v978_v21 = vpop.permute.xlu0 %977 }
 0x26e   :  { %v477_v60 = vadd.f32 %v476_v52, %v475_v23  ;;  %v860_v23 = vrot.slane %v851_v38, 1 }
 0x26f   :  { %v812_v61 = vpop.permute.xlu1 %811 }
 0x270   :  { %v478_v46 = vrot.slane %v477_v60, 2  ;;  %v821_v16 = vadd.f32 %v812_v61, %v796_v10  ;;  %v1005_v11 = vpop.permute.xlu0 %1004 }
 0x271   :  { %v1015_v10 = vadd.f32 %v1005_v11, %v984_v17  ;;  %v487_v17 = vstv %s163_s17  ;;  %s14255_s17 = sld [smem:[#allocation16 + $0x11]] }
 0x272   :  { %v479_v26 = vadd.f32 %v478_v46, %v477_v60  ;;  %v946_v60 = vrot.slane %v937_v0, 2  ;;  %v862_v46 = vsel %vm263_vm0, %v860_v23, %v861_v50 }
 0x273   :  { %v833_v5 = vpop.permute.xlu1 %832  ;;  %v12698_v41 = vadd.f32 %v1018_v47, %v1015_v10 }
 0x274   :  { %v480_v33 = vrot.slane %v479_v26, 1  ;;  %v844_v18 = vadd.f32 %v833_v5, %v819_v45  ;;  %v955_v61 = vadd.f32 %v946_v60, %v932_v12  ;;  %v947_v25 = vsel %vm349_vm1, %v945_v39, %v946_v60 }
 0x276   :  { %v481_v3 = vadd.f32 %v480_v33, %v479_v26  ;;  %v867_v24 = vadd.f32 %v859_v22, %v844_v18  ;;  %v942_v33 = vrot.slane %v934_v20, 2  ;;  %v986_v36 = vadd.f32 %v978_v21, %v955_v61 }
 0x277   :  { %v837_v58 = vpop.permute.xlu1 %836  ;;  %v1024_v18 = vmax.f32 %v12698_v41, 0.0 }
 0x278   :  { %12066 = vpush %v481_v3  ;;  %v846_v43 = vadd.f32 %v837_v58, %v821_v16  ;;  %v1009_v58 = vpop.permute.xlu0 %1008  ;;  %v944_v4 = vsel %vm349_vm1, %v942_v33, %v943_v29  ;;  %vm7575_vm1 = vcmask 233472  }
 0x279   :  { %12068 = vpush %v748_v59  ;;  %v1017_v54 = vadd.f32 %v1009_v58, %v986_v36  ;;  %v1030_v30 = vsel %vm439_vm3, %v1024_v18, 0.0  ;;  %v12740_v36 = vand.u32 127, %v1088_v53 }
 0x27a   :  { %v869_v5 = vadd.f32 %v862_v46, %v846_v43 }
 0x27b   :  { %v887_v37 = vpop.permute.xlu1 %886  ;;  %v12696_v34 = vadd.f32 %v1018_v47, %v1017_v54 }
 0x27c   :  { %v898_v26 = vadd.f32 %v887_v37, %v867_v24 }
 0x27d   :  { %v1026_v1 = vmax.f32 %v12696_v34, 0.0 }
 0x27f   :  { %v891_v52 = vpop.permute.xlu1 %890  ;;  %v1031_v22 = vsel %vm439_vm3, %v1026_v1, 0.0 }
 0x280   :  { %v900_v3 = vadd.f32 %v891_v52, %v869_v5  ;;  %v1032_v60 = vadd.f32 %v1031_v22, %v1030_v30 }
 0x282   :  { %v1034_v20 = vsel %vm439_vm3, %v1032_v60, 0.0 }
 0x283   :  { %v918_v48 = vpop.permute.xlu1 %917 }
 0x284   :  { %v929_v50 = vadd.f32 %v918_v48, %v898_v26  ;;  %v12722_v26 = vshrl.u32 %v1088_v53, 7 }
 0x286   :  { %v952_v45 = vadd.f32 %v944_v4, %v929_v50 }
 0x287   :  { %v922_v31 = vpop.permute.xlu1 %921 }
 0x288   :  { %v931_v2 = vadd.f32 %v922_v31, %v900_v3  ;;  %v1092_v3 = vmul.u32 2, %v12722_v26 }
 0x28a   :  { %v954_v38 = vadd.f32 %v947_v25, %v931_v2  ;;  %vm1093_vm5 = vcmp.eq.s32.totalorder %v12740_v36, %v1092_v3 }
 0x28b   :  { %v972_v59 = vpop.permute.xlu1 %971  ;;  %v12759_v57 = vsel %vm1093_vm5, 1.0, %v12251_v63  ;;  %vm8539_vm5 = vcmask 228352  }
 0x28c   :  { %v983_v37 = vadd.f32 %v972_v59, %v952_v45  ;;  %v1184_v54 = vsel %vm1182_vm6, %v12759_v57, 0 }
 0x28d   :  { %v12763_v25 = vsub.f32 %v1184_v54, %v1184_v54 }
 0x28f   :  { %v976_v35 = vpop.permute.xlu1 %975 }
 0x290   :  { %v985_v0 = vadd.f32 %v976_v35, %v954_v38  ;;  %v493_v35 = vstv %s166_s18  ;;  %s10107_s18 = sld [smem:[#allocation16 + $0xc]] }
 0x293   :  { %v1003_v40 = vpop.permute.xlu1 %1002 }
 0x294   :  { %v1014_v62 = vadd.f32 %v1003_v40, %v983_v37 }
 0x296   :  { %v12701_v6 = vadd.f32 %v1018_v47, %v1014_v62 }
 0x297   :  { %v1007_v16 = vpop.permute.xlu1 %1006 }
 0x298   :  { %v1016_v21 = vadd.f32 %v1007_v16, %v985_v0  ;;  %v1023_v23 = vmax.f32 %v12701_v6, 0.0  ;;  %v12770_v0 = vand.u32 4294901760, %v12763_v25 }
 0x29a   :  { %v12708_v52 = vadd.f32 %v1018_v47, %v1016_v21  ;;  %v1027_v43 = vsel %vm435_vm2, %v1023_v23, 0.0 }
 0x29c   :  { %v1025_v12 = vmax.f32 %v12708_v52, 0.0 }
 0x29e   :  { %v1028_v24 = vsel %vm435_vm2, %v1025_v12, 0.0 }
 0x29f   :  { %v1029_v46 = vadd.f32 %v1028_v24, %v1027_v43 }
 0x2a1   :  { %v1033_v48 = vsel %vm435_vm2, %v1029_v46, 0.0 }
 0x2a2   :  { %v1035_v49 = vadd.f32 %v1034_v20, %v1033_v48 }
 0x2a4   :  { %1036 = vadd.xlane.f32.xlu0 %v1035_v49 }
 0x2a9   :  { %s12067_s16 = spop %12066 }
 0x2aa   :  { %v483_v11 = vstv %s12067_s16  ;;  %s12069_s1 = spop %12068  ;;  %s14216_s16 = sld [smem:[#allocation16 + $0x10]] }
 0x2ab   :  { %v484_v28 = vmul.f32 0.00057603687, %v483_v11  ;;  %v750_v61 = vstv %s12069_s1  ;;  %s14251_s1 = sld [smem:[#allocation16 + $0x9]] }
 0x2ac   :  { %v751_v5 = vmul.f32 0.00057603687, %v750_v61 }
 0x2ad   :  { %v485_v31 = vadd.f32 1e-05, %v484_v28 }
 0x2ae   :  { %v12726_v33 = vsub.f32 %v728_v19, %v751_v5  ;;  %v12730_v42 = vsub.f32 %v729_v51, %v751_v5  ;;  %v12734_v15 = vsub.f32 %v730_v32, %v751_v5  ;;  %v12738_v29 = vsub.f32 %v731_v56, %v751_v5 }
 0x2af   :  { %12096 = vrsqrt.f32 %v485_v31 }
 0x2b0   :  { %v756_v9 = vmul.f32 %v12726_v33, %v12726_v33  ;;  %v757_v19 = vmul.f32 %v12730_v42, %v12730_v42  ;;  %v758_v27 = vmul.f32 %v12734_v15, %v12734_v15  ;;  %v759_v32 = vmul.f32 %v12738_v29, %v12738_v29 }
 0x2b2   :  { %v760_v44 = vsel %vm435_vm2, %v756_v9, 0.0  ;;  %v761_v51 = vsel %vm435_vm2, %v758_v27, 0.0  ;;  %v763_v55 = vsel %vm439_vm3, %v757_v19, 0.0  ;;  %v764_v56 = vsel %vm439_vm3, %v759_v32, 0.0 }
 0x2b3   :  { %v762_v50 = vadd.f32 %v761_v51, %v760_v44  ;;  %v765_v58 = vadd.f32 %v764_v56, %v763_v55 }
 0x2b5   :  { %v766_v4 = vsel %vm435_vm2, %v762_v50, 0.0  ;;  %v767_v59 = vsel %vm439_vm3, %v765_v58, 0.0 }
 0x2b6   :  { %v768_v39 = vadd.f32 %v767_v59, %v766_v4 }
 0x2b8   :  { %769 = vadd.xlane.f32.xlu1 %v768_v39 }
 0x2bc   :  { %v12097_v2 = vpop.eup %12096 }
 0x2bd   :  { %v488_v45 = vmul.f32 %v12097_v2, %v487_v17 }
 0x2bf   :  { %v490_v10 = vmul.f32 %v488_v45, %v12606_v8  ;;  %v489_v47 = vmul.f32 %v488_v45, %v12602_v7  ;;  %v492_v37 = vmul.f32 %v488_v45, %v12614_v14  ;;  %v491_v38 = vmul.f32 %v488_v45, %v12610_v13 }
 0x2c0   :  { %v1260_v7 = vsub.f32 %v12763_v25, %v12770_v0 }
 0x2c1   :  { %v495_v40 = vadd.f32 %v493_v35, %v490_v10  ;;  %v494_v62 = vadd.f32 %v493_v35, %v489_v47  ;;  %v497_v16 = vadd.f32 %v493_v35, %v492_v37  ;;  %v496_v30 = vadd.f32 %v493_v35, %v491_v38 }
 0x2c2   :  { %v12776_v20 = vand.u32 4294901760, %v1260_v7 }
 0x2c3   :  { %v1141_v21 = vrot.slane %v495_v40, 1  ;;  %v1140_v22 = vrot.slane %v494_v62, 1  ;;  %v1144_v14 = vrot.slane %v497_v16, 1  ;;  %v1143_v48 = vrot.slane %v496_v30, 1 }
 0x2c5   :  { %v1171_v60 = vmax.f32 %v495_v40, %v1141_v21  ;;  %v1142_v43 = vsel %vm263_vm0, %v1140_v22, %v1141_v21  ;;  %v1173_v11 = vmax.f32 %v497_v16, %v1144_v14  ;;  %v1145_v5 = vsel %vm263_vm0, %v1143_v48, %v1144_v14 }
 0x2c6   :  { %v1170_v8 = vmax.f32 %v494_v62, %v1142_v43  ;;  %v1172_v19 = vmax.f32 %v496_v30, %v1145_v5 }
 0x2c7   :  { %v1188_v13 = vsel %vm1186_vm7, %v1171_v60, 0  ;;  %v1650_v9 = vsel %vm1186_vm7, %v1173_v11, 0 }
 0x2c8   :  { %v1219_v24 = vand.u32 4294901760, %v1188_v13  ;;  %v1222_v46 = vand.u32 4294901760, %v1170_v8  ;;  %v1681_v32 = vand.u32 4294901760, %v1650_v9  ;;  %v1684_v51 = vand.u32 4294901760, %v1172_v19 }
 0x2ca   :  { %10871 = vmatpush3.msra.mxu0 %v1219_v24  ;;  %v1297_v49 = vsub.f32 %v1188_v13, %v1219_v24  ;;  %v1304_v53 = vsub.f32 %v1170_v8, %v1222_v46  ;;  %v1759_v55 = vsub.f32 %v1650_v9, %v1681_v32  ;;  %v1766_v56 = vsub.f32 %v1172_v19, %v1684_v51 }
 0x2cb   :  { %10872 = vmatprep.subr.mxu0 %v12251_v63 }
 0x2cc   :  { %10873 = vmatpush3.msra.mxu0 %v1222_v46  ;;  %v1298_v28 = vand.u32 4294901760, %v1297_v49  ;;  %v1305_v61 = vand.u32 4294901760, %v1304_v53  ;;  %v1760_v50 = vand.u32 4294901760, %v1759_v55  ;;  %v1767_v58 = vand.u32 4294901760, %v1766_v56 }
 0x2cd   :  { %10884 = vmatprep.subr.mxu0 %v12251_v63  ;;  %10875 = vmatmul.mubr.f32.vlgmr.msra.gmra.mxu0 %v12776_v20 }
 0x2ce   :  { %10885 = vmatpush3.msra.mxu0 %v1297_v49  ;;  %10888 = vmatprep.mubr.msk.f32.mxu0 %vm12252_vm4, %v12251_v63  ;;  %v1299_v31 = vsub.f32 %v1297_v49, %v1298_v28  ;;  %v1306_v3 = vsub.f32 %v1304_v53, %v1305_v61  ;;  %v1761_v4 = vsub.f32 %v1759_v55, %v1760_v50 }
 0x2cf   :  { %10886 = vmatprep.subr.mxu0 %v12251_v63  ;;  %v1768_v59 = vsub.f32 %v1766_v56, %v1767_v58 }
 0x2d0   :  { %10887 = vmatpush3.msra.mxu0 %v1304_v53  ;;  %v1300_v27 = vand.u32 4294901760, %v1299_v31  ;;  %v1307_v44 = vand.u32 4294901760, %v1306_v3  ;;  %v1762_v39 = vand.u32 4294901760, %v1761_v4  ;;  %v782_v3 = vstv %s10092_s21  ;;  %s14469_s21 = sld [smem:[#allocation16 + $0x12]] }
 0x2d1   :  { %10898 = vmatprep.subr.mxu0 %v12251_v63  ;;  %10889 = vmatmul.mubr.f32.vlgmr.msra.gmra.mxu0 %v12763_v25  ;;  %v1769_v17 = vand.u32 4294901760, %v1768_v59 }
 0x2d2   :  { %10878 = vmatpush3.msra.mxu1 %v1300_v27  ;;  %10899 = vmatpush3.msra.mxu0 %v1298_v28 }
 0x2d3   :  { %10879 = vmatprep.subr.mxu1 %v12251_v63  ;;  %10900 = vmatprep.subr.mxu0 %v12251_v63 }
 0x2d4   :  { %10880 = vmatpush3.msra.mxu1 %v1307_v44  ;;  %10901 = vmatpush3.msra.mxu0 %v1305_v61  ;;  %v788_v44 = vstv %s10094_s22  ;;  %s14471_s22 = sld [smem:[#allocation16 + $0x14]] }
 0x2d5   :  { %10891 = vmatprep.subr.mxu1 %v12251_v63  ;;  %10902 = vmatprep.mubr.msk.f32.mxu0 %vm12252_vm4, %v12251_v63 }
 0x2d6   :  { %10912 = vmatprep.subr.mxu0 %v12251_v63  ;;  %10882 = vmatmul.mubr.msk.f32.vlgmr.msra.gmra.mxu1 %vm1182_vm6, %v12759_v57 }
 0x2d7   :  { %10892 = vmatpush3.msra.mxu1 %v1219_v24  ;;  %10903 = vmatmul.mubr.msk.f32.vlgmr.msra.gmra.mxu0 %vm1182_vm6, %v12759_v57 }
 0x2d8   :  { %10913 = vmatpush3.msra.mxu0 %v1681_v32  ;;  %10893 = vmatprep.subr.mxu1 %v12251_v63 }
 0x2d9   :  { %10914 = vmatprep.subr.mxu0 %v12251_v63  ;;  %10894 = vmatpush3.msra.mxu1 %v1222_v46 }
 0x2da   :  { %10915 = vmatpush3.msra.mxu0 %v1684_v51  ;;  %10895 = vmatprep.mubr.msk.f32.mxu1 %vm12252_vm4, %v12251_v63 }
 0x2db   :  { %10905 = vmatprep.subr.mxu1 %v12251_v63  ;;  %10916 = vmatprep.mubr.msk.f32.mxu0 %vm12252_vm4, %v12251_v63 }
 0x2dc   :  { %10926 = vmatprep.subr.mxu0 %v12251_v63  ;;  %10896 = vmatmul.mubr.f32.vlgmr.msra.gmra.mxu1 %v12770_v0 }
 0x2dd   :  { %10906 = vmatpush3.msra.mxu1 %v1219_v24  ;;  %10917 = vmatmul.mubr.f32.vlgmr.msra.gmra.mxu0 %v12776_v20 }
 0x2de   :  { %10927 = vmatpush3.msra.mxu0 %v1759_v55  ;;  %10907 = vmatprep.subr.mxu1 %v12251_v63 }
 0x2df   :  { %10928 = vmatprep.subr.mxu0 %v12251_v63  ;;  %10908 = vmatpush3.msra.mxu1 %v1222_v46 }
 0x2e0   :  { %10929 = vmatpush3.msra.mxu0 %v1766_v56  ;;  %10909 = vmatprep.mubr.msk.f32.mxu1 %vm12252_vm4, %v12251_v63 }
 0x2e1   :  { %10919 = vmatprep.subr.mxu1 %v12251_v63  ;;  %10930 = vmatprep.mubr.msk.f32.mxu0 %vm12252_vm4, %v12251_v63 }
 0x2e2   :  { %10940 = vmatprep.subr.mxu0 %v12251_v63  ;;  %10910 = vmatmul.mubr.msk.f32.vlgmr.msra.gmra.mxu1 %vm1182_vm6, %v12759_v57 }
 0x2e3   :  { %10920 = vmatpush3.msra.mxu1 %v1762_v39  ;;  %10931 = vmatmul.mubr.f32.vlgmr.msra.gmra.mxu0 %v12763_v25 }
 0x2e4   :  { %10941 = vmatpush3.msra.mxu0 %v1760_v50  ;;  %10921 = vmatprep.subr.mxu1 %v12251_v63 }
 0x2e5   :  { %10942 = vmatprep.subr.mxu0 %v12251_v63  ;;  %10922 = vmatpush3.msra.mxu1 %v1769_v17 }
 0x2e6   :  { %10943 = vmatpush3.msra.mxu0 %v1767_v58  ;;  %10923 = vmatprep.mubr.msk.f32.mxu1 %vm12252_vm4, %v12251_v63 }
 0x2e7   :  { %10933 = vmatprep.subr.mxu1 %v12251_v63  ;;  %10924 = vmatmul.mubr.msk.f32.vlgmr.msra.gmra.mxu1 %vm1182_vm6, %v12759_v57 }
 0x2e8   :  { %10934 = vmatpush3.msra.mxu1 %v1681_v32  ;;  %10937 = vmatprep.mubr.msk.f32.mxu1 %vm12252_vm4, %v12251_v63 }
 0x2e9   :  { %10935 = vmatprep.subr.mxu1 %v12251_v63  ;;  %10944 = vmatprep.mubr.msk.f32.mxu0 %vm12252_vm4, %v12251_v63 }
 0x2ea   :  { %10936 = vmatpush3.msra.mxu1 %v1684_v51  ;;  %10945 = vmatmul.mubr.msk.f32.vlgmr.msra.gmra.mxu0 %vm1182_vm6, %v12759_v57 }
 0x2eb   :  { %10947 = vmatprep.subr.mxu1 %v12251_v63  ;;  %10938 = vmatmul.mubr.f32.vlgmr.msra.gmra.mxu1 %v12770_v0 }
 0x2ec   :  { %10948 = vmatpush3.msra.mxu1 %v1681_v32  ;;  %10951 = vmatprep.mubr.msk.f32.mxu1 %vm12252_vm4, %v12251_v63 }
 0x2ed   :  { %10949 = vmatprep.subr.mxu1 %v12251_v63  ;;  %10954 = vmatprep.subr.mxu0 %v12251_v63 }
 0x2ee   :  { %10950 = vmatpush3.msra.mxu1 %v1684_v51  ;;  %10958 = vmatprep.mubr.msk.f32.mxu0 %vm12252_vm4, %v12251_v63 }
 0x2ef   :  { %10952 = vmatmul.mubr.msk.f32.vlgmr.msra.gmra.mxu1 %vm1182_vm6, %v12759_v57  ;;  %10961 = vmatprep.subr.mxu1 %v12251_v63 }
 0x2f0   :  { %10965 = vmatprep.mubr.msk.f32.mxu1 %vm12252_vm4, %v12251_v63 }
 0x32d   :  { %v1037_v54 = vpop.xlane.xlu0 %1036 }
 0x32e   :  { %v1038_v2 = vrot.slane %v1037_v54, 4 }
 0x330   :  { %v1039_v45 = vadd.f32 %v1038_v2, %v1037_v54 }
 0x332   :  { %v1040_v35 = vrot.slane %v1039_v45, 2 }
 0x334   :  { %v1041_v38 = vadd.f32 %v1040_v35, %v1039_v45 }
 0x336   :  { %v1042_v16 = vrot.slane %v1041_v38, 1 }
 0x338   :  { %v1043_v30 = vadd.f32 %v1042_v16, %v1041_v38 }
 0x341   :  { %v770_v10 = vpop.xlane.xlu1 %769 }
 0x342   :  { %v771_v47 = vrot.slane %v770_v10, 4 }
 0x344   :  { %v772_v37 = vadd.f32 %v771_v47, %v770_v10 }
 0x346   :  { %v773_v40 = vrot.slane %v772_v37, 2 }
 0x348   :  { %v774_v62 = vadd.f32 %v773_v40, %v772_v37 }
 0x34a   :  { %v775_v21 = vrot.slane %v774_v62, 1 }
 0x34c   :  { %v776_v22 = vadd.f32 %v775_v21, %v774_v62 }
 0x34e   :  { %12070 = vpush %v776_v22 }
 0x34f   :  { %12072 = vpush %v1043_v30 }
 0x37f   :  { %s12071_s19 = spop %12070 }
 0x380   :  { %v778_v60 = vstv %s12071_s19  ;;  %s12073_s20 = spop %12072  ;;  %s10110_s19 = sld [smem:[#allocation16 + $0xf]] }
 0x381   :  { %v779_v43 = vmul.f32 0.00057603687, %v778_v60  ;;  %v1045_v7 = vstv %s12073_s20  ;;  %s14467_s20 = sld [smem:[#allocation16 + $0x13]] }
 0x382   :  { %v1046_v8 = vmul.f32 0.00057603687, %v1045_v7 }
 0x383   :  { %v780_v14 = vadd.f32 1e-05, %v779_v43 }
 0x384   :  { %v12848_v13 = vsub.f32 %v1023_v23, %v1046_v8  ;;  %v12852_v24 = vsub.f32 %v1024_v18, %v1046_v8  ;;  %v12856_v46 = vsub.f32 %v1025_v12, %v1046_v8  ;;  %v12860_v48 = vsub.f32 %v1026_v1, %v1046_v8 }
 0x385   :  { %12098 = vrsqrt.f32 %v780_v14 }
 0x386   :  { %v1051_v49 = vmul.f32 %v12848_v13, %v12848_v13  ;;  %v1052_v6 = vmul.f32 %v12852_v24, %v12852_v24  ;;  %v1053_v41 = vmul.f32 %v12856_v46, %v12856_v46  ;;  %v1054_v18 = vmul.f32 %v12860_v48, %v12860_v48 }
 0x388   :  { %v1055_v23 = vsel %vm435_vm2, %v1051_v49, 0.0  ;;  %v1056_v34 = vsel %vm435_vm2, %v1053_v41, 0.0  ;;  %v1058_v1 = vsel %vm439_vm3, %v1052_v6, 0.0  ;;  %v1059_v52 = vsel %vm439_vm3, %v1054_v18, 0.0 }
 0x389   :  { %v1057_v12 = vadd.f32 %v1056_v34, %v1055_v23  ;;  %v1060_v53 = vadd.f32 %v1059_v52, %v1058_v1 }
 0x38b   :  { %v1061_v11 = vsel %vm435_vm2, %v1057_v12, 0.0  ;;  %v1062_v28 = vsel %vm439_vm3, %v1060_v53, 0.0  ;;  %vm7627_vm2 = vcmask 31744   ;;  %vm7630_vm3 = vcmask 1043456  }
 0x38c   :  { %v1063_v61 = vadd.f32 %v1062_v28, %v1061_v11 }
 0x38d   :  { %v1263_v5 = vpop.f32.mrf.mxu0 }
 0x38e   :  { %1064 = vadd.xlane.f32.xlu0 %v1063_v61 }
 0x38f   :  { %v10876_v31 = vpop.f32.mrf.mxu0 }
 0x391   :  { %v1420_v9 = vpop.f32.mrf.mxu0 }
 0x392   :  { %v12099_v19 = vpop.eup %12098 }
 0x393   :  { %v783_v27 = vmul.f32 %v12099_v19, %v782_v3  ;;  %v10890_v32 = vpop.f32.mrf.mxu0 }
 0x395   :  { %v785_v51 = vmul.f32 %v783_v27, %v12730_v42  ;;  %v784_v55 = vmul.f32 %v783_v27, %v12726_v33  ;;  %v787_v56 = vmul.f32 %v783_v27, %v12738_v29  ;;  %v786_v50 = vmul.f32 %v783_v27, %v12734_v15 }
 0x396   :  { %v1344_v58 = vpop.f32.mrf.mxu1 }
 0x397   :  { %v790_v4 = vadd.f32 %v788_v44, %v785_v51  ;;  %v789_v59 = vadd.f32 %v788_v44, %v784_v55  ;;  %v1572_v39 = vpop.f32.mrf.mxu0  ;;  %v792_v17 = vadd.f32 %v788_v44, %v787_v56  ;;  %v1345_v54 = vadd.f32 %v1344_v58, %v1263_v5 }
 0x398   :  { %v10883_v2 = vpop.f32.mrf.mxu1  ;;  %v791_v47 = vadd.f32 %v788_v44, %v786_v50 }
 0x399   :  { %v1147_v45 = vrot.slane %v790_v4, 1  ;;  %v1146_v35 = vrot.slane %v789_v59, 1  ;;  %v10904_v10 = vpop.f32.mrf.mxu0  ;;  %v1421_v37 = vadd.f32 %v1420_v9, %v1345_v54  ;;  %v1150_v40 = vrot.slane %v792_v17, 1 }
 0x39a   :  { %v1149_v22 = vrot.slane %v791_v47, 1 }
 0x39b   :  { %v1175_v38 = vmax.f32 %v790_v4, %v1147_v45  ;;  %v1148_v42 = vsel %vm263_vm0, %v1146_v35, %v1147_v45  ;;  %v1177_v8 = vmax.f32 %v792_v17, %v1150_v40 }
 0x39c   :  { %v1174_v33 = vmax.f32 %v789_v59, %v1148_v42  ;;  %v1495_v29 = vpop.f32.mrf.mxu1  ;;  %v1151_v6 = vsel %vm263_vm0, %v1149_v22, %v1150_v40 }
 0x39d   :  { %v2112_v15 = vsel %vm1186_vm7, %v1175_v38, 0  ;;  %v1496_v62 = vadd.f32 %v1495_v29, %v1421_v37  ;;  %v2574_v1 = vsel %vm1186_vm7, %v1177_v8, 0  ;;  %v1725_v12 = vpop.f32.mrf.mxu0  ;;  %v1176_v53 = vmax.f32 %v791_v47, %v1151_v6 }
 0x39e   :  { %v12882_v16 = vand.u32 4294901760, %v2112_v15  ;;  %v12884_v21 = vand.u32 4294901760, %v1174_v33  ;;  %v10897_v30 = vpop.f32.mrf.mxu1  ;;  %v12904_v61 = vand.u32 4294901760, %v2574_v1 }
 0x39f   :  { %v1573_v60 = vadd.f32 %v1572_v39, %v1496_v62  ;;  %v10918_v28 = vpop.f32.mrf.mxu0  ;;  %v12908_v9 = vand.u32 4294901760, %v1176_v53 }
 0x3a0   :  { %10955 = vmatpush3.msra.mxu0 %v12882_v16  ;;  %v2221_v43 = vsub.f32 %v2112_v15, %v12882_v16  ;;  %v2228_v7 = vsub.f32 %v1174_v33, %v12884_v21  ;;  %v2683_v32 = vsub.f32 %v2574_v1, %v12904_v61 }
 0x3a1   :  { %10956 = vmatprep.subr.mxu0 %v12251_v63  ;;  %v2690_v55 = vsub.f32 %v1176_v53, %v12908_v9 }
 0x3a2   :  { %10957 = vmatpush3.msra.mxu0 %v12884_v21  ;;  %v2222_v14 = vand.u32 4294901760, %v2221_v43  ;;  %v2229_v49 = vand.u32 4294901760, %v2228_v7  ;;  %v1645_v41 = vpop.f32.mrf.mxu1  ;;  %v2684_v58 = vand.u32 4294901760, %v2683_v32 }
 0x3a3   :  { %10968 = vmatprep.subr.mxu0 %v12251_v63  ;;  %10959 = vmatmul.mubr.f32.vlgmr.msra.gmra.mxu0 %v12776_v20  ;;  %v12894_v18 = vadd.f32 %v1645_v41, %v1573_v60  ;;  %v1882_v3 = vpop.f32.mrf.mxu0  ;;  %v2691_v39 = vand.u32 4294901760, %v2690_v55  ;;  %v1083_v41 = vstv %s10095_s24  ;;  %s14484_s24 = sld [smem:[#allocation16 + $0x19]] }
 0x3a4   :  { %10969 = vmatpush3.msra.mxu0 %v2221_v43  ;;  %10972 = vmatprep.mubr.msk.f32.mxu0 %vm12252_vm4, %v12251_v63  ;;  %v2223_v23 = vsub.f32 %v2221_v43, %v2222_v14  ;;  %v2230_v34 = vsub.f32 %v2228_v7, %v2229_v49  ;;  %v10911_v52 = vpop.f32.mrf.mxu1  ;;  %v2685_v54 = vsub.f32 %v2683_v32, %v2684_v58 }
 0x3a5   :  { %10970 = vmatprep.subr.mxu0 %v12251_v63  ;;  %3965 = vrot.lane.b32.xlu0 %v12894_v18, %s12249_s9  ;;  %v10932_v27 = vpop.f32.mrf.mxu0  ;;  %v2692_v45 = vsub.f32 %v2690_v55, %v2691_v39 }
 0x3a6   :  { %10971 = vmatpush3.msra.mxu0 %v2228_v7  ;;  %v2224_v11 = vand.u32 4294901760, %v2223_v23  ;;  %v2231_v31 = vand.u32 4294901760, %v2230_v34  ;;  %v2686_v35 = vand.u32 4294901760, %v2685_v54  ;;  %v1077_v7 = vstv %s10093_s23  ;;  %s14476_s23 = sld [smem:[#allocation16 + $0x17]] }
 0x3a7   :  { %10982 = vmatprep.subr.mxu0 %v12251_v63  ;;  %10973 = vmatmul.mubr.f32.vlgmr.msra.gmra.mxu0 %v12763_v25  ;;  %v1806_v5 = vpop.f32.mrf.mxu1  ;;  %v2693_v47 = vand.u32 4294901760, %v2692_v45 }
 0x3a8   :  { %10962 = vmatpush3.msra.mxu1 %v2224_v11  ;;  %10983 = vmatpush3.msra.mxu0 %v2222_v14  ;;  %v1807_v4 = vadd.f32 %v1806_v5, %v1725_v12 }
 0x3a9   :  { %10963 = vmatprep.subr.mxu1 %v12251_v63  ;;  %10984 = vmatprep.subr.mxu0 %v12251_v63  ;;  %v10925_v19 = vpop.f32.mrf.mxu1 }
 0x3aa   :  { %10964 = vmatpush3.msra.mxu1 %v2231_v31  ;;  %10985 = vmatpush3.msra.mxu0 %v2229_v49  ;;  %v2034_v51 = vpop.f32.mrf.mxu0  ;;  %v1883_v2 = vadd.f32 %v1882_v3, %v1807_v4 }
 0x3ab   :  { %10966 = vmatmul.mubr.msk.f32.vlgmr.msra.gmra.mxu1 %vm1182_vm6, %v12759_v57  ;;  %10975 = vmatprep.subr.mxu1 %v12251_v63  ;;  %v1957_v44 = vpop.f32.mrf.mxu1 }
 0x3ac   :  { %10986 = vmatprep.mubr.msk.f32.mxu0 %vm12252_vm4, %v12251_v63  ;;  %10996 = vmatprep.subr.mxu0 %v12251_v63  ;;  %v10946_v50 = vpop.f32.mrf.mxu0  ;;  %v1958_v10 = vadd.f32 %v1957_v44, %v1883_v2 }
 0x3ad   :  { %10976 = vmatpush3.msra.mxu1 %v12882_v16  ;;  %10987 = vmatmul.mubr.msk.f32.vlgmr.msra.gmra.mxu0 %vm1182_vm6, %v12759_v57  ;;  %v10939_v56 = vpop.f32.mrf.mxu1 }
 0x3ae   :  { %10997 = vmatpush3.msra.mxu0 %v12904_v61  ;;  %10977 = vmatprep.subr.mxu1 %v12251_v63  ;;  %v2035_v37 = vadd.f32 %v2034_v51, %v1958_v10 }
 0x3af   :  { %10998 = vmatprep.subr.mxu0 %v12251_v63  ;;  %10978 = vmatpush3.msra.mxu1 %v12884_v21  ;;  %v2107_v59 = vpop.f32.mrf.mxu1 }
 0x3b0   :  { %10979 = vmatprep.mubr.msk.f32.mxu1 %vm12252_vm4, %v12251_v63  ;;  %10999 = vmatpush3.msra.mxu0 %v12908_v9  ;;  %v12960_v38 = vadd.f32 %v2107_v59, %v2035_v37 }
 0x3b1   :  { %10980 = vmatmul.mubr.f32.vlgmr.msra.gmra.mxu1 %v12770_v0  ;;  %10989 = vmatprep.subr.mxu1 %v12251_v63  ;;  %v10953_v17 = vpop.f32.mrf.mxu1 }
 0x3b2   :  { %11000 = vmatprep.mubr.msk.f32.mxu0 %vm12252_vm4, %v12251_v63  ;;  %11010 = vmatprep.subr.mxu0 %v12251_v63 }
 0x3b3   :  { %10990 = vmatpush3.msra.mxu1 %v12882_v16  ;;  %11001 = vmatmul.mubr.f32.vlgmr.msra.gmra.mxu0 %v12776_v20 }
 0x3b4   :  { %11011 = vmatpush3.msra.mxu0 %v2683_v32  ;;  %10991 = vmatprep.subr.mxu1 %v12251_v63 }
 0x3b5   :  { %11012 = vmatprep.subr.mxu0 %v12251_v63  ;;  %10992 = vmatpush3.msra.mxu1 %v12884_v21 }
 0x3b6   :  { %10993 = vmatprep.mubr.msk.f32.mxu1 %vm12252_vm4, %v12251_v63  ;;  %11013 = vmatpush3.msra.mxu0 %v2690_v55 }
 0x3b7   :  { %10994 = vmatmul.mubr.msk.f32.vlgmr.msra.gmra.mxu1 %vm1182_vm6, %v12759_v57  ;;  %11003 = vmatprep.subr.mxu1 %v12251_v63 }
 0x3b8   :  { %11014 = vmatprep.mubr.msk.f32.mxu0 %vm12252_vm4, %v12251_v63  ;;  %11024 = vmatprep.subr.mxu0 %v12251_v63 }
 0x3b9   :  { %11004 = vmatpush3.msra.mxu1 %v2686_v35  ;;  %11015 = vmatmul.mubr.f32.vlgmr.msra.gmra.mxu0 %v12763_v25 }
 0x3ba   :  { %11025 = vmatpush3.msra.mxu0 %v2684_v58  ;;  %11005 = vmatprep.subr.mxu1 %v12251_v63 }
 0x3bb   :  { %11026 = vmatprep.subr.mxu0 %v12251_v63  ;;  %11006 = vmatpush3.msra.mxu1 %v2693_v47 }
 0x3bc   :  { %11027 = vmatpush3.msra.mxu0 %v2691_v39  ;;  %11007 = vmatprep.mubr.msk.f32.mxu1 %vm12252_vm4, %v12251_v63 }
 0x3bd   :  { %11017 = vmatprep.subr.mxu1 %v12251_v63  ;;  %11008 = vmatmul.mubr.msk.f32.vlgmr.msra.gmra.mxu1 %vm1182_vm6, %v12759_v57 }
 0x3be   :  { %11018 = vmatpush3.msra.mxu1 %v12904_v61  ;;  %11021 = vmatprep.mubr.msk.f32.mxu1 %vm12252_vm4, %v12251_v63 }
 0x3bf   :  { %11019 = vmatprep.subr.mxu1 %v12251_v63  ;;  %11028 = vmatprep.mubr.msk.f32.mxu0 %vm12252_vm4, %v12251_v63 }
 0x3c0   :  { %11020 = vmatpush3.msra.mxu1 %v12908_v9  ;;  %11029 = vmatmul.mubr.msk.f32.vlgmr.msra.gmra.mxu0 %vm1182_vm6, %v12759_v57 }
 0x3c1   :  { %11031 = vmatprep.subr.mxu1 %v12251_v63  ;;  %11022 = vmatmul.mubr.f32.vlgmr.msra.gmra.mxu1 %v12770_v0 }
 0x3c2   :  { %11032 = vmatpush3.msra.mxu1 %v12904_v61  ;;  %11035 = vmatprep.mubr.msk.f32.mxu1 %vm12252_vm4, %v12251_v63 }
 0x3c3   :  { %11033 = vmatprep.subr.mxu1 %v12251_v63  ;;  %3967 = vrot.lane.b32.xlu1 %v12960_v38, %s12249_s9 }
 0x3c4   :  { %11034 = vmatpush3.msra.mxu1 %v12908_v9  ;;  %11038 = vmatprep.subr.mxu0 %v12251_v63 }
 0x3c5   :  { %11036 = vmatmul.mubr.msk.f32.vlgmr.msra.gmra.mxu1 %vm1182_vm6, %v12759_v57  ;;  %11042 = vmatprep.mubr.msk.f32.mxu0 %vm12252_vm4, %v12251_v63 }
 0x3c6   :  { %11045 = vmatprep.subr.mxu1 %v12251_v63  ;;  %11049 = vmatprep.mubr.msk.f32.mxu1 %vm12252_vm4, %v12251_v63 }
 0x417   :  { %v1065_v42 = vpop.xlane.xlu0 %1064 }
 0x418   :  { %v1066_v33 = vrot.slane %v1065_v42, 4 }
 0x41a   :  { %v1067_v40 = vadd.f32 %v1066_v33, %v1065_v42 }
 0x41c   :  { %v1068_v29 = vrot.slane %v1067_v40, 2 }
 0x41e   :  { %v1069_v15 = vadd.f32 %v1068_v29, %v1067_v40 }
 0x420   :  { %v1070_v62 = vrot.slane %v1069_v15, 1 }
 0x422   :  { %v1071_v16 = vadd.f32 %v1070_v62, %v1069_v15 }
 0x424   :  { %12074 = vpush %v1071_v16 }
 0x455   :  { %s12075_s0 = spop %12074 }
 0x456   :  { %v1073_v21 = vstv %s12075_s0  ;;  %s14473_s0 = sld [smem:[#allocation16 + $0x16]] }
 0x457   :  { %v1074_v22 = vmul.f32 0.00057603687, %v1073_v21 }
 0x459   :  { %v1075_v30 = vadd.f32 1e-05, %v1074_v22 }
 0x45b   :  { %12100 = vrsqrt.f32 %v1075_v30 }
 0x463   :  { %v2187_v60 = vpop.f32.mrf.mxu0 }
 0x465   :  { %v10960_v43 = vpop.f32.mrf.mxu0 }
 0x467   :  { %v2344_v8 = vpop.f32.mrf.mxu0 }
 0x468   :  { %v12101_v14 = vpop.eup %12100 }
 0x469   :  { %v1078_v49 = vmul.f32 %v12101_v14, %v1077_v7  ;;  %v10974_v6 = vpop.f32.mrf.mxu0 }
 0x46b   :  { %v2268_v23 = vpop.f32.mrf.mxu1  ;;  %v1080_v34 = vmul.f32 %v1078_v49, %v12852_v24  ;;  %v1079_v1 = vmul.f32 %v1078_v49, %v12848_v13  ;;  %v1082_v52 = vmul.f32 %v1078_v49, %v12860_v48  ;;  %v1081_v53 = vmul.f32 %v1078_v49, %v12856_v46 }
 0x46c   :  { %v2269_v12 = vadd.f32 %v2268_v23, %v2187_v60  ;;  %v13035_v23 = vmul.u32 2, %v12740_v36 }
 0x46d   :  { %v10967_v11 = vpop.f32.mrf.mxu1  ;;  %v2496_v28 = vpop.f32.mrf.mxu0  ;;  %v1085_v61 = vadd.f32 %v1083_v41, %v1080_v34  ;;  %v1084_v5 = vadd.f32 %v1083_v41, %v1079_v1  ;;  %v1087_v3 = vadd.f32 %v1083_v41, %v1082_v52  ;;  %v1086_v32 = vadd.f32 %v1083_v41, %v1081_v53 }
 0x46e   :  { %v2345_v31 = vadd.f32 %v2344_v8, %v2269_v12  ;;  %v1102_v41 = vadd.s32 56, %v12722_v26 }
 0x46f   :  { %v1153_v9 = vrot.slane %v1085_v61, 1  ;;  %v1152_v19 = vrot.slane %v1084_v5, 1  ;;  %v10988_v27 = vpop.f32.mrf.mxu0  ;;  %v1156_v48 = vrot.slane %v1087_v3, 1  ;;  %v1155_v39 = vrot.slane %v1086_v32, 1 }
 0x470   :  { %vm1111_vm8 = vcmp.eq.s32.totalorder %v1102_v41, %v13035_v23 }
 0x471   :  { %v2419_v44 = vpop.f32.mrf.mxu1  ;;  %v1179_v51 = vmax.f32 %v1085_v61, %v1153_v9  ;;  %v1154_v24 = vsel %vm263_vm0, %v1152_v19, %v1153_v9  ;;  %v1181_v45 = vmax.f32 %v1087_v3, %v1156_v48  ;;  %v1157_v42 = vsel %vm263_vm0, %v1155_v39, %v1156_v48  ;;  %v3966_v3 = vpop.permute.xlu0 %3965 }
 0x472   :  { %v2420_v13 = vadd.f32 %v2419_v44, %v2345_v31  ;;  %v1178_v55 = vmax.f32 %v1084_v5, %v1154_v24  ;;  %v1180_v16 = vmax.f32 %v1086_v32, %v1157_v42  ;;  %v13060_v5 = vsel %vm1111_vm8, 1.0, %v12251_v63 }
 0x473   :  { %v10981_v56 = vpop.f32.mrf.mxu1  ;;  %v3036_v46 = vsel %vm1186_vm7, %v1179_v51, 0  ;;  %v12988_v50 = vpop.f32.mrf.mxu0  ;;  %v3498_v62 = vsel %vm1186_vm7, %v1181_v45, 0  ;;  %v1100_v31 = vadd.s32 40, %v12722_v26  ;;  %v1099_v19 = vadd.s32 32, %v12722_v26 }
 0x474   :  { %v2497_v58 = vadd.f32 %v2496_v28, %v2420_v13  ;;  %v12990_v4 = vand.u32 4294901760, %v3036_v46  ;;  %v12992_v59 = vand.u32 4294901760, %v1178_v55  ;;  %v13014_v30 = vand.u32 4294901760, %v3498_v62 }
 0x475   :  { %v11002_v17 = vpop.f32.mrf.mxu0  ;;  %v13020_v7 = vand.u32 4294901760, %v1180_v16  ;;  %v1101_v28 = vadd.s32 48, %v12722_v26  ;;  %v3994_v27 = vsel %vm1186_vm7, %v13060_v5, 0  ;;  %v3983_v44 = vmax.f32 %v12894_v18, %v3966_v3 }
 0x476   :  { %11039 = vmatpush3.msra.mxu0 %v12990_v4  ;;  %v3145_v54 = vsub.f32 %v3036_v46, %v12990_v4  ;;  %v3152_v2 = vsub.f32 %v1178_v55, %v12992_v59  ;;  %v3607_v49 = vsub.f32 %v3498_v62, %v13014_v30  ;;  %vm13084_vm10 = vcmp.eq.s32.totalorder %v1100_v31, %v13035_v23 }
 0x477   :  { %v2569_v35 = vpop.f32.mrf.mxu1  ;;  %11040 = vmatprep.subr.mxu0 %v12251_v63  ;;  %v3614_v1 = vsub.f32 %v1180_v16, %v13020_v7  ;;  %vm13069_vm9 = vcmp.eq.s32.totalorder %v1101_v28, %v13035_v23  ;;  %v1098_v24 = vadd.s32 24, %v12722_v26  ;;  %v13090_v55 = vsub.f32 %v3994_v27, %v3994_v27 }
 0x478   :  { %v12998_v10 = vadd.f32 %v2569_v35, %v2497_v58  ;;  %11041 = vmatpush3.msra.mxu0 %v12992_v59  ;;  %v3146_v47 = vand.u32 4294901760, %v3145_v54  ;;  %v3153_v37 = vand.u32 4294901760, %v3152_v2  ;;  %v3608_v12 = vand.u32 4294901760, %v3607_v49 }
 0x479   :  { %11052 = vmatprep.subr.mxu0 %v12251_v63  ;;  %11043 = vmatmul.mubr.f32.vlgmr.msra.gmra.mxu0 %v12776_v20  ;;  %v10995_v33 = vpop.f32.mrf.mxu1  ;;  %v13004_v40 = vpop.f32.mrf.mxu0  ;;  %v3615_v53 = vand.u32 4294901760, %v3614_v1  ;;  %v10129_v18 = vsel %vm13069_vm9, 1.0, %v12251_v63  ;;  %v1097_v48 = vadd.s32 16, %v12722_v26  ;;  %vm13098_vm12 = vcmp.eq.s32.totalorder %v1099_v19, %v13035_v23 }
 0x47a   :  { %3969 = vrot.lane.b32.xlu1 %v12998_v10, %s12249_s9  ;;  %11053 = vmatpush3.msra.mxu0 %v3145_v54  ;;  %v3147_v29 = vsub.f32 %v3145_v54, %v3146_v47  ;;  %v3154_v15 = vsub.f32 %v3152_v2, %v3153_v37  ;;  %v3609_v61 = vsub.f32 %v3607_v49, %v3608_v12  ;;  %v3991_v46 = vsel %vm3989_vm11, %v3983_v44, 0  ;;  %v9544_v54 = vld [vmem:[#allocation17 + $0x18] sm:$0xf] }
 0x47b   :  { %11054 = vmatprep.subr.mxu0 %v12251_v63  ;;  %11056 = vmatprep.mubr.msk.f32.mxu0 %vm12252_vm4, %v12251_v63  ;;  %v11016_v21 = vpop.f32.mrf.mxu0  ;;  %v3616_v9 = vsub.f32 %v3614_v1, %v3615_v53  ;;  %v1096_v58 = vadd.s32 8, %v12722_v26  ;;  %vm13111_vm13 = vcmp.eq.s32.totalorder %v1098_v24, %v13035_v23  ;;  %v13121_v39 = vand.u32 4294901760, %v13090_v55 }
 0x47c   :  { %11055 = vmatpush3.msra.mxu0 %v3152_v2  ;;  %v3148_v22 = vand.u32 4294901760, %v3147_v29  ;;  %v3155_v43 = vand.u32 4294901760, %v3154_v15  ;;  %v3610_v32 = vand.u32 4294901760, %v3609_v61  ;;  %v10127_v17 = vsel %vm13098_vm12, 1.0, %v12251_v63 }
 0x47d   :  { %11066 = vmatprep.subr.mxu0 %v12251_v63  ;;  %11057 = vmatmul.mubr.f32.vlgmr.msra.gmra.mxu0 %v12763_v25  ;;  %v13016_v60 = vpop.f32.mrf.mxu1  ;;  %v3617_v13 = vand.u32 4294901760, %v3616_v9  ;;  %vm13130_vm14 = vcmp.eq.s32.totalorder %v1097_v48, %v13035_v23  ;;  %v13136_v45 = vand.u32 4294901760, %v3991_v46  ;;  %v13144_v35 = vsel %vm13111_vm13, 1.0, %v12251_v63 }
 0x47e   :  { %11046 = vmatpush3.msra.mxu1 %v3148_v22  ;;  %11067 = vmatpush3.msra.mxu0 %v3146_v47  ;;  %vm13147_vm15 = vcmp.eq.s32.totalorder %v1096_v58, %v13035_v23  ;;  %v13157_v42 = vsub.f32 %v10127_v17, %v10127_v17  ;;  %v4099_v33 = vsub.f32 %v13090_v55, %v13121_v39  ;;  %v10125_v29 = vsel %vm13130_vm14, 1.0, %v12251_v63 }
 0x47f   :  { %11047 = vmatprep.subr.mxu1 %v12251_v63  ;;  %11068 = vmatprep.subr.mxu0 %v12251_v63  ;;  %v11009_v8 = vpop.f32.mrf.mxu1  ;;  %v12253_v15 = vmov 1.0   ;;  %v13176_v16 = vsub.f32 %v13144_v35, %v13144_v35  ;;  %v13179_v21 = vsub.f32 %v3991_v46, %v13136_v45  ;;  %vm13183_vm0 = vcmp.eq.s32.totalorder %v12722_v26, %v13035_v23 }
 0x480   :  { %11048 = vmatpush3.msra.mxu1 %v3155_v43  ;;  %11069 = vmatpush3.msra.mxu0 %v3153_v37  ;;  %v13022_v14 = vpop.f32.mrf.mxu0  ;;  %v2731_v43 = vadd.f32 %v13016_v60, %v12988_v50  ;;  %v10124_v8 = vsel %vm13147_vm15, 1.0, %v12251_v63  ;;  %v13207_v50 = vand.u32 4294901760, %v4099_v33  ;;  %v10123_v23 = vsel %vm13183_vm0, 1.0, %v12251_v63 }
 0x481   :  { %11050 = vmatmul.mubr.msk.f32.vlgmr.msra.gmra.mxu1 %vm1182_vm6, %v12759_v57  ;;  %11059 = vmatprep.subr.mxu1 %v12251_v63  ;;  %v13028_v6 = vpop.f32.mrf.mxu1  ;;  %v13214_v60 = vand.u32 4294901760, %v13176_v16  ;;  %v13216_v41 = vsub.f32 %v10124_v8, %v10124_v8  ;;  %v9556_v47 = vsel %vm7630_vm3, %v9544_v54, 0  ;;  %vm9539_vm8 = vcmask 113664  }
 0x482   :  { %11070 = vmatprep.mubr.msk.f32.mxu0 %vm12252_vm4, %v12251_v63  ;;  %11080 = vmatprep.subr.mxu0 %v12251_v63  ;;  %v11030_v34 = vpop.f32.mrf.mxu0  ;;  %v14773_v22 = vand.u32 4294901760, %v9556_v47 }
 0x483   :  { %11060 = vmatpush3.msra.mxu1 %v12990_v4  ;;  %11071 = vmatmul.mubr.msk.f32.vlgmr.msra.gmra.mxu0 %vm1182_vm6, %v12759_v57  ;;  %v11023_v52 = vpop.f32.mrf.mxu1  ;;  %v4071_v34 = vand.u32 4294901760, %v13179_v21  ;;  %v13251_v28 = vand.u32 4294901760, %v13216_v41 }
 0x484   :  { %11081 = vmatpush3.msra.mxu0 %v13014_v30  ;;  %11061 = vmatprep.subr.mxu1 %v12251_v63 }
 0x485   :  { %11082 = vmatprep.subr.mxu0 %v12251_v63  ;;  %11062 = vmatpush3.msra.mxu1 %v12992_v59  ;;  %v13045_v36 = vpop.f32.mrf.mxu1  ;;  %v4072_v31 = vsub.f32 %v13179_v21, %v4071_v34  ;;  %v4141_v27 = vsub.f32 %v13216_v41, %v13251_v28 }
 0x486   :  { %11063 = vmatprep.mubr.msk.f32.mxu1 %vm12252_vm4, %v12251_v63  ;;  %11083 = vmatpush3.msra.mxu0 %v13020_v7 }
 0x487   :  { %11064 = vmatmul.mubr.f32.vlgmr.msra.gmra.mxu1 %v12770_v0  ;;  %11073 = vmatprep.subr.mxu1 %v12251_v63  ;;  %v11037_v11 = vpop.f32.mrf.mxu1 }
 0x488   :  { %11084 = vmatprep.mubr.msk.f32.mxu0 %vm12252_vm4, %v12251_v63  ;;  %11094 = vmatprep.subr.mxu0 %v12251_v63  ;;  %v4127_v11 = vsub.f32 %v13176_v16, %v13214_v60 }
 0x489   :  { %11074 = vmatpush3.msra.mxu1 %v12990_v4  ;;  %11085 = vmatmul.mubr.f32.vlgmr.msra.gmra.mxu0 %v12776_v20 }
 0x48a   :  { %11095 = vmatpush3.msra.mxu0 %v3607_v49  ;;  %11075 = vmatprep.subr.mxu1 %v12251_v63  ;;  %v13199_v49 = vand.u32 4294901760, %v13157_v42  ;;  %v13276_v19 = vand.u32 4294901760, %v4127_v11 }
 0x48b   :  { %11096 = vmatprep.subr.mxu0 %v12251_v63  ;;  %11076 = vmatpush3.msra.mxu1 %v12992_v59  ;;  %v13115_v59 = vsub.f32 %v10129_v18, %v10129_v18  ;;  %v13295_v18 = vand.u32 4294901760, %v4141_v27 }
 0x48c   :  { %11077 = vmatprep.mubr.msk.f32.mxu1 %vm12252_vm4, %v12251_v63  ;;  %11097 = vmatpush3.msra.mxu0 %v3614_v1  ;;  %v4120_v52 = vsub.f32 %v13157_v42, %v13199_v49 }
 0x48d   :  { %11078 = vmatmul.mubr.msk.f32.vlgmr.msra.gmra.mxu1 %vm1182_vm6, %v12759_v57  ;;  %11087 = vmatprep.subr.mxu1 %v12251_v63  ;;  %v13155_v37 = vand.u32 4294901760, %v13115_v59 }
 0x48e   :  { %11098 = vmatprep.mubr.msk.f32.mxu0 %vm12252_vm4, %v12251_v63  ;;  %11108 = vmatprep.subr.mxu0 %v12251_v63  ;;  %v13263_v3 = vand.u32 4294901760, %v4120_v52 }
 0x48f   :  { %11088 = vmatpush3.msra.mxu1 %v3610_v32  ;;  %11099 = vmatmul.mubr.f32.vlgmr.msra.gmra.mxu0 %v12763_v25  ;;  %v10128_v25 = vsel %vm13084_vm10, 1.0, %v12251_v63  ;;  %v4106_v26 = vsub.f32 %v13115_v59, %v13155_v37  ;;  %v4073_v32 = vand.u32 4294901760, %v4072_v31 }
 0x490   :  { %11109 = vmatpush3.msra.mxu0 %v3608_v12  ;;  %11089 = vmatprep.subr.mxu1 %v12251_v63  ;;  %v13134_v2 = vsub.f32 %v10128_v25, %v10128_v25 }
 0x491   :  { %11110 = vmatprep.subr.mxu0 %v12251_v63  ;;  %11090 = vmatpush3.msra.mxu1 %v3617_v13  ;;  %v13231_v1 = vand.u32 4294901760, %v4106_v26 }
 0x492   :  { %11091 = vmatprep.mubr.msk.f32.mxu1 %vm12252_vm4, %v12251_v63  ;;  %11111 = vmatpush3.msra.mxu0 %v3615_v53  ;;  %v13172_v62 = vand.u32 4294901760, %v13134_v2 }
 0x493   :  { %11092 = vmatmul.mubr.msk.f32.vlgmr.msra.gmra.mxu1 %vm1182_vm6, %v12759_v57  ;;  %11101 = vmatprep.subr.mxu1 %v12251_v63 }
 0x494   :  { %11112 = vmatprep.mubr.msk.f32.mxu0 %vm12252_vm4, %v12251_v63  ;;  %11122 = vmatprep.subr.mxu0 %v12251_v63 }
 0x495   :  { %11102 = vmatpush3.msra.mxu1 %v13014_v30  ;;  %11113 = vmatmul.mubr.msk.f32.vlgmr.msra.gmra.mxu0 %vm1182_vm6, %v12759_v57 }
 0x496   :  { %11123 = vmatpush3.msk.msra.mxu0 %vm1186_vm7, %v13060_v5  ;;  %11103 = vmatprep.subr.mxu1 %v12251_v63 }
 0x497   :  { %11124 = vmatprep.subr.mxu0 %v12251_v63  ;;  %11104 = vmatpush3.msra.mxu1 %v13020_v7 }
 0x498   :  { %11105 = vmatprep.mubr.msk.f32.mxu1 %vm12252_vm4, %v12251_v63  ;;  %11125 = vmatpush3.msk.msra.mxu0 %vm13069_vm9, %v12253_v15 }
 0x499   :  { %11106 = vmatmul.mubr.f32.vlgmr.msra.gmra.mxu1 %v12770_v0  ;;  %11115 = vmatprep.subr.mxu1 %v12251_v63  ;;  %v13201_v0 = vsub.f32 %v10125_v29, %v10125_v29 }
 0x49a   :  { %11126 = vmatprep.subr.mxu0 %v12251_v63  ;;  %11116 = vmatpush3.msra.mxu1 %v13014_v30  ;;  %v4113_v30 = vsub.f32 %v13134_v2, %v13172_v62 }
 0x49b   :  { %11127 = vmatpush3.msk.msra.mxu0 %vm13084_vm10, %v12253_v15  ;;  %11117 = vmatprep.subr.mxu1 %v12251_v63  ;;  %v13236_v12 = vand.u32 4294901760, %v13201_v0 }
 0x49c   :  { %11128 = vmatprep.subr.mxu0 %v12251_v63  ;;  %11118 = vmatpush3.msra.mxu1 %v13020_v7  ;;  %v2807_v7 = vadd.f32 %v13004_v40, %v2731_v43  ;;  %v13242_v40 = vsub.f32 %v10123_v23, %v10123_v23  ;;  %v13246_v53 = vand.u32 4294901760, %v4113_v30 }
 0x49d   :  { %11119 = vmatprep.mubr.msk.f32.mxu1 %vm12252_vm4, %v12251_v63  ;;  %11129 = vmatpush3.msk.msra.mxu0 %vm13098_vm12, %v12253_v15  ;;  %v4134_v9 = vsub.f32 %v13201_v0, %v13236_v12 }
 0x49e   :  { %11120 = vmatmul.mubr.msk.f32.vlgmr.msra.gmra.mxu1 %vm1182_vm6, %v12759_v57  ;;  %11130 = vmatprep.subr.mxu0 %v12251_v63  ;;  %v2882_v61 = vadd.f32 %v13028_v6, %v2807_v7  ;;  %v13272_v6 = vand.u32 4294901760, %v13242_v40  ;;  %vm9519_vm6 = vcmask 107520  }
 0x49f   :  { %11141 = vmatprep.subr.mxu1 %v12251_v63  ;;  %11131 = vmatpush3.msk.msra.mxu0 %vm13111_vm13, %v12253_v15  ;;  %v13288_v24 = vand.u32 4294901760, %v4134_v9 }
 0x4a0   :  { %11142 = vmatpush3.msra.mxu1 %v13207_v50  ;;  %11132 = vmatprep.subr.mxu0 %v12251_v63  ;;  %v2959_v44 = vadd.f32 %v13022_v14, %v2882_v61  ;;  %v4148_v13 = vsub.f32 %v13242_v40, %v13272_v6 }
 0x4a1   :  { %11143 = vmatprep.subr.mxu1 %v12251_v63  ;;  %11133 = vmatpush3.msk.msra.mxu0 %vm13130_vm14, %v12253_v15 }
 0x4a2   :  { %11144 = vmatpush3.msra.mxu1 %v13231_v1  ;;  %11134 = vmatprep.subr.mxu0 %v12251_v63  ;;  %v13300_v14 = vadd.f32 %v13045_v36, %v2959_v44  ;;  %v13306_v48 = vand.u32 4294901760, %v4148_v13  ;;  %v3968_v36 = vpop.permute.xlu1 %3967 }
 0x4a3   :  { %11145 = vmatprep.subr.mxu1 %v12251_v63  ;;  %11135 = vmatpush3.msk.msra.mxu0 %vm13147_vm15, %v12253_v15  ;;  %v3984_v25 = vmax.f32 %v12960_v38, %v3968_v36 }
 0x4a4   :  { %11146 = vmatpush3.msra.mxu1 %v13246_v53  ;;  %11136 = vmatprep.subr.mxu0 %v12251_v63 }
 0x4a5   :  { %11147 = vmatprep.subr.mxu1 %v12251_v63  ;;  %11137 = vmatpush3.msk.msra.mxu0 %vm13183_vm0, %v12253_v15  ;;  %v4534_v38 = vsel %vm3989_vm11, %v3984_v25, 0 }
 0x4a6   :  { %11138 = vmatprep.mubr.msk.f32.mxu0 %vm12252_vm4, %v12251_v63  ;;  %11148 = vmatpush3.msra.mxu1 %v13263_v3  ;;  %v13398_v46 = vand.u32 4294901760, %v4534_v38 }
 0x4a7   :  { %11139 = vmatmul.mubr.f32.vlgmr.msra.gmra.mxu0 %v4073_v32  ;;  %11149 = vmatprep.subr.mxu1 %v12251_v63 }
 0x4a8   :  { %11160 = vmatprep.subr.mxu0 %v12251_v63  ;;  %11150 = vmatpush3.msra.mxu1 %v13276_v19  ;;  %v13414_v58 = vsub.f32 %v4534_v38, %v13398_v46 }
 0x4a9   :  { %11161 = vmatpush3.msra.mxu0 %v13090_v55  ;;  %11151 = vmatprep.subr.mxu1 %v12251_v63 }
 0x4aa   :  { %11162 = vmatprep.subr.mxu0 %v12251_v63  ;;  %11152 = vmatpush3.msra.mxu1 %v13288_v24  ;;  %v4611_v17 = vand.u32 4294901760, %v13414_v58 }
 0x4ab   :  { %11163 = vmatpush3.msra.mxu0 %v13115_v59  ;;  %11153 = vmatprep.subr.mxu1 %v12251_v63 }
 0x4ac   :  { %11164 = vmatprep.subr.mxu0 %v12251_v63  ;;  %11154 = vmatpush3.msra.mxu1 %v13295_v18  ;;  %v4612_v33 = vsub.f32 %v13414_v58, %v4611_v17 }
 0x4ad   :  { %11165 = vmatpush3.msra.mxu0 %v13134_v2  ;;  %3971 = vrot.lane.b32.xlu1 %v13300_v14, %s12249_s9 }
 0x4ae   :  { %11155 = vmatprep.subr.mxu1 %v12251_v63  ;;  %11166 = vmatprep.subr.mxu0 %v12251_v63 }
 0x4af   :  { %11156 = vmatpush3.msra.mxu1 %v13306_v48  ;;  %11157 = vmatprep.mubr.msk.f32.mxu1 %vm12252_vm4, %v12251_v63 }
 0x4b0   :  { %11167 = vmatpush3.msra.mxu0 %v13157_v42  ;;  %11158 = vmatmul.mubr.f32.vlgmr.msra.gmra.mxu1 %v13136_v45 }
 0x4b1   :  { %11168 = vmatprep.subr.mxu0 %v12251_v63  ;;  %11179 = vmatprep.subr.mxu1 %v12251_v63 }
 0x4b2   :  { %11169 = vmatpush3.msra.mxu0 %v13176_v16  ;;  %11180 = vmatpush3.msk.msra.mxu1 %vm1186_vm7, %v13060_v5 }
 0x4b3   :  { %11170 = vmatprep.subr.mxu0 %v12251_v63  ;;  %11181 = vmatprep.subr.mxu1 %v12251_v63 }
 0x4b4   :  { %11171 = vmatpush3.msra.mxu0 %v13201_v0  ;;  %11182 = vmatpush3.msk.msra.mxu1 %vm13069_vm9, %v12253_v15 }
 0x4b5   :  { %11172 = vmatprep.subr.mxu0 %v12251_v63  ;;  %11183 = vmatprep.subr.mxu1 %v12251_v63 }
 0x4b6   :  { %11173 = vmatpush3.msra.mxu0 %v13216_v41  ;;  %11184 = vmatpush3.msk.msra.mxu1 %vm13084_vm10, %v12253_v15 }
 0x4b7   :  { %11174 = vmatprep.subr.mxu0 %v12251_v63  ;;  %11185 = vmatprep.subr.mxu1 %v12251_v63 }
 0x4b8   :  { %11175 = vmatpush3.msra.mxu0 %v13242_v40  ;;  %11176 = vmatprep.mubr.msk.f32.mxu0 %vm12252_vm4, %v12251_v63 }
 0x4b9   :  { %11186 = vmatpush3.msk.msra.mxu1 %vm13098_vm12, %v12253_v15  ;;  %11177 = vmatmul.mubr.f32.vlgmr.msra.gmra.mxu0 %v13179_v21 }
 0x4ba   :  { %11187 = vmatprep.subr.mxu1 %v12251_v63  ;;  %11198 = vmatprep.subr.mxu0 %v12251_v63 }
 0x4bb   :  { %11188 = vmatpush3.msk.msra.mxu1 %vm13111_vm13, %v12253_v15  ;;  %11199 = vmatpush3.msra.mxu0 %v13121_v39 }
 0x4bc   :  { %11189 = vmatprep.subr.mxu1 %v12251_v63  ;;  %11200 = vmatprep.subr.mxu0 %v12251_v63 }
 0x4bd   :  { %11190 = vmatpush3.msk.msra.mxu1 %vm13130_vm14, %v12253_v15  ;;  %11201 = vmatpush3.msra.mxu0 %v13155_v37 }
 0x4be   :  { %11191 = vmatprep.subr.mxu1 %v12251_v63  ;;  %11202 = vmatprep.subr.mxu0 %v12251_v63 }
 0x4bf   :  { %11192 = vmatpush3.msk.msra.mxu1 %vm13147_vm15, %v12253_v15  ;;  %11203 = vmatpush3.msra.mxu0 %v13172_v62 }
 0x4c0   :  { %11193 = vmatprep.subr.mxu1 %v12251_v63  ;;  %11204 = vmatprep.subr.mxu0 %v12251_v63 }
 0x4c1   :  { %11194 = vmatpush3.msk.msra.mxu1 %vm13183_vm0, %v12253_v15  ;;  %11195 = vmatprep.mubr.msk.f32.mxu1 %vm12252_vm4, %v12251_v63 }
 0x4c2   :  { %11205 = vmatpush3.msra.mxu0 %v13199_v49  ;;  %11196 = vmatmul.mubr.f32.vlgmr.msra.gmra.mxu1 %v4071_v34 }
 0x4c3   :  { %11206 = vmatprep.subr.mxu0 %v12251_v63  ;;  %11217 = vmatprep.subr.mxu1 %v12251_v63 }
 0x4c4   :  { %11207 = vmatpush3.msra.mxu0 %v13214_v60  ;;  %11218 = vmatpush3.msk.msra.mxu1 %vm1186_vm7, %v13060_v5 }
 0x4c5   :  { %11208 = vmatprep.subr.mxu0 %v12251_v63  ;;  %11219 = vmatprep.subr.mxu1 %v12251_v63 }
 0x4c6   :  { %11209 = vmatpush3.msra.mxu0 %v13236_v12  ;;  %11220 = vmatpush3.msk.msra.mxu1 %vm13069_vm9, %v12253_v15 }
 0x4c7   :  { %11210 = vmatprep.subr.mxu0 %v12251_v63  ;;  %11221 = vmatprep.subr.mxu1 %v12251_v63 }
 0x4c8   :  { %11211 = vmatpush3.msra.mxu0 %v13251_v28  ;;  %11222 = vmatpush3.msk.msra.mxu1 %vm13084_vm10, %v12253_v15 }
 0x4c9   :  { %11212 = vmatprep.subr.mxu0 %v12251_v63  ;;  %11223 = vmatprep.subr.mxu1 %v12251_v63 }
 0x4ca   :  { %11213 = vmatpush3.msra.mxu0 %v13272_v6  ;;  %11214 = vmatprep.mubr.msk.f32.mxu0 %vm12252_vm4, %v12251_v63 }
 0x4cb   :  { %11224 = vmatpush3.msk.msra.mxu1 %vm13098_vm12, %v12253_v15  ;;  %11215 = vmatmul.mubr.f32.vlgmr.msra.gmra.mxu0 %v13136_v45 }
 0x4cc   :  { %11225 = vmatprep.subr.mxu1 %v12251_v63  ;;  %11236 = vmatprep.subr.mxu0 %v12251_v63 }
 0x4cd   :  { %11226 = vmatpush3.msk.msra.mxu1 %vm13111_vm13, %v12253_v15  ;;  %11237 = vmatpush3.msk.msra.mxu0 %vm1186_vm7, %v13060_v5 }
 0x4ce   :  { %11227 = vmatprep.subr.mxu1 %v12251_v63  ;;  %11238 = vmatprep.subr.mxu0 %v12251_v63 }
 0x4cf   :  { %11228 = vmatpush3.msk.msra.mxu1 %vm13130_vm14, %v12253_v15  ;;  %11239 = vmatpush3.msk.msra.mxu0 %vm13069_vm9, %v12253_v15 }
 0x4d0   :  { %11229 = vmatprep.subr.mxu1 %v12251_v63  ;;  %11240 = vmatprep.subr.mxu0 %v12251_v63 }
 0x4d1   :  { %11230 = vmatpush3.msk.msra.mxu1 %vm13147_vm15, %v12253_v15  ;;  %11241 = vmatpush3.msk.msra.mxu0 %vm13084_vm10, %v12253_v15 }
 0x4d2   :  { %11231 = vmatprep.subr.mxu1 %v12251_v63  ;;  %11242 = vmatprep.subr.mxu0 %v12251_v63 }
 0x4d3   :  { %11232 = vmatpush3.msk.msra.mxu1 %vm13183_vm0, %v12253_v15  ;;  %11233 = vmatprep.mubr.msk.f32.mxu1 %vm12252_vm4, %v12251_v63 }
 0x4d4   :  { %11243 = vmatpush3.msk.msra.mxu0 %vm13098_vm12, %v12253_v15  ;;  %11234 = vmatmul.mubr.f32.vlgmr.msra.gmra.mxu1 %v13136_v45  ;;  %v4613_v45 = vand.u32 4294901760, %v4612_v33 }
 0x4d5   :  { %11244 = vmatprep.subr.mxu0 %v12251_v63  ;;  %11255 = vmatprep.subr.mxu1 %v12251_v63 }
 0x4d6   :  { %11245 = vmatpush3.msk.msra.mxu0 %vm13111_vm13, %v12253_v15  ;;  %11256 = vmatpush3.msra.mxu1 %v13207_v50 }
 0x4d7   :  { %11246 = vmatprep.subr.mxu0 %v12251_v63  ;;  %11257 = vmatprep.subr.mxu1 %v12251_v63 }
 0x4d8   :  { %11247 = vmatpush3.msk.msra.mxu0 %vm13130_vm14, %v12253_v15  ;;  %11258 = vmatpush3.msra.mxu1 %v13231_v1 }
 0x4d9   :  { %11248 = vmatprep.subr.mxu0 %v12251_v63  ;;  %11259 = vmatprep.subr.mxu1 %v12251_v63 }
 0x4da   :  { %11249 = vmatpush3.msk.msra.mxu0 %vm13147_vm15, %v12253_v15  ;;  %11260 = vmatpush3.msra.mxu1 %v13246_v53 }
 0x4db   :  { %11250 = vmatprep.subr.mxu0 %v12251_v63  ;;  %11261 = vmatprep.subr.mxu1 %v12251_v63 }
 0x4dc   :  { %11251 = vmatpush3.msk.msra.mxu0 %vm13183_vm0, %v12253_v15  ;;  %11252 = vmatprep.mubr.msk.f32.mxu0 %vm12252_vm4, %v12251_v63 }
 0x4dd   :  { %11262 = vmatpush3.msra.mxu1 %v13263_v3  ;;  %11253 = vmatmul.mubr.f32.vlgmr.msra.gmra.mxu0 %v4613_v45 }
 0x4de   :  { %11263 = vmatprep.subr.mxu1 %v12251_v63  ;;  %11274 = vmatprep.subr.mxu0 %v12251_v63 }
 0x4df   :  { %11264 = vmatpush3.msra.mxu1 %v13276_v19  ;;  %11275 = vmatpush3.msra.mxu0 %v13090_v55 }
 0x4e0   :  { %11265 = vmatprep.subr.mxu1 %v12251_v63  ;;  %11276 = vmatprep.subr.mxu0 %v12251_v63 }
 0x4e1   :  { %11266 = vmatpush3.msra.mxu1 %v13288_v24  ;;  %11277 = vmatpush3.msra.mxu0 %v13115_v59 }
 0x4e2   :  { %11267 = vmatprep.subr.mxu1 %v12251_v63  ;;  %11278 = vmatprep.subr.mxu0 %v12251_v63 }
 0x4e3   :  { %11268 = vmatpush3.msra.mxu1 %v13295_v18  ;;  %11279 = vmatpush3.msra.mxu0 %v13134_v2 }
 0x4e4   :  { %11269 = vmatprep.subr.mxu1 %v12251_v63  ;;  %11280 = vmatprep.subr.mxu0 %v12251_v63 }
 0x4e5   :  { %11270 = vmatpush3.msra.mxu1 %v13306_v48  ;;  %11271 = vmatprep.mubr.msk.f32.mxu1 %vm12252_vm4, %v12251_v63 }
 0x4e6   :  { %11281 = vmatpush3.msra.mxu0 %v13157_v42  ;;  %11272 = vmatmul.mubr.f32.vlgmr.msra.gmra.mxu1 %v13398_v46 }
 0x4e7   :  { %11282 = vmatprep.subr.mxu0 %v12251_v63  ;;  %11293 = vmatprep.subr.mxu1 %v12251_v63 }
 0x4e8   :  { %11283 = vmatpush3.msra.mxu0 %v13176_v16  ;;  %11294 = vmatpush3.msk.msra.mxu1 %vm1186_vm7, %v13060_v5 }
 0x4e9   :  { %11284 = vmatprep.subr.mxu0 %v12251_v63  ;;  %11295 = vmatprep.subr.mxu1 %v12251_v63 }
 0x4ea   :  { %11285 = vmatpush3.msra.mxu0 %v13201_v0  ;;  %11296 = vmatpush3.msk.msra.mxu1 %vm13069_vm9, %v12253_v15 }
 0x4eb   :  { %11286 = vmatprep.subr.mxu0 %v12251_v63  ;;  %11297 = vmatprep.subr.mxu1 %v12251_v63 }
 0x4ec   :  { %11287 = vmatpush3.msra.mxu0 %v13216_v41  ;;  %11298 = vmatpush3.msk.msra.mxu1 %vm13084_vm10, %v12253_v15  ;;  %v3970_v29 = vpop.permute.xlu1 %3969 }
 0x4ed   :  { %11288 = vmatprep.subr.mxu0 %v12251_v63  ;;  %11299 = vmatprep.subr.mxu1 %v12251_v63  ;;  %v3985_v21 = vmax.f32 %v12998_v10, %v3970_v29 }
 0x4ee   :  { %11289 = vmatpush3.msra.mxu0 %v13242_v40  ;;  %11290 = vmatprep.mubr.msk.f32.mxu0 %vm12252_vm4, %v12251_v63 }
 0x4ef   :  { %11300 = vmatpush3.msk.msra.mxu1 %vm13098_vm12, %v12253_v15  ;;  %11291 = vmatmul.mubr.f32.vlgmr.msra.gmra.mxu0 %v13414_v58  ;;  %v5074_v43 = vsel %vm3989_vm11, %v3985_v21, 0 }
 0x4f0   :  { %11301 = vmatprep.subr.mxu1 %v12251_v63  ;;  %11312 = vmatprep.subr.mxu0 %v12251_v63  ;;  %v13568_v10 = vand.u32 4294901760, %v5074_v43 }
 0x4f1   :  { %11302 = vmatpush3.msk.msra.mxu1 %vm13111_vm13, %v12253_v15  ;;  %11313 = vmatpush3.msra.mxu0 %v13121_v39 }
 0x4f2   :  { %11303 = vmatprep.subr.mxu1 %v12251_v63  ;;  %11314 = vmatprep.subr.mxu0 %v12251_v63  ;;  %v13584_v8 = vsub.f32 %v5074_v43, %v13568_v10 }
 0x4f3   :  { %11304 = vmatpush3.msk.msra.mxu1 %vm13130_vm14, %v12253_v15  ;;  %11315 = vmatpush3.msra.mxu0 %v13155_v37 }
 0x4f4   :  { %11305 = vmatprep.subr.mxu1 %v12251_v63  ;;  %11316 = vmatprep.subr.mxu0 %v12251_v63  ;;  %v5151_v26 = vand.u32 4294901760, %v13584_v8 }
 0x4f5   :  { %11306 = vmatpush3.msk.msra.mxu1 %vm13147_vm15, %v12253_v15  ;;  %11317 = vmatpush3.msra.mxu0 %v13172_v62 }
 0x4f6   :  { %11307 = vmatprep.subr.mxu1 %v12251_v63  ;;  %11318 = vmatprep.subr.mxu0 %v12251_v63  ;;  %v5152_v30 = vsub.f32 %v13584_v8, %v5151_v26 }
 0x4f7   :  { %11308 = vmatpush3.msk.msra.mxu1 %vm13183_vm0, %v12253_v15  ;;  %11309 = vmatprep.mubr.msk.f32.mxu1 %vm12252_vm4, %v12251_v63 }
 0x4f8   :  { %11319 = vmatpush3.msra.mxu0 %v13199_v49  ;;  %11310 = vmatmul.mubr.f32.vlgmr.msra.gmra.mxu1 %v4611_v17  ;;  %v5153_v23 = vand.u32 4294901760, %v5152_v30 }
 0x4f9   :  { %11320 = vmatprep.subr.mxu0 %v12251_v63  ;;  %11331 = vmatprep.subr.mxu1 %v12251_v63 }
 0x4fa   :  { %11321 = vmatpush3.msra.mxu0 %v13214_v60  ;;  %11332 = vmatpush3.msk.msra.mxu1 %vm1186_vm7, %v13060_v5 }
 0x4fb   :  { %11322 = vmatprep.subr.mxu0 %v12251_v63  ;;  %11333 = vmatprep.subr.mxu1 %v12251_v63 }
 0x4fc   :  { %11323 = vmatpush3.msra.mxu0 %v13236_v12  ;;  %11334 = vmatpush3.msk.msra.mxu1 %vm13069_vm9, %v12253_v15 }
 0x4fd   :  { %11324 = vmatprep.subr.mxu0 %v12251_v63  ;;  %11335 = vmatprep.subr.mxu1 %v12251_v63 }
 0x4fe   :  { %11325 = vmatpush3.msra.mxu0 %v13251_v28  ;;  %11336 = vmatpush3.msk.msra.mxu1 %vm13084_vm10, %v12253_v15 }
 0x4ff   :  { %11326 = vmatprep.subr.mxu0 %v12251_v63  ;;  %11337 = vmatprep.subr.mxu1 %v12251_v63 }
 0x500   :  { %11327 = vmatpush3.msra.mxu0 %v13272_v6  ;;  %11328 = vmatprep.mubr.msk.f32.mxu0 %vm12252_vm4, %v12251_v63 }
 0x501   :  { %11338 = vmatpush3.msk.msra.mxu1 %vm13098_vm12, %v12253_v15  ;;  %11329 = vmatmul.mubr.f32.vlgmr.msra.gmra.mxu0 %v13398_v46 }
 0x502   :  { %11339 = vmatprep.subr.mxu1 %v12251_v63  ;;  %11350 = vmatprep.subr.mxu0 %v12251_v63 }
 0x503   :  { %11340 = vmatpush3.msk.msra.mxu1 %vm13111_vm13, %v12253_v15  ;;  %11351 = vmatpush3.msk.msra.mxu0 %vm1186_vm7, %v13060_v5 }
 0x504   :  { %11341 = vmatprep.subr.mxu1 %v12251_v63  ;;  %11352 = vmatprep.subr.mxu0 %v12251_v63 }
 0x505   :  { %11342 = vmatpush3.msk.msra.mxu1 %vm13130_vm14, %v12253_v15  ;;  %11353 = vmatpush3.msk.msra.mxu0 %vm13069_vm9, %v12253_v15 }
 0x506   :  { %11343 = vmatprep.subr.mxu1 %v12251_v63  ;;  %11354 = vmatprep.subr.mxu0 %v12251_v63 }
 0x507   :  { %11344 = vmatpush3.msk.msra.mxu1 %vm13147_vm15, %v12253_v15  ;;  %11355 = vmatpush3.msk.msra.mxu0 %vm13084_vm10, %v12253_v15 }
 0x508   :  { %11345 = vmatprep.subr.mxu1 %v12251_v63  ;;  %11356 = vmatprep.subr.mxu0 %v12251_v63 }
 0x509   :  { %11346 = vmatpush3.msk.msra.mxu1 %vm13183_vm0, %v12253_v15  ;;  %11347 = vmatprep.mubr.msk.f32.mxu1 %vm12252_vm4, %v12251_v63 }
 0x50a   :  { %11357 = vmatpush3.msk.msra.mxu0 %vm13098_vm12, %v12253_v15  ;;  %11348 = vmatmul.mubr.f32.vlgmr.msra.gmra.mxu1 %v13398_v46 }
 0x50b   :  { %11358 = vmatprep.subr.mxu0 %v12251_v63  ;;  %11369 = vmatprep.subr.mxu1 %v12251_v63 }
 0x50c   :  { %11359 = vmatpush3.msk.msra.mxu0 %vm13111_vm13, %v12253_v15  ;;  %11370 = vmatpush3.msra.mxu1 %v13207_v50 }
 0x50d   :  { %11360 = vmatprep.subr.mxu0 %v12251_v63  ;;  %11371 = vmatprep.subr.mxu1 %v12251_v63 }
 0x50e   :  { %11361 = vmatpush3.msk.msra.mxu0 %vm13130_vm14, %v12253_v15  ;;  %11372 = vmatpush3.msra.mxu1 %v13231_v1 }
 0x50f   :  { %11362 = vmatprep.subr.mxu0 %v12251_v63  ;;  %11373 = vmatprep.subr.mxu1 %v12251_v63 }
 0x510   :  { %11363 = vmatpush3.msk.msra.mxu0 %vm13147_vm15, %v12253_v15  ;;  %11374 = vmatpush3.msra.mxu1 %v13246_v53 }
 0x511   :  { %11364 = vmatprep.subr.mxu0 %v12251_v63  ;;  %11375 = vmatprep.subr.mxu1 %v12251_v63 }
 0x512   :  { %11365 = vmatpush3.msk.msra.mxu0 %vm13183_vm0, %v12253_v15  ;;  %11366 = vmatprep.mubr.msk.f32.mxu0 %vm12252_vm4, %v12251_v63 }
 0x513   :  { %11376 = vmatpush3.msra.mxu1 %v13263_v3  ;;  %11367 = vmatmul.mubr.f32.vlgmr.msra.gmra.mxu0 %v5153_v23 }
 0x514   :  { %11377 = vmatprep.subr.mxu1 %v12251_v63  ;;  %11388 = vmatprep.subr.mxu0 %v12251_v63 }
 0x515   :  { %11378 = vmatpush3.msra.mxu1 %v13276_v19  ;;  %11389 = vmatpush3.msra.mxu0 %v13090_v55 }
 0x516   :  { %11379 = vmatprep.subr.mxu1 %v12251_v63  ;;  %11390 = vmatprep.subr.mxu0 %v12251_v63 }
 0x517   :  { %11380 = vmatpush3.msra.mxu1 %v13288_v24  ;;  %11391 = vmatpush3.msra.mxu0 %v13115_v59 }
 0x518   :  { %11381 = vmatprep.subr.mxu1 %v12251_v63  ;;  %11392 = vmatprep.subr.mxu0 %v12251_v63 }
 0x519   :  { %11382 = vmatpush3.msra.mxu1 %v13295_v18  ;;  %11393 = vmatpush3.msra.mxu0 %v13134_v2 }
 0x51a   :  { %11383 = vmatprep.subr.mxu1 %v12251_v63  ;;  %11394 = vmatprep.subr.mxu0 %v12251_v63 }
 0x51b   :  { %11384 = vmatpush3.msra.mxu1 %v13306_v48  ;;  %11385 = vmatprep.mubr.msk.f32.mxu1 %vm12252_vm4, %v12251_v63 }
 0x51c   :  { %11395 = vmatpush3.msra.mxu0 %v13157_v42  ;;  %11386 = vmatmul.mubr.f32.vlgmr.msra.gmra.mxu1 %v13568_v10 }
 0x51d   :  { %11396 = vmatprep.subr.mxu0 %v12251_v63  ;;  %11407 = vmatprep.subr.mxu1 %v12251_v63 }
 0x51e   :  { %11397 = vmatpush3.msra.mxu0 %v13176_v16  ;;  %11408 = vmatpush3.msk.msra.mxu1 %vm1186_vm7, %v13060_v5 }
 0x51f   :  { %11398 = vmatprep.subr.mxu0 %v12251_v63  ;;  %11409 = vmatprep.subr.mxu1 %v12251_v63  ;;  %v3972_v34 = vpop.permute.xlu1 %3971 }
 0x520   :  { %11399 = vmatpush3.msra.mxu0 %v13201_v0  ;;  %11410 = vmatpush3.msk.msra.mxu1 %vm13069_vm9, %v12253_v15  ;;  %v3986_v7 = vmax.f32 %v13300_v14, %v3972_v34 }
 0x521   :  { %11400 = vmatprep.subr.mxu0 %v12251_v63  ;;  %11411 = vmatprep.subr.mxu1 %v12251_v63 }
 0x522   :  { %11401 = vmatpush3.msra.mxu0 %v13216_v41  ;;  %11412 = vmatpush3.msk.msra.mxu1 %vm13084_vm10, %v12253_v15  ;;  %v5614_v52 = vsel %vm3989_vm11, %v3986_v7, 0 }
 0x523   :  { %11402 = vmatprep.subr.mxu0 %v12251_v63  ;;  %11413 = vmatprep.subr.mxu1 %v12251_v63  ;;  %v13738_v11 = vand.u32 4294901760, %v5614_v52 }
 0x524   :  { %11403 = vmatpush3.msra.mxu0 %v13242_v40  ;;  %11404 = vmatprep.mubr.msk.f32.mxu0 %vm12252_vm4, %v12251_v63 }
 0x525   :  { %11414 = vmatpush3.msk.msra.mxu1 %vm13098_vm12, %v12253_v15  ;;  %11405 = vmatmul.mubr.f32.vlgmr.msra.gmra.mxu0 %v13584_v8  ;;  %v13756_v31 = vsub.f32 %v5614_v52, %v13738_v11 }
 0x526   :  { %11415 = vmatprep.subr.mxu1 %v12251_v63  ;;  %11426 = vmatprep.subr.mxu0 %v12251_v63 }
 0x527   :  { %11416 = vmatpush3.msk.msra.mxu1 %vm13111_vm13, %v12253_v15  ;;  %11427 = vmatpush3.msra.mxu0 %v13121_v39  ;;  %v5691_v32 = vand.u32 4294901760, %v13756_v31 }
 0x528   :  { %11417 = vmatprep.subr.mxu1 %v12251_v63  ;;  %11428 = vmatprep.subr.mxu0 %v12251_v63 }
 0x529   :  { %11418 = vmatpush3.msk.msra.mxu1 %vm13130_vm14, %v12253_v15  ;;  %11429 = vmatpush3.msra.mxu0 %v13155_v37  ;;  %v5692_v14 = vsub.f32 %v13756_v31, %v5691_v32 }
 0x52a   :  { %11419 = vmatprep.subr.mxu1 %v12251_v63  ;;  %11430 = vmatprep.subr.mxu0 %v12251_v63 }
 0x52b   :  { %11420 = vmatpush3.msk.msra.mxu1 %vm13147_vm15, %v12253_v15  ;;  %11431 = vmatpush3.msra.mxu0 %v13172_v62  ;;  %v5693_v46 = vand.u32 4294901760, %v5692_v14 }
 0x52c   :  { %11421 = vmatprep.subr.mxu1 %v12251_v63  ;;  %11432 = vmatprep.subr.mxu0 %v12251_v63 }
 0x52d   :  { %11422 = vmatpush3.msk.msra.mxu1 %vm13183_vm0, %v12253_v15  ;;  %11423 = vmatprep.mubr.msk.f32.mxu1 %vm12252_vm4, %v12251_v63 }
 0x52e   :  { %11433 = vmatpush3.msra.mxu0 %v13199_v49  ;;  %11424 = vmatmul.mubr.f32.vlgmr.msra.gmra.mxu1 %v5151_v26 }
 0x52f   :  { %11434 = vmatprep.subr.mxu0 %v12251_v63  ;;  %11445 = vmatprep.subr.mxu1 %v12251_v63 }
 0x530   :  { %11435 = vmatpush3.msra.mxu0 %v13214_v60  ;;  %11446 = vmatpush3.msk.msra.mxu1 %vm1186_vm7, %v13060_v5 }
 0x531   :  { %11436 = vmatprep.subr.mxu0 %v12251_v63  ;;  %11447 = vmatprep.subr.mxu1 %v12251_v63 }
 0x532   :  { %11437 = vmatpush3.msra.mxu0 %v13236_v12  ;;  %11448 = vmatpush3.msk.msra.mxu1 %vm13069_vm9, %v12253_v15 }
 0x533   :  { %11438 = vmatprep.subr.mxu0 %v12251_v63  ;;  %11449 = vmatprep.subr.mxu1 %v12251_v63 }
 0x534   :  { %11439 = vmatpush3.msra.mxu0 %v13251_v28  ;;  %11450 = vmatpush3.msk.msra.mxu1 %vm13084_vm10, %v12253_v15 }
 0x535   :  { %11440 = vmatprep.subr.mxu0 %v12251_v63  ;;  %11451 = vmatprep.subr.mxu1 %v12251_v63 }
 0x536   :  { %11441 = vmatpush3.msra.mxu0 %v13272_v6  ;;  %11442 = vmatprep.mubr.msk.f32.mxu0 %vm12252_vm4, %v12251_v63 }
 0x537   :  { %11452 = vmatpush3.msk.msra.mxu1 %vm13098_vm12, %v12253_v15  ;;  %11443 = vmatmul.mubr.f32.vlgmr.msra.gmra.mxu0 %v13568_v10 }
 0x538   :  { %11453 = vmatprep.subr.mxu1 %v12251_v63  ;;  %11464 = vmatprep.subr.mxu0 %v12251_v63 }
 0x539   :  { %11454 = vmatpush3.msk.msra.mxu1 %vm13111_vm13, %v12253_v15  ;;  %11465 = vmatpush3.msk.msra.mxu0 %vm1186_vm7, %v13060_v5  ;;  %v13751_v61 = vpop.f32.mrf.mxu0 }
 0x53a   :  { %11455 = vmatprep.subr.mxu1 %v12251_v63  ;;  %11466 = vmatprep.subr.mxu0 %v12251_v63 }
 0x53b   :  { %11456 = vmatpush3.msk.msra.mxu1 %vm13130_vm14, %v12253_v15  ;;  %11467 = vmatpush3.msk.msra.mxu0 %vm13069_vm9, %v12253_v15  ;;  %v11044_v9 = vpop.f32.mrf.mxu0 }
 0x53c   :  { %11457 = vmatprep.subr.mxu1 %v12251_v63  ;;  %11468 = vmatprep.subr.mxu0 %v12251_v63 }
 0x53d   :  { %11458 = vmatpush3.msk.msra.mxu1 %vm13147_vm15, %v12253_v15  ;;  %11469 = vmatpush3.msk.msra.mxu0 %vm13084_vm10, %v12253_v15  ;;  %v13772_v27 = vpop.f32.mrf.mxu0 }
 0x53e   :  { %11459 = vmatprep.subr.mxu1 %v12251_v63  ;;  %11470 = vmatprep.subr.mxu0 %v12251_v63 }
 0x53f   :  { %11460 = vmatpush3.msk.msra.mxu1 %vm13183_vm0, %v12253_v15  ;;  %11461 = vmatprep.mubr.msk.f32.mxu1 %vm12252_vm4, %v12251_v63  ;;  %v11058_v44 = vpop.f32.mrf.mxu0 }
 0x540   :  { %11471 = vmatpush3.msk.msra.mxu0 %vm13098_vm12, %v12253_v15  ;;  %11462 = vmatmul.mubr.f32.vlgmr.msra.gmra.mxu1 %v13568_v10 }
 0x541   :  { %11472 = vmatprep.subr.mxu0 %v12251_v63  ;;  %11483 = vmatprep.subr.mxu1 %v12251_v63  ;;  %v13788_v13 = vpop.f32.mrf.mxu1 }
 0x542   :  { %11473 = vmatpush3.msk.msra.mxu0 %vm13111_vm13, %v12253_v15  ;;  %11484 = vmatpush3.msra.mxu1 %v13207_v50  ;;  %v3193_v34 = vadd.f32 %v13788_v13, %v13751_v61 }
 0x543   :  { %11474 = vmatprep.subr.mxu0 %v12251_v63  ;;  %11485 = vmatprep.subr.mxu1 %v12251_v63  ;;  %v11051_v36 = vpop.f32.mrf.mxu1  ;;  %v13799_v25 = vpop.f32.mrf.mxu0 }
 0x544   :  { %11475 = vmatpush3.msk.msra.mxu0 %vm13130_vm14, %v12253_v15  ;;  %11486 = vmatpush3.msra.mxu1 %v13231_v1  ;;  %v3269_v61 = vadd.f32 %v13772_v27, %v3193_v34 }
 0x545   :  { %11476 = vmatprep.subr.mxu0 %v12251_v63  ;;  %11487 = vmatprep.subr.mxu1 %v12251_v63  ;;  %v11072_v38 = vpop.f32.mrf.mxu0 }
 0x546   :  { %11477 = vmatpush3.msk.msra.mxu0 %vm13147_vm15, %v12253_v15  ;;  %11488 = vmatpush3.msra.mxu1 %v13246_v53 }
 0x547   :  { %11478 = vmatprep.subr.mxu0 %v12251_v63  ;;  %11489 = vmatprep.subr.mxu1 %v12251_v63  ;;  %v13813_v58 = vpop.f32.mrf.mxu1 }
 0x548   :  { %11479 = vmatpush3.msk.msra.mxu0 %vm13183_vm0, %v12253_v15  ;;  %11480 = vmatprep.mubr.msk.f32.mxu0 %vm12252_vm4, %v12251_v63  ;;  %v3344_v27 = vadd.f32 %v13813_v58, %v3269_v61 }
 0x549   :  { %11490 = vmatpush3.msra.mxu1 %v13263_v3  ;;  %11481 = vmatmul.mubr.f32.vlgmr.msra.gmra.mxu0 %v5693_v46  ;;  %v11065_v17 = vpop.f32.mrf.mxu1  ;;  %v3573_v33 = vpop.f32.mrf.mxu0 }
 0x54a   :  { %11491 = vmatprep.subr.mxu1 %v12251_v63  ;;  %11502 = vmatprep.subr.mxu0 %v12251_v63  ;;  %v3421_v36 = vadd.f32 %v13799_v25, %v3344_v27  ;;  %v7273_v27 = vstv %s14015_s25  ;;  %s10119_s25 = sld [smem:[#allocation16 + $0x18]] }
 0x54b   :  { %11492 = vmatpush3.msra.mxu1 %v13276_v19  ;;  %11503 = vmatpush3.msra.mxu0 %v13090_v55  ;;  %v11086_v45 = vpop.f32.mrf.mxu0 }
 0x54c   :  { %11493 = vmatprep.subr.mxu1 %v12251_v63  ;;  %11504 = vmatprep.subr.mxu0 %v12251_v63 }
 0x54d   :  { %11494 = vmatpush3.msra.mxu1 %v13288_v24  ;;  %11505 = vmatpush3.msra.mxu0 %v13115_v59  ;;  %v13829_v29 = vpop.f32.mrf.mxu1 }
 0x54e   :  { %11495 = vmatprep.subr.mxu1 %v12251_v63  ;;  %11506 = vmatprep.subr.mxu0 %v12251_v63 }
 0x54f   :  { %11496 = vmatpush3.msra.mxu1 %v13295_v18  ;;  %11507 = vmatpush3.msra.mxu0 %v13134_v2  ;;  %v11079_v21 = vpop.f32.mrf.mxu1  ;;  %v3730_v43 = vpop.f32.mrf.mxu0 }
 0x550   :  { %11497 = vmatprep.subr.mxu1 %v12251_v63  ;;  %11508 = vmatprep.subr.mxu0 %v12251_v63 }
 0x551   :  { %11498 = vmatpush3.msra.mxu1 %v13306_v48  ;;  %11499 = vmatprep.mubr.msk.f32.mxu1 %vm12252_vm4, %v12251_v63  ;;  %v11100_v10 = vpop.f32.mrf.mxu0 }
 0x552   :  { %11509 = vmatpush3.msra.mxu0 %v13157_v42  ;;  %11500 = vmatmul.mubr.f32.vlgmr.msra.gmra.mxu1 %v13738_v11 }
 0x553   :  { %11510 = vmatprep.subr.mxu0 %v12251_v63  ;;  %11521 = vmatprep.subr.mxu1 %v12251_v63  ;;  %v3654_v8 = vpop.f32.mrf.mxu1 }
 0x554   :  { %11511 = vmatpush3.msra.mxu0 %v13176_v16  ;;  %11522 = vmatpush3.msk.msra.mxu1 %vm1186_vm7, %v13060_v5  ;;  %v3655_v9 = vadd.f32 %v3654_v8, %v3573_v33 }
 0x555   :  { %11512 = vmatprep.subr.mxu0 %v12251_v63  ;;  %11523 = vmatprep.subr.mxu1 %v12251_v63  ;;  %v11093_v26 = vpop.f32.mrf.mxu1  ;;  %v3882_v30 = vpop.f32.mrf.mxu0 }
 0x556   :  { %11513 = vmatpush3.msra.mxu0 %v13201_v0  ;;  %11524 = vmatpush3.msk.msra.mxu1 %vm13069_vm9, %v12253_v15  ;;  %v3731_v13 = vadd.f32 %v3730_v43, %v3655_v9 }
 0x557   :  { %11514 = vmatprep.subr.mxu0 %v12251_v63  ;;  %11525 = vmatprep.subr.mxu1 %v12251_v63  ;;  %v11114_v23 = vpop.f32.mrf.mxu0 }
 0x558   :  { %11515 = vmatpush3.msra.mxu0 %v13216_v41  ;;  %11526 = vmatpush3.msk.msra.mxu1 %vm13084_vm10, %v12253_v15 }
 0x559   :  { %11516 = vmatprep.subr.mxu0 %v12251_v63  ;;  %11527 = vmatprep.subr.mxu1 %v12251_v63  ;;  %v3805_v7 = vpop.f32.mrf.mxu1 }
 0x55a   :  { %11517 = vmatpush3.msra.mxu0 %v13242_v40  ;;  %11518 = vmatprep.mubr.msk.f32.mxu0 %vm12252_vm4, %v12251_v63  ;;  %v3806_v38 = vadd.f32 %v3805_v7, %v3731_v13  ;;  %v7236_v7 = vstv %s14010_s3  ;;  %s14493_s3 = sld [smem:[#allocation16 + $0x1a]] }
 0x55b   :  { %11528 = vmatpush3.msk.msra.mxu1 %vm13098_vm12, %v12253_v15  ;;  %11519 = vmatmul.mubr.f32.vlgmr.msra.gmra.mxu0 %v13756_v31  ;;  %v11107_v52 = vpop.f32.mrf.mxu1  ;;  %v13915_v31 = vadd.f32 %v13829_v29, %v3421_v36  ;;  %v7288_v36 = vstv %s14018_s2 }
 0x55c   :  { %11529 = vmatprep.subr.mxu1 %v12251_v63  ;;  %11540 = vmatprep.subr.mxu0 %v12251_v63 }
 0x55d   :  { %11530 = vmatpush3.msk.msra.mxu1 %vm13111_vm13, %v12253_v15  ;;  %11541 = vmatpush3.msra.mxu0 %v13121_v39 }
 0x55e   :  { %11531 = vmatprep.subr.mxu1 %v12251_v63  ;;  %11542 = vmatprep.subr.mxu0 %v12251_v63  ;;  %v3955_v44 = vpop.f32.mrf.mxu1 }
 0x55f   :  { %11532 = vmatpush3.msk.msra.mxu1 %vm13130_vm14, %v12253_v15  ;;  %11543 = vmatpush3.msra.mxu0 %v13155_v37 }
 0x560   :  { %11533 = vmatprep.subr.mxu1 %v12251_v63  ;;  %11544 = vmatprep.subr.mxu0 %v12251_v63  ;;  %v11121_v14 = vpop.f32.mrf.mxu1 }
 0x561   :  { %11534 = vmatpush3.msk.msra.mxu1 %vm13147_vm15, %v12253_v15  ;;  %11545 = vmatpush3.msra.mxu0 %v13172_v62 }
 0x562   :  { %11535 = vmatprep.subr.mxu1 %v12251_v63  ;;  %11546 = vmatprep.subr.mxu0 %v12251_v63 }
 0x563   :  { %11536 = vmatpush3.msk.msra.mxu1 %vm13183_vm0, %v12253_v15  ;;  %11537 = vmatprep.mubr.msk.f32.mxu1 %vm12252_vm4, %v12251_v63 }
 0x564   :  { %11547 = vmatpush3.msra.mxu0 %v13199_v49  ;;  %11538 = vmatmul.mubr.f32.vlgmr.msra.gmra.mxu1 %v5691_v32  ;;  %v3883_v32 = vadd.f32 %v3882_v30, %v3806_v38 }
 0x565   :  { %11548 = vmatprep.subr.mxu0 %v12251_v63  ;;  %11559 = vmatprep.subr.mxu1 %v12251_v63 }
 0x566   :  { %11549 = vmatpush3.msra.mxu0 %v13214_v60  ;;  %11560 = vmatpush3.msk.msra.mxu1 %vm1186_vm7, %v13060_v5  ;;  %v13928_v58 = vadd.f32 %v3955_v44, %v3883_v32  ;;  %v7249_v44 = vstv %s14013_s5  ;;  %s10116_s5 = sld [smem:[#allocation16 + $0x15]] }
 0x567   :  { %11550 = vmatprep.subr.mxu0 %v12251_v63  ;;  %11561 = vmatprep.subr.mxu1 %v12251_v63  ;;  %v13908_v46 = vpop.f32.mrf.mxu0 }
 0x568   :  { %11551 = vmatpush3.msra.mxu0 %v13236_v12  ;;  %11562 = vmatpush3.msk.msra.mxu1 %vm13069_vm9, %v12253_v15 }
 0x569   :  { %11552 = vmatprep.subr.mxu0 %v12251_v63  ;;  %11563 = vmatprep.subr.mxu1 %v12251_v63  ;;  %v11140_v25 = vpop.f32.mrf.mxu0 }
 0x56a   :  { %11553 = vmatpush3.msra.mxu0 %v13251_v28  ;;  %11564 = vmatpush3.msk.msra.mxu1 %vm13084_vm10, %v12253_v15 }
 0x56b   :  { %11554 = vmatprep.subr.mxu0 %v12251_v63  ;;  %11565 = vmatprep.subr.mxu1 %v12251_v63 }
 0x56c   :  { %3973 = vrot.lane.b32.xlu0 %v13915_v31, %s12249_s9  ;;  %11555 = vmatpush3.msra.mxu0 %v13272_v6 }
 0x56d   :  { %11556 = vmatprep.mubr.msk.f32.mxu0 %vm12252_vm4, %v12251_v63  ;;  %11566 = vmatpush3.msk.msra.mxu1 %vm13098_vm12, %v12253_v15 }
 0x56e   :  { %11557 = vmatmul.mubr.f32.vlgmr.msra.gmra.mxu0 %v13738_v11  ;;  %11567 = vmatprep.subr.mxu1 %v12251_v63 }
 0x56f   :  { %11568 = vmatpush3.msk.msra.mxu1 %vm13111_vm13, %v12253_v15  ;;  %11575 = vmatprep.mubr.msk.f32.mxu1 %vm12252_vm4, %v12251_v63 }
 0x570   :  { %11569 = vmatprep.subr.mxu1 %v12251_v63  ;;  %3975 = vrot.lane.b32.xlu1 %v13928_v58, %s12249_s9  ;;  %v4186_v17 = vpop.f32.mrf.mxu1 }
 0x571   :  { %11570 = vmatpush3.msk.msra.mxu1 %vm13130_vm14, %v12253_v15  ;;  %11578 = vmatprep.subr.mxu0 %v12251_v63  ;;  %v4187_v10 = vadd.f32 %v4186_v17, %v13908_v46  ;;  %v7314_v17 = vstv %s14025_s4 }
 0x572   :  { %11571 = vmatprep.subr.mxu1 %v12251_v63  ;;  %v11159_v33 = vpop.f32.mrf.mxu1  ;;  %11579 = vmatpush3.msk.msra.mxu0 %vm1186_vm7, %v13060_v5 }
 0x573   :  { %11572 = vmatpush3.msk.msra.mxu1 %vm13147_vm15, %v12253_v15  ;;  %11580 = vmatprep.subr.mxu0 %v12251_v63 }
 0x574   :  { %11573 = vmatprep.subr.mxu1 %v12251_v63  ;;  %11581 = vmatpush3.msk.msra.mxu0 %vm13069_vm9, %v12253_v15 }
 0x575   :  { %11574 = vmatpush3.msk.msra.mxu1 %vm13183_vm0, %v12253_v15  ;;  %11582 = vmatprep.subr.mxu0 %v12251_v63 }
 0x576   :  { %11576 = vmatmul.mubr.f32.vlgmr.msra.gmra.mxu1 %v13738_v11  ;;  %11597 = vmatprep.subr.mxu1 %v12251_v63 }
 0x577   :  { %11598 = vmatpush3.msra.mxu1 %v13207_v50  ;;  %11583 = vmatpush3.msk.msra.mxu0 %vm13084_vm10, %v12253_v15 }
 0x578   :  { %11599 = vmatprep.subr.mxu1 %v12251_v63  ;;  %11584 = vmatprep.subr.mxu0 %v12251_v63 }
 0x579   :  { %v4274_v45 = vpop.f32.mrf.mxu0  ;;  %11600 = vmatpush3.msra.mxu1 %v13231_v1  ;;  %11585 = vmatpush3.msk.msra.mxu0 %vm13098_vm12, %v12253_v15 }
 0x57a   :  { %11601 = vmatprep.subr.mxu1 %v12251_v63  ;;  %11586 = vmatprep.subr.mxu0 %v12251_v63  ;;  %v4275_v26 = vadd.f32 %v4274_v45, %v4187_v10 }
 0x57b   :  { %v11178_v11 = vpop.f32.mrf.mxu0  ;;  %11602 = vmatpush3.msra.mxu1 %v13246_v53  ;;  %11613 = vmatprep.mubr.msk.f32.mxu1 %vm12252_vm4, %v12251_v63 }
 0x57c   :  { %11603 = vmatprep.subr.mxu1 %v12251_v63  ;;  %11587 = vmatpush3.msk.msra.mxu0 %vm13111_vm13, %v12253_v15  ;;  %v7329_v11 = vstv %s14031_s26 }
 0x57d   :  { %11604 = vmatpush3.msra.mxu1 %v13263_v3  ;;  %11588 = vmatprep.subr.mxu0 %v12251_v63 }
 0x57e   :  { %11605 = vmatprep.subr.mxu1 %v12251_v63  ;;  %11589 = vmatpush3.msk.msra.mxu0 %vm13130_vm14, %v12253_v15 }
 0x57f   :  { %11606 = vmatpush3.msra.mxu1 %v13276_v19  ;;  %11590 = vmatprep.subr.mxu0 %v12251_v63 }
 0x580   :  { %11607 = vmatprep.subr.mxu1 %v12251_v63  ;;  %11591 = vmatpush3.msk.msra.mxu0 %vm13147_vm15, %v12253_v15 }
 0x581   :  { %11608 = vmatpush3.msra.mxu1 %v13288_v24  ;;  %11592 = vmatprep.subr.mxu0 %v12251_v63 }
 0x582   :  { %v4355_v29 = vpop.f32.mrf.mxu1  ;;  %11609 = vmatprep.subr.mxu1 %v12251_v63  ;;  %11593 = vmatpush3.msk.msra.mxu0 %vm13183_vm0, %v12253_v15 }
 0x583   :  { %11610 = vmatpush3.msra.mxu1 %v13295_v18  ;;  %11594 = vmatprep.mubr.msk.f32.mxu0 %vm12252_vm4, %v12251_v63  ;;  %v4356_v30 = vadd.f32 %v4355_v29, %v4275_v26 }
 0x584   :  { %v11197_v21 = vpop.f32.mrf.mxu1  ;;  %11611 = vmatprep.subr.mxu1 %v12251_v63  ;;  %11616 = vmatprep.subr.mxu0 %v12251_v63 }
 0x585   :  { %11612 = vmatpush3.msra.mxu1 %v13306_v48 }
 0x586   :  { %11635 = vmatprep.subr.mxu1 %v12251_v63 }
 0x58b   :  { %v4450_v43 = vpop.f32.mrf.mxu0 }
 0x58c   :  { %v4451_v23 = vadd.f32 %v4450_v43, %v4356_v30 }
 0x58d   :  { %v11216_v8 = vpop.f32.mrf.mxu0 }
 0x594   :  { %v4529_v34 = vpop.f32.mrf.mxu1 }
 0x595   :  { %v14020_v52 = vadd.f32 %v4529_v34, %v4451_v23 }
 0x596   :  { %v11235_v61 = vpop.f32.mrf.mxu1 }
 0x597   :  { %v7237_v9 = vmul.f32 %v7236_v7, %v14020_v52  ;;  %v7250_v13 = vmul.f32 %v7249_v44, %v14020_v52  ;;  %v7274_v14 = vmul.f32 %v7273_v27, %v14020_v52  ;;  %v7289_v25 = vmul.f32 %v7288_v36, %v14020_v52 }
 0x598   :  { %v7315_v45 = vmul.f32 %v7314_v17, %v14020_v52  ;;  %v7330_v43 = vmul.f32 %v7329_v11, %v14020_v52 }
 0x599   :  { %7241 = vrot.lane.b32.xlu0 %v7237_v9, %s12249_s9  ;;  %v7278_v32 = vrot.slane %v7274_v14, 1  ;;  %v7293_v33 = vrot.slane %v7289_v25, 1 }
 0x59a   :  { %v7319_v21 = vrot.slane %v7315_v45, 2  ;;  %v7334_v8 = vrot.slane %v7330_v43, 2 }
 0x59d   :  { %v4615_v38 = vpop.f32.mrf.mxu0  ;;  %7254 = vrot.lane.b32.xlu0 %v7250_v13, %s12250_s12 }
 0x59f   :  { %v11254_v46 = vpop.f32.mrf.mxu0 }
 0x5a1   :  { %7280 = vrot.lane.b32.xlu0 %v7278_v32, %s12249_s9 }
 0x5a5   :  { %7295 = vrot.lane.b32.xlu0 %v7293_v33, %s12250_s12 }
 0x5a6   :  { %v4726_v29 = vpop.f32.mrf.mxu1 }
 0x5a7   :  { %v4727_v9 = vadd.f32 %v4726_v29, %v4615_v38 }
 0x5a8   :  { %v11273_v10 = vpop.f32.mrf.mxu1 }
 0x5a9   :  { %7321 = vrot.lane.b32.xlu0 %v7319_v21, %s12249_s9 }
 0x5ad   :  { %7336 = vrot.lane.b32.xlu0 %v7334_v8, %s12250_s12 }
 0x5af   :  { %v4814_v26 = vpop.f32.mrf.mxu0 }
 0x5b0   :  { %v4815_v14 = vadd.f32 %v4814_v26, %v4727_v9 }
 0x5b1   :  { %v11292_v30 = vpop.f32.mrf.mxu0 }
 0x5b8   :  { %v4895_v23 = vpop.f32.mrf.mxu1 }
 0x5b9   :  { %v4896_v46 = vadd.f32 %v4895_v23, %v4815_v14 }
 0x5ba   :  { %v11311_v34 = vpop.f32.mrf.mxu1 }
 0x5c1   :  { %v4990_v61 = vpop.f32.mrf.mxu0 }
 0x5c2   :  { %v4991_v32 = vadd.f32 %v4990_v61, %v4896_v46 }
 0x5c3   :  { %v11330_v13 = vpop.f32.mrf.mxu0 }
 0x5ca   :  { %v5069_v25 = vpop.f32.mrf.mxu1 }
 0x5cb   :  { %v14043_v33 = vadd.f32 %v5069_v25, %v4991_v32 }
 0x5cc   :  { %v11349_v45 = vpop.f32.mrf.mxu1 }
 0x5cd   :  { %v7238_v10 = vmul.f32 %v7236_v7, %v14043_v33  ;;  %v7251_v21 = vmul.f32 %v7249_v44, %v14043_v33  ;;  %v7275_v43 = vmul.f32 %v7273_v27, %v14043_v33  ;;  %v7290_v26 = vmul.f32 %v7288_v36, %v14043_v33 }
 0x5ce   :  { %v7316_v23 = vmul.f32 %v7314_v17, %v14043_v33  ;;  %v7331_v27 = vmul.f32 %v7329_v11, %v14043_v33 }
 0x5cf   :  { %7243 = vrot.lane.b32.xlu1 %v7238_v10, %s12249_s9  ;;  %v7279_v29 = vrot.slane %v7275_v43, 1  ;;  %v7294_v30 = vrot.slane %v7290_v26, 1 }
 0x5d0   :  { %v7320_v44 = vrot.slane %v7316_v23, 2  ;;  %v7335_v13 = vrot.slane %v7331_v27, 2 }
 0x5d3   :  { %v14049_v8 = vpop.f32.mrf.mxu0  ;;  %7256 = vrot.lane.b32.xlu1 %v7251_v21, %s12250_s12 }
 0x5d5   :  { %v11368_v38 = vpop.f32.mrf.mxu0 }
 0x5d7   :  { %7282 = vrot.lane.b32.xlu1 %v7279_v29, %s12249_s9 }
 0x5db   :  { %7297 = vrot.lane.b32.xlu1 %v7294_v30, %s12250_s12 }
 0x5dc   :  { %v14056_v7 = vpop.f32.mrf.mxu1 }
 0x5dd   :  { %v5267_v38 = vadd.f32 %v14056_v7, %v14049_v8 }
 0x5de   :  { %v3974_v34 = vpop.permute.xlu0 %3973  ;;  %v11387_v61 = vpop.f32.mrf.mxu1 }
 0x5df   :  { %v3987_v9 = vmax.f32 %v13915_v31, %v3974_v34  ;;  %7323 = vrot.lane.b32.xlu1 %v7320_v44, %s12249_s9  ;;  %v7349_v44 = vstv %s14136_s27 }
 0x5e1   :  { %v6154_v36 = vsel %vm3989_vm11, %v3987_v9, 0  ;;  %v7233_v9 = vstv %s14144_s28 }
 0x5e2   :  { %v14062_v14 = vand.u32 4294901760, %v6154_v36  ;;  %v3976_v27 = vpop.permute.xlu1 %3975 }
 0x5e3   :  { %7338 = vrot.lane.b32.xlu1 %v7335_v13, %s12250_s12  ;;  %v3988_v13 = vmax.f32 %v13928_v58, %v3976_v27  ;;  %v7234_v58 = vmul.f32 %v7233_v9, %v14020_v52 }
 0x5e4   :  { %v6230_v17 = vsub.f32 %v6154_v36, %v14062_v14  ;;  %11614 = vmatmul.mubr.f32.vlgmr.msra.gmra.mxu1 %v14062_v14  ;;  %v7262_v36 = vstv %s14150_s29 }
 0x5e5   :  { %11636 = vmatpush3.msk.msra.mxu1 %vm1186_vm7, %v13060_v5  ;;  %v5354_v11 = vpop.f32.mrf.mxu0  ;;  %11651 = vmatprep.mubr.msk.f32.mxu1 %vm12252_vm4, %v12251_v63 }
 0x5e6   :  { %v6231_v31 = vand.u32 4294901760, %v6230_v17  ;;  %11637 = vmatprep.subr.mxu1 %v12251_v63  ;;  %v5355_v29 = vadd.f32 %v5354_v11, %v5267_v38  ;;  %v6694_v11 = vsel %vm3989_vm11, %v3988_v13, 0  ;;  %v7427_v13 = vstv %s14216_s16 }
 0x5e7   :  { %11638 = vmatpush3.msk.msra.mxu1 %vm13069_vm9, %v12253_v15  ;;  %v11406_v46 = vpop.f32.mrf.mxu0 }
 0x5e8   :  { %11639 = vmatprep.subr.mxu1 %v12251_v63  ;;  %v6232_v32 = vsub.f32 %v6230_v17, %v6231_v31 }
 0x5e9   :  { %11640 = vmatpush3.msk.msra.mxu1 %vm13084_vm10, %v12253_v15 }
 0x5ea   :  { %11641 = vmatprep.subr.mxu1 %v12251_v63  ;;  %v6233_v25 = vand.u32 4294901760, %v6232_v32 }
 0x5eb   :  { %11642 = vmatpush3.msk.msra.mxu1 %vm13098_vm12, %v12253_v15 }
 0x5ec   :  { %11643 = vmatprep.subr.mxu1 %v12251_v63  ;;  %11595 = vmatmul.mubr.f32.vlgmr.msra.gmra.mxu0 %v6233_v25 }
 0x5ed   :  { %11617 = vmatpush3.msra.mxu0 %v13090_v55  ;;  %11644 = vmatpush3.msk.msra.mxu1 %vm13111_vm13, %v12253_v15 }
 0x5ee   :  { %11618 = vmatprep.subr.mxu0 %v12251_v63  ;;  %11645 = vmatprep.subr.mxu1 %v12251_v63  ;;  %v5435_v45 = vpop.f32.mrf.mxu1 }
 0x5ef   :  { %11619 = vmatpush3.msra.mxu0 %v13115_v59  ;;  %11646 = vmatpush3.msk.msra.mxu1 %vm13130_vm14, %v12253_v15  ;;  %v5436_v26 = vadd.f32 %v5435_v45, %v5355_v29  ;;  %v7401_v29 = vstv %s14196_s15 }
 0x5f0   :  { %11620 = vmatprep.subr.mxu0 %v12251_v63  ;;  %11647 = vmatprep.subr.mxu1 %v12251_v63  ;;  %v11425_v10 = vpop.f32.mrf.mxu1 }
 0x5f1   :  { %11621 = vmatpush3.msra.mxu0 %v13134_v2  ;;  %11648 = vmatpush3.msk.msra.mxu1 %vm13147_vm15, %v12253_v15  ;;  %v14218_v10 = vand.u32 4294901760, %v6694_v11 }
 0x5f2   :  { %11622 = vmatprep.subr.mxu0 %v12251_v63  ;;  %11649 = vmatprep.subr.mxu1 %v12251_v63 }
 0x5f3   :  { %11623 = vmatpush3.msra.mxu0 %v13157_v42  ;;  %11650 = vmatpush3.msk.msra.mxu1 %vm13183_vm0, %v12253_v15 }
 0x5f4   :  { %11624 = vmatprep.subr.mxu0 %v12251_v63  ;;  %11652 = vmatmul.mubr.f32.vlgmr.msra.gmra.mxu1 %v6231_v31  ;;  %v7386_v31 = vstv %s14172_s13 }
 0x5f5   :  { %11673 = vmatprep.subr.mxu1 %v12251_v63  ;;  %11625 = vmatpush3.msra.mxu0 %v13176_v16 }
 0x5f6   :  { %11674 = vmatpush3.msk.msra.mxu1 %vm1186_vm7, %v13060_v5  ;;  %11626 = vmatprep.subr.mxu0 %v12251_v63 }
 0x5f7   :  { %11675 = vmatprep.subr.mxu1 %v12251_v63  ;;  %11627 = vmatpush3.msra.mxu0 %v13201_v0  ;;  %v5530_v21 = vpop.f32.mrf.mxu0 }
 0x5f8   :  { %11676 = vmatpush3.msk.msra.mxu1 %vm13069_vm9, %v12253_v15  ;;  %11628 = vmatprep.subr.mxu0 %v12251_v63  ;;  %v5531_v23 = vadd.f32 %v5530_v21, %v5436_v26  ;;  %v7303_v21 = vstv %s14187_s14 }
 0x5f9   :  { %11677 = vmatprep.subr.mxu1 %v12251_v63  ;;  %11629 = vmatpush3.msra.mxu0 %v13216_v41  ;;  %v11444_v43 = vpop.f32.mrf.mxu0  ;;  %v7304_v26 = vmul.f32 %v7303_v21, %v14020_v52 }
 0x5fa   :  { %11678 = vmatpush3.msk.msra.mxu1 %vm13084_vm10, %v12253_v15  ;;  %11630 = vmatprep.subr.mxu0 %v12251_v63 }
 0x5fb   :  { %11679 = vmatprep.subr.mxu1 %v12251_v63  ;;  %11631 = vmatpush3.msra.mxu0 %v13242_v40 }
 0x5fc   :  { %11632 = vmatprep.mubr.msk.f32.mxu0 %vm12252_vm4, %v12251_v63  ;;  %11680 = vmatpush3.msk.msra.mxu1 %vm13098_vm12, %v12253_v15 }
 0x5fd   :  { %11633 = vmatmul.mubr.f32.vlgmr.msra.gmra.mxu0 %v6230_v17  ;;  %11654 = vmatprep.subr.mxu0 %v12251_v63 }
 0x5fe   :  { %11681 = vmatprep.subr.mxu1 %v12251_v63  ;;  %11655 = vmatpush3.msra.mxu0 %v13121_v39 }
 0x5ff   :  { %11682 = vmatpush3.msk.msra.mxu1 %vm13111_vm13, %v12253_v15  ;;  %11656 = vmatprep.subr.mxu0 %v12251_v63 }
 0x600   :  { %11683 = vmatprep.subr.mxu1 %v12251_v63  ;;  %11657 = vmatpush3.msra.mxu0 %v13155_v37  ;;  %v5609_v8 = vpop.f32.mrf.mxu1 }
 0x601   :  { %11684 = vmatpush3.msk.msra.mxu1 %vm13130_vm14, %v12253_v15  ;;  %11658 = vmatprep.subr.mxu0 %v12251_v63  ;;  %v14165_v7 = vadd.f32 %v5609_v8, %v5531_v23 }
 0x602   :  { %11685 = vmatprep.subr.mxu1 %v12251_v63  ;;  %11659 = vmatpush3.msra.mxu0 %v13172_v62  ;;  %v11463_v30 = vpop.f32.mrf.mxu1 }
 0x603   :  { %11686 = vmatpush3.msk.msra.mxu1 %vm13147_vm15, %v12253_v15  ;;  %11660 = vmatprep.subr.mxu0 %v12251_v63  ;;  %v7350_v34 = vmul.f32 %v7349_v44, %v14165_v7  ;;  %v14245_v30 = vsub.f32 %v6694_v11, %v14218_v10  ;;  %v7402_v27 = vmul.f32 %v7401_v29, %v14165_v7 }
 0x604   :  { %11687 = vmatprep.subr.mxu1 %v12251_v63  ;;  %11661 = vmatpush3.msra.mxu0 %v13199_v49 }
 0x605   :  { %11688 = vmatpush3.msk.msra.mxu1 %vm13183_vm0, %v12253_v15  ;;  %11689 = vmatprep.mubr.msk.f32.mxu1 %vm12252_vm4, %v12251_v63  ;;  %v7406_v11 = vrot.slane %v7402_v27, 1 }
 0x606   :  { %11662 = vmatprep.subr.mxu0 %v12251_v63  ;;  %11690 = vmatmul.mubr.f32.vlgmr.msra.gmra.mxu1 %v14062_v14 }
 0x607   :  { %11711 = vmatprep.subr.mxu1 %v12251_v63  ;;  %11663 = vmatpush3.msra.mxu0 %v13214_v60 }
 0x608   :  { %11712 = vmatpush3.msra.mxu1 %v13207_v50  ;;  %11664 = vmatprep.subr.mxu0 %v12251_v63 }
 0x609   :  { %11713 = vmatprep.subr.mxu1 %v12251_v63  ;;  %11665 = vmatpush3.msra.mxu0 %v13236_v12  ;;  %v14183_v61 = vpop.f32.mrf.mxu0 }
 0x60a   :  { %11714 = vmatpush3.msra.mxu1 %v13231_v1  ;;  %11666 = vmatprep.subr.mxu0 %v12251_v63  ;;  %v7263_v1 = vmul.f32 %v7262_v36, %v14020_v52 }
 0x60b   :  { %11715 = vmatprep.subr.mxu1 %v12251_v63  ;;  %11667 = vmatpush3.msra.mxu0 %v13251_v28  ;;  %v11482_v50 = vpop.f32.mrf.mxu0  ;;  %v7242_v17 = vpop.permute.xlu0 %7241 }
 0x60c   :  { %11716 = vmatpush3.msra.mxu1 %v13246_v53  ;;  %11668 = vmatprep.subr.mxu0 %v12251_v63  ;;  %v7362_v53 = vstv %s14167_s30  ;;  %v7247_v46 = vadd.f32 %v7242_v17, %v7234_v58  ;;  %v7267_v45 = vrot.slane %v7263_v1, 1  ;;  %v7308_v17 = vrot.slane %v7304_v26, 2  ;;  %s12255_s30 = smov [#allocation19]  }
 0x60d   :  { %11717 = vmatprep.subr.mxu1 %v12251_v63  ;;  %7354 = vrot.lane.b32.xlu0 %v7350_v34, %s12249_s9  ;;  %v6771_v58 = vand.u32 4294901760, %v14245_v30  ;;  %s10051_s13 = sshll.u32 %s12255_s30, 4  ;;  %s10052_s13 = int_to_ptr.vmem [resolvable:$true] %s10051_s13 }
 0x60e   :  { %11669 = vmatpush3.msra.mxu0 %v13272_v6  ;;  %11670 = vmatprep.mubr.msk.f32.mxu0 %vm12252_vm4, %v12251_v63  ;;  %s12208_s14 = scalar_lea.vmem %s10052_s13, 32  ;;  %p12213_p8 = scmp.lt.s32.totalorder %s10052_s13, %s10052_s13 }
 0x60f   :  { %11718 = vmatpush3.msra.mxu1 %v13263_v3  ;;  %11671 = vmatmul.mubr.f32.vlgmr.msra.gmra.mxu0 %v14062_v14  ;;  %v7255_v32 = vpop.permute.xlu0 %7254  ;;  %v7363_v3 = vmul.f32 %v7362_v53, %v14165_v7  ;;  %v7387_v14 = vmul.f32 %v7386_v31, %v14165_v7  ;;  %p12209_p7 = scmp.ne.s32.totalorder %s10052_s13, %s12208_s14  ;;  %p12214_p9 = scmp.lt.s32.totalorder %s12208_s14, %s12208_s14 }
 0x610   :  { %11692 = vmatprep.subr.mxu0 %v12251_v63  ;;  %11719 = vmatprep.subr.mxu1 %v12251_v63  ;;  %v7260_v25 = vadd.f32 %v7255_v32, %v7247_v46  ;;  %v7428_v46 = vmul.f32 %v7427_v13, %v14165_v7 }
 0x611   :  { %11693 = vmatpush3.msk.msra.mxu0 %vm1186_vm7, %v13060_v5  ;;  %11720 = vmatpush3.msra.mxu1 %v13276_v19  ;;  %v7391_v23 = vrot.slane %v7387_v14, 1  ;;  %v7344_v14 = vstv %s14251_s1  ;;  %p12215_p10 = por %p12214_p9, %p12213_p8 }
 0x612   :  { %11694 = vmatprep.subr.mxu0 %v12251_v63  ;;  %11721 = vmatprep.subr.mxu1 %v12251_v63  ;;  %v14232_v43 = vpop.f32.mrf.mxu1  ;;  %v7271_v38 = vadd.f32 %v7267_v45, %v7260_v25  ;;  %v6772_v45 = vsub.f32 %v14245_v30, %v6771_v58 }
 0x613   :  { %7367 = vrot.lane.b32.xlu0 %v7363_v3, %s12250_s12  ;;  %11695 = vmatpush3.msk.msra.mxu0 %vm13069_vm9, %v12253_v15  ;;  %v7281_v19 = vpop.permute.xlu0 %7280  ;;  %p12216_p11 = pnand %p12215_p10, %p12209_p7 }
 0x614   :  { %11722 = vmatpush3.msra.mxu1 %v13288_v24  ;;  %11696 = vmatprep.subr.mxu0 %v12251_v63  ;;  %v11501_v8 = vpop.f32.mrf.mxu1  ;;  %v7286_v52 = vadd.f32 %v7281_v19, %v7271_v38  ;;  %v7442_v38 = vstv %s14255_s17  ;;  %v6773_v27 = vand.u32 4294901760, %v6772_v45 }
 0x615   :  { %11723 = vmatprep.subr.mxu1 %v12251_v63  ;;  %11697 = vmatpush3.msk.msra.mxu0 %vm13084_vm10, %v12253_v15  ;;  %v7432_v8 = vrot.slane %v7428_v46, 2 }
 0x616   :  { %11724 = vmatpush3.msra.mxu1 %v13295_v18  ;;  %11698 = vmatprep.subr.mxu0 %v12251_v63 }
 0x617   :  { %11725 = vmatprep.subr.mxu1 %v12251_v63  ;;  %7393 = vrot.lane.b32.xlu0 %v7391_v23, %s12249_s9  ;;  %v7296_v34 = vpop.permute.xlu0 %7295 }
 0x618   :  { %11699 = vmatpush3.msk.msra.mxu0 %vm13098_vm12, %v12253_v15  ;;  %11726 = vmatpush3.msra.mxu1 %v13306_v48  ;;  %v7301_v50 = vadd.f32 %v7296_v34, %v7286_v52  ;;  %v7345_v52 = vmul.f32 %v7344_v14, %v14165_v7  ;;  %v7443_v34 = vmul.f32 %v7442_v38, %v14165_v7 }
 0x619   :  { %11727 = vmatprep.mubr.msk.f32.mxu1 %vm12252_vm4, %v12251_v63  ;;  %11700 = vmatprep.subr.mxu0 %v12251_v63 }
 0x61a   :  { %11728 = vmatmul.mubr.f32.vlgmr.msra.gmra.mxu1 %v14218_v10  ;;  %11749 = vmatprep.subr.mxu1 %v12251_v63  ;;  %v7312_v1 = vadd.f32 %v7308_v17, %v7301_v50 }
 0x61b   :  { %11701 = vmatpush3.msk.msra.mxu0 %vm13111_vm13, %v12253_v15  ;;  %11750 = vmatpush3.msk.msra.mxu1 %vm1186_vm7, %v13060_v5  ;;  %v14281_v32 = vpop.f32.mrf.mxu0  ;;  %v7322_v25 = vpop.permute.xlu0 %7321 }
 0x61c   :  { %11702 = vmatprep.subr.mxu0 %v12251_v63  ;;  %11751 = vmatprep.subr.mxu1 %v12251_v63  ;;  %v7327_v19 = vadd.f32 %v7322_v25, %v7312_v1  ;;  %v7447_v1 = vrot.slane %v7443_v34, 2 }
 0x61d   :  { %7408 = vrot.lane.b32.xlu0 %v7406_v11, %s12250_s12  ;;  %11703 = vmatpush3.msk.msra.mxu0 %vm13130_vm14, %v12253_v15  ;;  %v11520_v3 = vpop.f32.mrf.mxu0 }
 0x61e   :  { %11752 = vmatpush3.msk.msra.mxu1 %vm13069_vm9, %v12253_v15  ;;  %11704 = vmatprep.subr.mxu0 %v12251_v63 }
 0x61f   :  { %11753 = vmatprep.subr.mxu1 %v12251_v63  ;;  %11705 = vmatpush3.msk.msra.mxu0 %vm13147_vm15, %v12253_v15  ;;  %v7337_v26 = vpop.permute.xlu0 %7336 }
 0x620   :  { %11754 = vmatpush3.msk.msra.mxu1 %vm13084_vm10, %v12253_v15  ;;  %11706 = vmatprep.subr.mxu0 %v12251_v63  ;;  %v7342_v23 = vadd.f32 %v7337_v26, %v7327_v19 }
 0x621   :  { %11755 = vmatprep.subr.mxu1 %v12251_v63  ;;  %7434 = vrot.lane.b32.xlu0 %v7432_v8, %s12249_s9 }
 0x622   :  { %11707 = vmatpush3.msk.msra.mxu0 %vm13183_vm0, %v12253_v15  ;;  %11708 = vmatprep.mubr.msk.f32.mxu0 %vm12252_vm4, %v12251_v63  ;;  %v14317_v50 = vadd.f32 %v7345_v52, %v7342_v23 }
 0x623   :  { %11756 = vmatpush3.msk.msra.mxu1 %vm13098_vm12, %v12253_v15  ;;  %11709 = vmatmul.mubr.f32.vlgmr.msra.gmra.mxu0 %v6773_v27 }
 0x624   :  { %11730 = vmatprep.subr.mxu0 %v12251_v63  ;;  %11757 = vmatprep.subr.mxu1 %v12251_v63  ;;  %v5975_v17 = vpop.f32.mrf.mxu1 }
 0x625   :  { %11731 = vmatpush3.msra.mxu0 %v13090_v55  ;;  %11758 = vmatpush3.msk.msra.mxu1 %vm13111_vm13, %v12253_v15 }
 0x626   :  { %11732 = vmatprep.subr.mxu0 %v12251_v63  ;;  %11759 = vmatprep.subr.mxu1 %v12251_v63  ;;  %v11539_v11 = vpop.f32.mrf.mxu1 }
 0x627   :  { %7449 = vrot.lane.b32.xlu0 %v7447_v1, %s12250_s12  ;;  %11733 = vmatpush3.msra.mxu0 %v13115_v59  ;;  %v5807_v59 = vadd.f32 %v14232_v43, %v14183_v61 }
 0x628   :  { %11760 = vmatpush3.msk.msra.mxu1 %vm13130_vm14, %v12253_v15  ;;  %11734 = vmatprep.subr.mxu0 %v12251_v63 }
 0x629   :  { %11761 = vmatprep.subr.mxu1 %v12251_v63  ;;  %11735 = vmatpush3.msra.mxu0 %v13134_v2 }
 0x62a   :  { %11762 = vmatpush3.msk.msra.mxu1 %vm13147_vm15, %v12253_v15  ;;  %11736 = vmatprep.subr.mxu0 %v12251_v63 }
 0x62b   :  { %11763 = vmatprep.subr.mxu1 %v12251_v63  ;;  %11737 = vmatpush3.msra.mxu0 %v13157_v42  ;;  %v5895_v42 = vadd.f32 %v14281_v32, %v5807_v59 }
 0x62c   :  { %11764 = vmatpush3.msk.msra.mxu1 %vm13183_vm0, %v12253_v15  ;;  %11765 = vmatprep.mubr.msk.f32.mxu1 %vm12252_vm4, %v12251_v63 }
 0x62d   :  { %11738 = vmatprep.subr.mxu0 %v12251_v63  ;;  %11766 = vmatmul.mubr.f32.vlgmr.msra.gmra.mxu1 %v6771_v58 }
 0x62e   :  { %11787 = vmatprep.subr.mxu1 %v12251_v63  ;;  %11739 = vmatpush3.msra.mxu0 %v13176_v16  ;;  %v6070_v55 = vpop.f32.mrf.mxu0 }
 0x62f   :  { %11788 = vmatpush3.msk.msra.mxu1 %vm1186_vm7, %v13060_v5  ;;  %11740 = vmatprep.subr.mxu0 %v12251_v63  ;;  %v5976_v5 = vadd.f32 %v5975_v17, %v5895_v42  ;;  %v7375_v17 = vstv %s10107_s18  ;;  %vm9529_vm7 = vcmask 1041409  }
 0x630   :  { %11789 = vmatprep.subr.mxu1 %v12251_v63  ;;  %11741 = vmatpush3.msra.mxu0 %v13201_v0  ;;  %v11558_v2 = vpop.f32.mrf.mxu0 }
 0x631   :  { %11790 = vmatpush3.msk.msra.mxu1 %vm13069_vm9, %v12253_v15  ;;  %11742 = vmatprep.subr.mxu0 %v12251_v63  ;;  %v6071_v20 = vadd.f32 %v6070_v55, %v5976_v5  ;;  %v7416_v5 = vstv %s10110_s19 }
 0x632   :  { %11791 = vmatprep.subr.mxu1 %v12251_v63  ;;  %11743 = vmatpush3.msra.mxu0 %v13216_v41 }
 0x633   :  { %11792 = vmatpush3.msk.msra.mxu1 %vm13084_vm10, %v12253_v15  ;;  %11744 = vmatprep.subr.mxu0 %v12251_v63 }
 0x634   :  { %11793 = vmatprep.subr.mxu1 %v12251_v63  ;;  %11745 = vmatpush3.msra.mxu0 %v13242_v40 }
 0x635   :  { %11746 = vmatprep.mubr.msk.f32.mxu0 %vm12252_vm4, %v12251_v63  ;;  %11794 = vmatpush3.msk.msra.mxu1 %vm13098_vm12, %v12253_v15 }
 0x636   :  { %11747 = vmatmul.mubr.f32.vlgmr.msra.gmra.mxu0 %v14245_v30  ;;  %11768 = vmatprep.subr.mxu0 %v12251_v63  ;;  %v6149_v51 = vpop.f32.mrf.mxu1 }
 0x637   :  { %11795 = vmatprep.subr.mxu1 %v12251_v63  ;;  %11769 = vmatpush3.msra.mxu0 %v13121_v39  ;;  %v14385_v16 = vadd.f32 %v6149_v51, %v6071_v20  ;;  %v7417_v20 = vmul.f32 %v7416_v5, %v14165_v7 }
 0x638   :  { %11796 = vmatpush3.msk.msra.mxu1 %vm13111_vm13, %v12253_v15  ;;  %11770 = vmatprep.subr.mxu0 %v12251_v63  ;;  %v11577_v56 = vpop.f32.mrf.mxu1 }
 0x639   :  { %11797 = vmatprep.subr.mxu1 %v12251_v63  ;;  %11771 = vmatpush3.msra.mxu0 %v13155_v37  ;;  %v7351_v4 = vmul.f32 %v7349_v44, %v14385_v16  ;;  %v7235_v37 = vmul.f32 %v7233_v9, %v14043_v33  ;;  %v7429_v46 = vmul.f32 %v7427_v13, %v14385_v16 }
 0x63a   :  { %11798 = vmatpush3.msk.msra.mxu1 %vm13130_vm14, %v12253_v15  ;;  %11772 = vmatprep.subr.mxu0 %v12251_v63  ;;  %v7444_v45 = vmul.f32 %v7442_v38, %v14385_v16  ;;  %v7346_v52 = vmul.f32 %v7344_v14, %v14385_v16  ;;  %v7376_v38 = vmul.f32 %v7375_v17, %v14165_v7 }
 0x63b   :  { %11799 = vmatprep.subr.mxu1 %v12251_v63  ;;  %11773 = vmatpush3.msra.mxu0 %v13172_v62  ;;  %v7364_v62 = vmul.f32 %v7362_v53, %v14385_v16  ;;  %v7433_v25 = vrot.slane %v7429_v46, 2 }
 0x63c   :  { %11800 = vmatpush3.msk.msra.mxu1 %vm13147_vm15, %v12253_v15  ;;  %11774 = vmatprep.subr.mxu0 %v12251_v63  ;;  %v7448_v23 = vrot.slane %v7444_v45, 2  ;;  %v7380_v59 = vrot.slane %v7376_v38, 1  ;;  %v7457_v38 = vstv %s14469_s21 }
 0x63d   :  { %11801 = vmatprep.subr.mxu1 %v12251_v63  ;;  %11775 = vmatpush3.msra.mxu0 %v13199_v49  ;;  %v7388_v49 = vmul.f32 %v7386_v31, %v14385_v16 }
 0x63e   :  { %11802 = vmatpush3.msk.msra.mxu1 %vm13183_vm0, %v12253_v15  ;;  %11803 = vmatprep.mubr.msk.f32.mxu1 %vm12252_vm4, %v12251_v63 }
 0x63f   :  { %11776 = vmatprep.subr.mxu0 %v12251_v63  ;;  %11804 = vmatmul.mubr.f32.vlgmr.msra.gmra.mxu1 %v14218_v10  ;;  %v7392_v9 = vrot.slane %v7388_v49, 1 }
 0x640   :  { %11777 = vmatpush3.msra.mxu0 %v13214_v60  ;;  %7356 = vrot.lane.b32.xlu1 %v7351_v4, %s12249_s9  ;;  %v7264_v60 = vmul.f32 %v7262_v36, %v14043_v33  ;;  %v7403_v36 = vmul.f32 %v7401_v29, %v14385_v16  ;;  %v7305_v29 = vmul.f32 %v7303_v21, %v14043_v33  ;;  %v7421_v4 = vrot.slane %v7417_v20, 2 }
 0x641   :  { %11778 = vmatprep.subr.mxu0 %v12251_v63  ;;  %11784 = vmatprep.mubr.msk.f32.mxu0 %vm12252_vm4, %v12251_v63  ;;  %v7244_v39 = vpop.permute.xlu1 %7243 }
 0x642   :  { %11779 = vmatpush3.msra.mxu0 %v13236_v12  ;;  %11811 = vmatprep.subr.mxu1 %v12251_v63  ;;  %v7248_v44 = vadd.f32 %v7244_v39, %v7235_v37  ;;  %v7268_v31 = vrot.slane %v7264_v60, 1  ;;  %v7407_v58 = vrot.slane %v7403_v36, 1  ;;  %v7309_v19 = vrot.slane %v7305_v29, 2 }
 0x643   :  { %11780 = vmatprep.subr.mxu0 %v12251_v63  ;;  %11813 = vmatprep.mubr.msk.f32.mxu1 %vm12252_vm4, %v12251_v63 }
 0x644   :  { %11781 = vmatpush3.msra.mxu0 %v13251_v28  ;;  %7369 = vrot.lane.b32.xlu1 %v7364_v62, %s12250_s12 }
 0x645   :  { %11782 = vmatprep.subr.mxu0 %v12251_v63  ;;  %v7257_v61 = vpop.permute.xlu1 %7256 }
 0x646   :  { %11783 = vmatpush3.msra.mxu0 %v13272_v6  ;;  %v7261_v53 = vadd.f32 %v7257_v61, %v7248_v44 }
 0x647   :  { %11785 = vmatmul.mubr.f32.vlgmr.msra.gmra.mxu0 %v14218_v10  ;;  %11806 = vmatprep.subr.mxu0 %v12251_v63 }
 0x648   :  { %7395 = vrot.lane.b32.xlu1 %v7392_v9, %s12249_s9  ;;  %v7272_v43 = vadd.f32 %v7268_v31, %v7261_v53  ;;  %11808 = vmatprep.mubr.msk.f32.mxu0 %vm12252_vm4, %v12251_v63 }
 0x649   :  { %v7283_v30 = vpop.permute.xlu1 %7282 }
 0x64a   :  { %v7287_v10 = vadd.f32 %v7283_v30, %v7272_v43 }
 0x64c   :  { %7410 = vrot.lane.b32.xlu1 %v7407_v58, %s12250_s12  ;;  %v7418_v58 = vmul.f32 %v7416_v5, %v14385_v16 }
 0x64d   :  { %v7298_v32 = vpop.permute.xlu1 %7297 }
 0x64e   :  { %v7302_v3 = vadd.f32 %v7298_v32, %v7287_v10 }
 0x650   :  { %7436 = vrot.lane.b32.xlu1 %v7433_v25, %s12249_s9  ;;  %v7313_v8 = vadd.f32 %v7309_v19, %v7302_v3  ;;  %v7422_v25 = vrot.slane %v7418_v58, 2 }
 0x651   :  { %v7324_v26 = vpop.permute.xlu1 %7323 }
 0x652   :  { %v7328_v13 = vadd.f32 %v7324_v26, %v7313_v8 }
 0x654   :  { %7451 = vrot.lane.b32.xlu1 %v7448_v23, %s12250_s12 }
 0x655   :  { %v7339_v33 = vpop.permute.xlu1 %7338 }
 0x656   :  { %v7343_v21 = vadd.f32 %v7339_v33, %v7328_v13 }
 0x658   :  { %v7348_v27 = vadd.f32 %v7346_v52, %v7343_v21 }
 0x67f   :  { %v7355_v34 = vpop.permute.xlu0 %7354 }
 0x680   :  { %v7360_v1 = vadd.f32 %v7355_v34, %v14317_v50  ;;  %v7377_v50 = vmul.f32 %v7375_v17, %v14385_v16 }
 0x682   :  { %v7381_v43 = vrot.slane %v7377_v50, 1 }
 0x685   :  { %v7368_v11 = vpop.permute.xlu0 %7367 }
 0x686   :  { %v7373_v55 = vadd.f32 %v7368_v11, %v7360_v1 }
 0x688   :  { %v7384_v2 = vadd.f32 %v7380_v59, %v7373_v55  ;;  %v7475_v59 = vstv %s14471_s22 }
 0x689   :  { %v7394_v42 = vpop.permute.xlu0 %7393 }
 0x68a   :  { %v7399_v51 = vadd.f32 %v7394_v42, %v7384_v2  ;;  %v7499_v2 = vstv %s14473_s0 }
 0x68f   :  { %v7409_v56 = vpop.permute.xlu0 %7408 }
 0x690   :  { %v7414_v14 = vadd.f32 %v7409_v56, %v7399_v51  ;;  %v7514_v56 = vstv %s14476_s23 }
 0x692   :  { %v7425_v39 = vadd.f32 %v7421_v4, %v7414_v14 }
 0x693   :  { %v7435_v13 = vpop.permute.xlu0 %7434 }
 0x694   :  { %v7440_v1 = vadd.f32 %v7435_v13, %v7425_v39 }
 0x699   :  { %v7450_v34 = vpop.permute.xlu0 %7449 }
 0x69a   :  { %v7455_v55 = vadd.f32 %v7450_v34, %v7440_v1 }
 0x6a4   :  { %v6346_v37 = vpop.f32.mrf.mxu1 }
 0x6a6   :  { %v11615_v62 = vpop.f32.mrf.mxu1 }
 0x6a7   :  { %v7540_v62 = vstv %s14484_s24 }
 0x6ac   :  { %v6235_v49 = vpop.f32.mrf.mxu0 }
 0x6ad   :  { %v6347_v8 = vadd.f32 %v6346_v37, %v6235_v49 }
 0x6ae   :  { %v11596_v60 = vpop.f32.mrf.mxu0 }
 0x6b2   :  { %v7357_v44 = vpop.permute.xlu1 %7356 }
 0x6b3   :  { %v7361_v9 = vadd.f32 %v7357_v44, %v7348_v27  ;;  %v7462_v27 = vstv %s14467_s20  ;;  %v7555_v44 = vstv %s14493_s3 }
 0x6b4   :  { %v6515_v61 = vpop.f32.mrf.mxu1 }
 0x6b6   :  { %v7370_v36 = vpop.permute.xlu1 %7369  ;;  %v11653_v53 = vpop.f32.mrf.mxu1 }
 0x6b7   :  { %v7374_v31 = vadd.f32 %v7370_v36, %v7361_v9 }
 0x6b9   :  { %v7385_v30 = vadd.f32 %v7381_v43, %v7374_v31 }
 0x6ba   :  { %v7396_v7 = vpop.permute.xlu1 %7395 }
 0x6bb   :  { %v7400_v46 = vadd.f32 %v7396_v7, %v7385_v30 }
 0x6bd   :  { %v6434_v29 = vpop.f32.mrf.mxu0 }
 0x6be   :  { %v7411_v10 = vpop.permute.xlu1 %7410  ;;  %v6435_v23 = vadd.f32 %v6434_v29, %v6347_v8 }
 0x6bf   :  { %v7415_v32 = vadd.f32 %v7411_v10, %v7400_v46  ;;  %v11634_v45 = vpop.f32.mrf.mxu0 }
 0x6c0   :  { %v6516_v16 = vadd.f32 %v6515_v61, %v6435_v23 }
 0x6c1   :  { %v14465_v3 = vadd.f32 %v7422_v25, %v7415_v32 }
 0x6c2   :  { %v7437_v32 = vpop.permute.xlu1 %7436 }
 0x6c3   :  { %v7441_v13 = vadd.f32 %v7437_v32, %v14465_v3 }
 0x6c6   :  { %v6689_v19 = vpop.f32.mrf.mxu1 }
 0x6c8   :  { %v11691_v26 = vpop.f32.mrf.mxu1 }
 0x6c9   :  { %v7452_v26 = vpop.permute.xlu1 %7451 }
 0x6cf   :  { %v6610_v33 = vpop.f32.mrf.mxu0 }
 0x6d0   :  { %v6611_v21 = vadd.f32 %v6610_v33, %v6516_v16  ;;  %v7456_v33 = vadd.f32 %v7452_v26, %v7441_v13 }
 0x6d1   :  { %v11672_v52 = vpop.f32.mrf.mxu0 }
 0x6d2   :  { %v14478_v17 = vadd.f32 %v6689_v19, %v6611_v21 }
 0x6d4   :  { %v7463_v11 = vmul.f32 %v7462_v27, %v14478_v17  ;;  %v7458_v42 = vmul.f32 %v7457_v38, %v14478_v17  ;;  %v7476_v20 = vmul.f32 %v7475_v59, %v14478_v17  ;;  %v7500_v51 = vmul.f32 %v7499_v2, %v14478_v17 }
 0x6d5   :  { %v7515_v37 = vmul.f32 %v7514_v56, %v14478_v17  ;;  %v7541_v60 = vmul.f32 %v7540_v62, %v14478_v17  ;;  %v7556_v9 = vmul.f32 %v7555_v44, %v14478_v17 }
 0x6d6   :  { %7467 = vrot.lane.b32.xlu0 %v7463_v11, %s12249_s9  ;;  %v14488_v5 = vadd.f32 %v7458_v42, %v7455_v55  ;;  %v7504_v39 = vrot.slane %v7500_v51, 1 }
 0x6d7   :  { %v7519_v49 = vrot.slane %v7515_v37, 1  ;;  %v7545_v61 = vrot.slane %v7541_v60, 2  ;;  %v7560_v53 = vrot.slane %v7556_v9, 2  ;;  %v7529_v37 = vstv %s10119_s25 }
 0x6d8   :  { %v7530_v60 = vmul.f32 %v7529_v37, %v14478_v17 }
 0x6da   :  { %v6886_v14 = vpop.f32.mrf.mxu1  ;;  %7480 = vrot.lane.b32.xlu0 %v7476_v20, %s12250_s12  ;;  %v7534_v9 = vrot.slane %v7530_v60, 2 }
 0x6dc   :  { %v11729_v4 = vpop.f32.mrf.mxu1 }
 0x6de   :  { %7506 = vrot.lane.b32.xlu0 %v7504_v39, %s12249_s9 }
 0x6e2   :  { %7521 = vrot.lane.b32.xlu0 %v7519_v49, %s12250_s12 }
 0x6e3   :  { %v6775_v50 = vpop.f32.mrf.mxu0 }
 0x6e4   :  { %v6887_v46 = vadd.f32 %v6886_v14, %v6775_v50 }
 0x6e5   :  { %v11710_v36 = vpop.f32.mrf.mxu0 }
 0x6e6   :  { %7547 = vrot.lane.b32.xlu0 %v7545_v61, %s12249_s9 }
 0x6ea   :  { %7562 = vrot.lane.b32.xlu0 %v7560_v53, %s12250_s12 }
 0x6ed   :  { %v7055_v31 = vpop.f32.mrf.mxu1 }
 0x6ef   :  { %v11767_v43 = vpop.f32.mrf.mxu1 }
 0x6f6   :  { %v6974_v30 = vpop.f32.mrf.mxu0 }
 0x6f7   :  { %v6975_v10 = vadd.f32 %v6974_v30, %v6887_v46 }
 0x6f8   :  { %v11748_v7 = vpop.f32.mrf.mxu0 }
 0x6f9   :  { %v7056_v25 = vadd.f32 %v7055_v31, %v6975_v10 }
 0x6ff   :  { %v7229_v58 = vpop.f32.mrf.mxu1 }
 0x701   :  { %v11805_v29 = vpop.f32.mrf.mxu1 }
 0x707   :  { %v7150_v45 = vpop.f32.mrf.mxu0 }
 0x708   :  { %v7151_v19 = vadd.f32 %v7150_v45, %v7056_v25 }
 0x709   :  { %v11786_v8 = vpop.f32.mrf.mxu0 }
 0x70a   :  { %v7230_v23 = vadd.f32 %v7229_v58, %v7151_v19 }
 0x70c   :  { %v7464_v16 = vmul.f32 %v7462_v27, %v7230_v23  ;;  %v7459_v21 = vmul.f32 %v7457_v38, %v7230_v23  ;;  %v7477_v34 = vmul.f32 %v7475_v59, %v7230_v23  ;;  %v7501_v1 = vmul.f32 %v7499_v2, %v7230_v23 }
 0x70d   :  { %v7516_v55 = vmul.f32 %v7514_v56, %v7230_v23  ;;  %v7542_v20 = vmul.f32 %v7540_v62, %v7230_v23  ;;  %v7557_v3 = vmul.f32 %v7555_v44, %v7230_v23  ;;  %v7488_v38 = vstv %s10116_s5 }
 0x70e   :  { %7469 = vrot.lane.b32.xlu1 %v7464_v16, %s12249_s9  ;;  %v7461_v52 = vadd.f32 %v7459_v21, %v7456_v33  ;;  %v7505_v11 = vrot.slane %v7501_v1, 1  ;;  %v7489_v2 = vmul.f32 %v7488_v38, %v14478_v17  ;;  %v7490_v31 = vmul.f32 %v7488_v38, %v7230_v23 }
 0x70f   :  { %v7520_v42 = vrot.slane %v7516_v55, 1  ;;  %v7546_v51 = vrot.slane %v7542_v20, 2  ;;  %v7561_v27 = vrot.slane %v7557_v3, 2  ;;  %v7531_v10 = vmul.f32 %v7529_v37, %v7230_v23 }
 0x710   :  { %v7493_v39 = vrot.slane %v7489_v2, 1  ;;  %v7494_v58 = vrot.slane %v7490_v31, 1  ;;  %v7570_v16 = vstv %s14876_s6 }
 0x711   :  { %v7535_v8 = vrot.slane %v7531_v10, 2 }
 0x712   :  { %7482 = vrot.lane.b32.xlu1 %v7477_v34, %s12250_s12 }
 0x716   :  { %7508 = vrot.lane.b32.xlu1 %v7505_v11, %s12249_s9 }
 0x71a   :  { %7523 = vrot.lane.b32.xlu1 %v7520_v42, %s12250_s12 }
 0x71e   :  { %7549 = vrot.lane.b32.xlu1 %v7546_v51, %s12249_s9 }
 0x722   :  { %7564 = vrot.lane.b32.xlu1 %v7561_v27, %s12250_s12 }
 0x748   :  { %v7468_v59 = vpop.permute.xlu0 %7467 }
 0x749   :  { %v7473_v56 = vadd.f32 %v7468_v59, %v14488_v5 }
 0x74c   :  { %v7481_v14 = vpop.permute.xlu0 %7480 }
 0x74d   :  { %v7486_v4 = vadd.f32 %v7481_v14, %v7473_v56 }
 0x74f   :  { %v7497_v62 = vadd.f32 %v7493_v39, %v7486_v4 }
 0x750   :  { %v7507_v49 = vpop.permute.xlu0 %7506 }
 0x751   :  { %v7512_v44 = vadd.f32 %v7507_v49, %v7497_v62 }
 0x754   :  { %v7522_v50 = vpop.permute.xlu0 %7521 }
 0x755   :  { %v7527_v61 = vadd.f32 %v7522_v50, %v7512_v44 }
 0x757   :  { %v7538_v36 = vadd.f32 %v7534_v9, %v7527_v61 }
 0x758   :  { %v7548_v5 = vpop.permute.xlu0 %7547 }
 0x759   :  { %v7553_v19 = vadd.f32 %v7548_v5, %v7538_v36 }
 0x75c   :  { %v7563_v25 = vpop.permute.xlu0 %7562 }
 0x75d   :  { %v7568_v26 = vadd.f32 %v7563_v25, %v7553_v19  ;;  %v7612_v25 = vstv %s14877_s7  ;;  %s12254_s7 = smov 14  }
 0x75f   :  { %v7571_v21 = vadd.f32 %v7570_v16, %v7568_v26 }
 0x761   :  { %v7573_v11 = vmax.f32 %v7571_v21, 0.0 }
 0x763   :  { %v7576_v42 = vsel %vm7575_vm1, %v7573_v11, 0.0 }
 0x780   :  { %v7470_v53 = vpop.permute.xlu1 %7469 }
 0x781   :  { %v7474_v43 = vadd.f32 %v7470_v53, %v7461_v52 }
 0x784   :  { %v7483_v30 = vpop.permute.xlu1 %7482 }
 0x785   :  { %v7487_v7 = vadd.f32 %v7483_v30, %v7474_v43 }
 0x787   :  { %v7498_v46 = vadd.f32 %v7494_v58, %v7487_v7 }
 0x788   :  { %v7509_v29 = vpop.permute.xlu1 %7508 }
 0x789   :  { %v7513_v32 = vadd.f32 %v7509_v29, %v7498_v46 }
 0x78c   :  { %v7524_v45 = vpop.permute.xlu1 %7523 }
 0x78d   :  { %v7528_v17 = vadd.f32 %v7524_v45, %v7513_v32  ;;  %v7628_v32 = vsel %vm7627_vm2, %v12759_v57, 0 }
 0x78e   :  { %v7701_v45 = vsub.f32 %v7628_v32, %v7628_v32 }
 0x78f   :  { %v7539_v13 = vadd.f32 %v7535_v8, %v7528_v17  ;;  %v7616_v8 = vstv %s14878_s8 }
 0x790   :  { %v7550_v33 = vpop.permute.xlu1 %7549 }
 0x791   :  { %v7554_v52 = vadd.f32 %v7550_v33, %v7539_v13  ;;  %v14532_v13 = vand.u32 4294901760, %v7701_v45 }
 0x794   :  { %v7565_v34 = vpop.permute.xlu1 %7564 }
 0x795   :  { %v7569_v1 = vadd.f32 %v7565_v34, %v7554_v52  ;;  %v7703_v34 = vsub.f32 %v7701_v45, %v14532_v13 }
 0x797   :  { %v7572_v55 = vadd.f32 %v7570_v16, %v7569_v1 }
 0x799   :  { %v7574_v23 = vmax.f32 %v7572_v55, 0.0 }
 0x79b   :  { %v7577_v20 = vsel %vm7575_vm1, %v7574_v23, 0.0 }
 0x79c   :  { %v7578_v51 = vadd.f32 %v7577_v20, %v7576_v42  ;;  %v7704_v42 = vand.u32 4294901760, %v7703_v34 }
 0x79e   :  { %v7579_v3 = vsel %vm7575_vm1, %v7578_v51, 0.0 }
 0x79f   :  { %7580 = vadd.xlane.f32.xlu0 %v7579_v3 }
 0x828   :  { %v7581_v27 = vpop.xlane.xlu0 %7580 }
 0x829   :  { %v7582_v38 = vrot.slane %v7581_v27, 4 }
 0x82b   :  { %v7583_v59 = vadd.f32 %v7582_v38, %v7581_v27 }
 0x82d   :  { %v7584_v2 = vrot.slane %v7583_v59, 2 }
 0x82f   :  { %v7585_v56 = vadd.f32 %v7584_v2, %v7583_v59 }
 0x831   :  { %v7586_v14 = vrot.slane %v7585_v56, 1 }
 0x833   :  { %v7587_v4 = vadd.f32 %v7586_v14, %v7585_v56 }
 0x835   :  { %12076 = vpush %v7587_v4 }
 0x866   :  { %s12077_s6 = spop %12076 }
 0x867   :  { %v7589_v39 = vstv %s12077_s6 }
 0x868   :  { %v7590_v37 = vmul.f32 0.0034482758, %v7589_v39 }
 0x86a   :  { %v7591_v62 = vsub.f32 %v7573_v11, %v7590_v37  ;;  %v7592_v49 = vsub.f32 %v7574_v23, %v7590_v37  ;;  %v8544_v37 = vsel %vm7630_vm3, %v13144_v35, 0 }
 0x86c   :  { %v7593_v60 = vmul.f32 %v7591_v62, %v7591_v62  ;;  %v7594_v44 = vmul.f32 %v7592_v49, %v7592_v49 }
 0x86e   :  { %v7595_v50 = vsel %vm7575_vm1, %v7593_v60, 0.0  ;;  %v7596_v61 = vsel %vm7575_vm1, %v7594_v44, 0.0 }
 0x86f   :  { %v7597_v9 = vadd.f32 %v7596_v61, %v7595_v50 }
 0x871   :  { %v7598_v36 = vsel %vm7575_vm1, %v7597_v9, 0.0 }
 0x872   :  { %7599 = vadd.xlane.f32.xlu1 %v7598_v36 }
 0x8fb   :  { %v7600_v53 = vpop.xlane.xlu1 %7599 }
 0x8fc   :  { %v7601_v31 = vrot.slane %v7600_v53, 4 }
 0x8fe   :  { %v7602_v43 = vadd.f32 %v7601_v31, %v7600_v53 }
 0x900   :  { %v7603_v30 = vrot.slane %v7602_v43, 2 }
 0x902   :  { %v7604_v7 = vadd.f32 %v7603_v30, %v7602_v43 }
 0x904   :  { %v7605_v58 = vrot.slane %v7604_v7, 1 }
 0x906   :  { %v7606_v5 = vadd.f32 %v7605_v58, %v7604_v7 }
 0x908   :  { %12078 = vpush %v7606_v5 }
 0x939   :  { %s12079_s4 = spop %12078 }
 0x93a   :  { %v7608_v46 = vstv %s12079_s4 }
 0x93b   :  { %v7609_v29 = vmul.f32 0.0034482758, %v7608_v46 }
 0x93d   :  { %v7610_v10 = vadd.f32 1e-05, %v7609_v29 }
 0x93f   :  { %12102 = vrsqrt.f32 %v7610_v10 }
 0x94c   :  { %v12103_v19 = vpop.eup %12102 }
 0x94d   :  { %v7613_v17 = vmul.f32 %v12103_v19, %v7612_v25 }
 0x94f   :  { %v7614_v26 = vmul.f32 %v7613_v17, %v7591_v62  ;;  %v7615_v16 = vmul.f32 %v7613_v17, %v7592_v49  ;;  %v14604_v62 = vsub.f32 %v8544_v37, %v8544_v37 }
 0x951   :  { %v7617_v33 = vadd.f32 %v7616_v8, %v7614_v26  ;;  %v7618_v21 = vadd.f32 %v7616_v8, %v7615_v16 }
 0x953   :  { %v7621_v52 = vrot.slane %v7617_v33, 1  ;;  %v7622_v1 = vrot.slane %v7618_v21, 1 }
 0x955   :  { %v7625_v11 = vmax.f32 %v7617_v33, %v7621_v52  ;;  %v7626_v55 = vmax.f32 %v7618_v21, %v7622_v1 }
 0x957   :  { %v7632_v23 = vsel %vm7630_vm3, %v7625_v11, 0  ;;  %v8081_v20 = vsel %vm7630_vm3, %v7626_v55, 0 }
 0x958   :  { %v7665_v51 = vand.u32 4294901760, %v7632_v23  ;;  %v8114_v27 = vand.u32 4294901760, %v8081_v20 }
 0x95a   :  { %11807 = vmatpush3.msra.mxu0 %v7665_v51  ;;  %v7742_v3 = vsub.f32 %v7632_v23, %v7665_v51  ;;  %v8191_v2 = vsub.f32 %v8081_v20, %v8114_v27 }
 0x95b   :  { %11809 = vmatmul.mubr.f32.vlgmr.msra.gmra.mxu0 %v7704_v42  ;;  %11816 = vmatprep.subr.mxu0 %v12251_v63 }
 0x95c   :  { %11817 = vmatpush3.msra.mxu0 %v7742_v3  ;;  %11818 = vmatprep.mubr.msk.f32.mxu0 %vm12252_vm4, %v12251_v63  ;;  %v7743_v38 = vand.u32 4294901760, %v7742_v3  ;;  %v8192_v14 = vand.u32 4294901760, %v8191_v2 }
 0x95d   :  { %11826 = vmatprep.subr.mxu0 %v12251_v63 }
 0x95e   :  { %v7744_v59 = vsub.f32 %v7742_v3, %v7743_v38  ;;  %v8193_v4 = vsub.f32 %v8191_v2, %v8192_v14 }
 0x95f   :  { %11819 = vmatmul.mubr.f32.vlgmr.msra.gmra.mxu0 %v7701_v45 }
 0x960   :  { %11827 = vmatpush3.msra.mxu0 %v7743_v38  ;;  %v7745_v56 = vand.u32 4294901760, %v7744_v59  ;;  %11828 = vmatprep.mubr.msk.f32.mxu0 %vm12252_vm4, %v12251_v63  ;;  %v8194_v39 = vand.u32 4294901760, %v8193_v4 }
 0x961   :  { %11836 = vmatprep.subr.mxu0 %v12251_v63 }
 0x962   :  { %11812 = vmatpush3.msra.mxu1 %v7745_v56 }
 0x963   :  { %11814 = vmatmul.mubr.msk.f32.vlgmr.msra.gmra.mxu1 %vm7627_vm2, %v12759_v57  ;;  %11821 = vmatprep.subr.mxu1 %v12251_v63 }
 0x964   :  { %11829 = vmatmul.mubr.msk.f32.vlgmr.msra.gmra.mxu0 %vm7627_vm2, %v12759_v57  ;;  %11822 = vmatpush3.msra.mxu1 %v7665_v51 }
 0x965   :  { %11837 = vmatpush3.msra.mxu0 %v8114_v27  ;;  %11823 = vmatprep.mubr.msk.f32.mxu1 %vm12252_vm4, %v12251_v63 }
 0x966   :  { %11831 = vmatprep.subr.mxu1 %v12251_v63  ;;  %11838 = vmatprep.mubr.msk.f32.mxu0 %vm12252_vm4, %v12251_v63 }
 0x967   :  { %11846 = vmatprep.subr.mxu0 %v12251_v63  ;;  %11824 = vmatmul.mubr.f32.vlgmr.msra.gmra.mxu1 %v14532_v13 }
 0x968   :  { %11832 = vmatpush3.msra.mxu1 %v7665_v51  ;;  %11839 = vmatmul.mubr.f32.vlgmr.msra.gmra.mxu0 %v7704_v42 }
 0x969   :  { %11847 = vmatpush3.msra.mxu0 %v8191_v2  ;;  %11833 = vmatprep.mubr.msk.f32.mxu1 %vm12252_vm4, %v12251_v63 }
 0x96a   :  { %11841 = vmatprep.subr.mxu1 %v12251_v63  ;;  %11848 = vmatprep.mubr.msk.f32.mxu0 %vm12252_vm4, %v12251_v63 }
 0x96b   :  { %11856 = vmatprep.subr.mxu0 %v12251_v63  ;;  %11834 = vmatmul.mubr.msk.f32.vlgmr.msra.gmra.mxu1 %vm7627_vm2, %v12759_v57 }
 0x96c   :  { %11842 = vmatpush3.msra.mxu1 %v8194_v39  ;;  %11849 = vmatmul.mubr.f32.vlgmr.msra.gmra.mxu0 %v7701_v45 }
 0x96d   :  { %11857 = vmatpush3.msra.mxu0 %v8192_v14  ;;  %11843 = vmatprep.mubr.msk.f32.mxu1 %vm12252_vm4, %v12251_v63 }
 0x96e   :  { %11851 = vmatprep.subr.mxu1 %v12251_v63  ;;  %11858 = vmatprep.mubr.msk.f32.mxu0 %vm12252_vm4, %v12251_v63 }
 0x96f   :  { %11844 = vmatmul.mubr.msk.f32.vlgmr.msra.gmra.mxu1 %vm7627_vm2, %v12759_v57  ;;  %11866 = vmatprep.subr.mxu0 %v12251_v63 }
 0x970   :  { %11852 = vmatpush3.msra.mxu1 %v8114_v27  ;;  %11853 = vmatprep.mubr.msk.f32.mxu1 %vm12252_vm4, %v12251_v63 }
 0x971   :  { %11861 = vmatprep.subr.mxu1 %v12251_v63  ;;  %11859 = vmatmul.mubr.msk.f32.vlgmr.msra.gmra.mxu0 %vm7627_vm2, %v12759_v57 }
 0x972   :  { %11867 = vmatpush3.msk.msra.mxu0 %vm7630_vm3, %v13144_v35  ;;  %11874 = vmatprep.mubr.msk.f32.mxu0 %vm12252_vm4, %v12251_v63 }
 0x973   :  { %11854 = vmatmul.mubr.f32.vlgmr.msra.gmra.mxu1 %v14532_v13  ;;  %11868 = vmatprep.subr.mxu0 %v12251_v63 }
 0x974   :  { %11862 = vmatpush3.msra.mxu1 %v8114_v27  ;;  %11863 = vmatprep.mubr.msk.f32.mxu1 %vm12252_vm4, %v12251_v63 }
 0x975   :  { %11877 = vmatprep.subr.mxu1 %v12251_v63  ;;  %11869 = vmatpush3.msk.msra.mxu0 %vm13130_vm14, %v12253_v15 }
 0x976   :  { %11870 = vmatprep.subr.mxu0 %v12251_v63 }
 0x977   :  { %11864 = vmatmul.mubr.msk.f32.vlgmr.msra.gmra.mxu1 %vm7627_vm2, %v12759_v57  ;;  %11871 = vmatpush3.msk.msra.mxu0 %vm13147_vm15, %v12253_v15  ;;  %v14607_v57 = vand.u32 4294901760, %v14604_v62 }
 0x978   :  { %11885 = vmatprep.mubr.msk.f32.mxu1 %vm12252_vm4, %v12251_v63  ;;  %11872 = vmatprep.subr.mxu0 %v12251_v63 }
 0x979   :  { %11873 = vmatpush3.msk.msra.mxu0 %vm13183_vm0, %v12253_v15  ;;  %v8653_v49 = vsub.f32 %v14604_v62, %v14607_v57 }
 0x97a   :  { %11888 = vmatprep.subr.mxu0 %v12251_v63 }
 0x97b   :  { %v14611_v60 = vand.u32 4294901760, %v8653_v49 }
 0x97d   :  { %11878 = vmatpush3.msra.mxu1 %v14611_v60 }
 0x97e   :  { %11879 = vmatprep.subr.mxu1 %v12251_v63 }
 0x97f   :  { %11880 = vmatpush3.msra.mxu1 %v13288_v24 }
 0x980   :  { %11881 = vmatprep.subr.mxu1 %v12251_v63 }
 0x981   :  { %11882 = vmatpush3.msra.mxu1 %v13295_v18 }
 0x982   :  { %11883 = vmatprep.subr.mxu1 %v12251_v63 }
 0x983   :  { %11884 = vmatpush3.msra.mxu1 %v13306_v48 }
 0x984   :  { %11899 = vmatprep.subr.mxu1 %v12251_v63 }
 0xa1b   :  { %v7706_v44 = vpop.f32.mrf.mxu0 }
 0xa1d   :  { %v11810_v50 = vpop.f32.mrf.mxu0 }
 0xa1f   :  { %v7856_v61 = vpop.f32.mrf.mxu0 }
 0xa21   :  { %v11820_v9 = vpop.f32.mrf.mxu0 }
 0xa23   :  { %v7782_v36 = vpop.f32.mrf.mxu1 }
 0xa24   :  { %v7783_v53 = vadd.f32 %v7782_v36, %v7706_v44  ;;  %v8004_v31 = vpop.f32.mrf.mxu0 }
 0xa25   :  { %v11815_v43 = vpop.f32.mrf.mxu1 }
 0xa26   :  { %v7857_v30 = vadd.f32 %v7856_v61, %v7783_v53  ;;  %v11830_v7 = vpop.f32.mrf.mxu0 }
 0xa27   :  { %v7930_v58 = vpop.f32.mrf.mxu1 }
 0xa28   :  { %v7931_v5 = vadd.f32 %v7930_v58, %v7857_v30  ;;  %v8155_v46 = vpop.f32.mrf.mxu0 }
 0xa29   :  { %v11825_v29 = vpop.f32.mrf.mxu1 }
 0xa2a   :  { %v8005_v10 = vadd.f32 %v8004_v31, %v7931_v5  ;;  %v11840_v32 = vpop.f32.mrf.mxu0 }
 0xa2b   :  { %v8076_v25 = vpop.f32.mrf.mxu1 }
 0xa2c   :  { %v8077_v45 = vadd.f32 %v8076_v25, %v8005_v10  ;;  %v8305_v19 = vpop.f32.mrf.mxu0 }
 0xa2d   :  { %v11835_v17 = vpop.f32.mrf.mxu1 }
 0xa2e   :  { %8531 = vrot.lane.b32.xlu0 %v8077_v45, %s12249_s9  ;;  %v11850_v8 = vpop.f32.mrf.mxu0 }
 0xa2f   :  { %v8231_v26 = vpop.f32.mrf.mxu1 }
 0xa30   :  { %v8232_v13 = vadd.f32 %v8231_v26, %v8155_v46 }
 0xa31   :  { %v11845_v16 = vpop.f32.mrf.mxu1  ;;  %v8453_v33 = vpop.f32.mrf.mxu0 }
 0xa32   :  { %v8306_v21 = vadd.f32 %v8305_v19, %v8232_v13 }
 0xa33   :  { %v8379_v52 = vpop.f32.mrf.mxu1  ;;  %v11860_v34 = vpop.f32.mrf.mxu0 }
 0xa34   :  { %v8380_v1 = vadd.f32 %v8379_v52, %v8306_v21  ;;  %v9542_v21 = vld [vmem:[#allocation17 + $0x8] sm:$0xff] }
 0xa35   :  { %v11855_v11 = vpop.f32.mrf.mxu1 }
 0xa36   :  { %v8454_v55 = vadd.f32 %v8453_v33, %v8380_v1  ;;  %v14796_v1 = vand.u32 4294901760, %v9542_v21 }
 0xa37   :  { %v8525_v23 = vpop.f32.mrf.mxu1 }
 0xa38   :  { %v8526_v42 = vadd.f32 %v8525_v23, %v8454_v55  ;;  %v9541_v55 = vld [vmem:[#allocation17] sm:$0xff] }
 0xa39   :  { %v11865_v20 = vpop.f32.mrf.mxu1 }
 0xa3a   :  { %8533 = vrot.lane.b32.xlu1 %v8526_v42, %s12249_s9  ;;  %v14801_v20 = vand.u32 4294901760, %v9541_v55 }
 0xaa0   :  { %v8532_v51 = vpop.permute.xlu0 %8531 }
 0xaa1   :  { %v8537_v3 = vmax.f32 %v8077_v45, %v8532_v51 }
 0xaa3   :  { %v8541_v27 = vsel %vm8539_vm5, %v8537_v3, 0  ;;  %v14807_v3 = vsub.f32 %v9541_v55, %v14801_v20 }
 0xaa4   :  { %v8615_v38 = vand.u32 4294901760, %v8541_v27 }
 0xaa6   :  { %v8616_v59 = vsub.f32 %v8541_v27, %v8615_v38  ;;  %11886 = vmatmul.mubr.f32.vlgmr.msra.gmra.mxu1 %v8615_v38 }
 0xaa7   :  { %11900 = vmatpush3.msk.msra.mxu1 %vm7630_vm3, %v13144_v35  ;;  %11907 = vmatprep.mubr.msk.f32.mxu1 %vm12252_vm4, %v12251_v63 }
 0xaa8   :  { %11901 = vmatprep.subr.mxu1 %v12251_v63  ;;  %v8617_v2 = vand.u32 4294901760, %v8616_v59 }
 0xaa9   :  { %11902 = vmatpush3.msk.msra.mxu1 %vm13130_vm14, %v12253_v15 }
 0xaaa   :  { %11903 = vmatprep.subr.mxu1 %v12251_v63  ;;  %v8618_v56 = vsub.f32 %v8616_v59, %v8617_v2 }
 0xaab   :  { %11904 = vmatpush3.msk.msra.mxu1 %vm13147_vm15, %v12253_v15 }
 0xaac   :  { %11905 = vmatprep.subr.mxu1 %v12251_v63  ;;  %v8619_v14 = vand.u32 4294901760, %v8618_v56  ;;  %v8534_v4 = vpop.permute.xlu1 %8533 }
 0xaad   :  { %11906 = vmatpush3.msk.msra.mxu1 %vm13183_vm0, %v12253_v15  ;;  %v8538_v39 = vmax.f32 %v8526_v42, %v8534_v4  ;;  %v14799_v42 = vsub.f32 %v9542_v21, %v14796_v1 }
 0xaae   :  { %11908 = vmatmul.mubr.f32.vlgmr.msra.gmra.mxu1 %v8617_v2  ;;  %11921 = vmatprep.subr.mxu1 %v12251_v63 }
 0xaaf   :  { %11875 = vmatmul.mubr.f32.vlgmr.msra.gmra.mxu0 %v8619_v14  ;;  %11922 = vmatpush3.msk.msra.mxu1 %vm7630_vm3, %v13144_v35  ;;  %v9032_v37 = vsel %vm8539_vm5, %v8538_v39, 0  ;;  %v9678_v51 = vand.u32 4294901760, %v14799_v42 }
 0xab0   :  { %11889 = vmatpush3.msra.mxu0 %v14604_v62  ;;  %11923 = vmatprep.subr.mxu1 %v12251_v63  ;;  %v14668_v49 = vand.u32 4294901760, %v9032_v37 }
 0xab1   :  { %11890 = vmatprep.subr.mxu0 %v12251_v63  ;;  %11924 = vmatpush3.msk.msra.mxu1 %vm13130_vm14, %v12253_v15 }
 0xab2   :  { %11891 = vmatpush3.msra.mxu0 %v13201_v0  ;;  %11925 = vmatprep.subr.mxu1 %v12251_v63  ;;  %v9104_v44 = vsub.f32 %v9032_v37, %v14668_v49 }
 0xab3   :  { %11892 = vmatprep.subr.mxu0 %v12251_v63  ;;  %11926 = vmatpush3.msk.msra.mxu1 %vm13147_vm15, %v12253_v15 }
 0xab4   :  { %11893 = vmatpush3.msra.mxu0 %v13216_v41  ;;  %11927 = vmatprep.subr.mxu1 %v12251_v63 }
 0xab5   :  { %11894 = vmatprep.subr.mxu0 %v12251_v63  ;;  %11896 = vmatprep.mubr.msk.f32.mxu0 %vm12252_vm4, %v12251_v63 }
 0xab6   :  { %11895 = vmatpush3.msra.mxu0 %v13242_v40  ;;  %11928 = vmatpush3.msk.msra.mxu1 %vm13183_vm0, %v12253_v15 }
 0xab7   :  { %11929 = vmatprep.mubr.msk.f32.mxu1 %vm12252_vm4, %v12251_v63  ;;  %11897 = vmatmul.mubr.f32.vlgmr.msra.gmra.mxu0 %v8616_v59  ;;  %v9685_v59 = vand.u32 4294901760, %v14807_v3 }
 0xab8   :  { %11910 = vmatprep.subr.mxu0 %v12251_v63  ;;  %11930 = vmatmul.mubr.f32.vlgmr.msra.gmra.mxu1 %v8615_v38 }
 0xab9   :  { %11943 = vmatprep.subr.mxu1 %v12251_v63  ;;  %11911 = vmatpush3.msra.mxu0 %v14607_v57  ;;  %v9686_v4 = vsub.f32 %v14807_v3, %v9685_v59 }
 0xaba   :  { %11944 = vmatpush3.msra.mxu1 %v14611_v60  ;;  %11912 = vmatprep.subr.mxu0 %v12251_v63 }
 0xabb   :  { %11945 = vmatprep.subr.mxu1 %v12251_v63  ;;  %11913 = vmatpush3.msra.mxu0 %v13236_v12 }
 0xabc   :  { %11946 = vmatpush3.msra.mxu1 %v13288_v24  ;;  %11914 = vmatprep.subr.mxu0 %v12251_v63  ;;  %v9105_v24 = vand.u32 4294901760, %v9104_v44 }
 0xabd   :  { %11947 = vmatprep.subr.mxu1 %v12251_v63  ;;  %11915 = vmatpush3.msra.mxu0 %v13251_v28 }
 0xabe   :  { %11948 = vmatpush3.msra.mxu1 %v13295_v18  ;;  %11916 = vmatprep.subr.mxu0 %v12251_v63  ;;  %v9106_v18 = vsub.f32 %v9104_v44, %v9105_v24 }
 0xabf   :  { %11949 = vmatprep.subr.mxu1 %v12251_v63  ;;  %11917 = vmatpush3.msra.mxu0 %v13272_v6 }
 0xac0   :  { %11918 = vmatprep.mubr.msk.f32.mxu0 %vm12252_vm4, %v12251_v63  ;;  %11950 = vmatpush3.msra.mxu1 %v13306_v48  ;;  %v9107_v48 = vand.u32 4294901760, %v9106_v18 }
 0xac1   :  { %11951 = vmatprep.mubr.msk.f32.mxu1 %vm12252_vm4, %v12251_v63  ;;  %11919 = vmatmul.mubr.f32.vlgmr.msra.gmra.mxu0 %v8615_v38  ;;  %v9679_v38 = vsub.f32 %v14799_v42, %v9678_v51 }
 0xac2   :  { %11932 = vmatprep.subr.mxu0 %v12251_v63  ;;  %11952 = vmatmul.mubr.f32.vlgmr.msra.gmra.mxu1 %v14668_v49 }
 0xac3   :  { %11965 = vmatprep.subr.mxu1 %v12251_v63  ;;  %11933 = vmatpush3.msk.msra.mxu0 %vm7630_vm3, %v13144_v35  ;;  %v9680_v14 = vand.u32 4294901760, %v9679_v38 }
 0xac4   :  { %11966 = vmatpush3.msk.msra.mxu1 %vm7630_vm3, %v13144_v35  ;;  %11934 = vmatprep.subr.mxu0 %v12251_v63 }
 0xac5   :  { %11967 = vmatprep.subr.mxu1 %v12251_v63  ;;  %11935 = vmatpush3.msk.msra.mxu0 %vm13130_vm14, %v12253_v15 }
 0xac6   :  { %11968 = vmatpush3.msk.msra.mxu1 %vm13130_vm14, %v12253_v15  ;;  %11936 = vmatprep.subr.mxu0 %v12251_v63 }
 0xac7   :  { %11969 = vmatprep.subr.mxu1 %v12251_v63  ;;  %11937 = vmatpush3.msk.msra.mxu0 %vm13147_vm15, %v12253_v15 }
 0xac8   :  { %11970 = vmatpush3.msk.msra.mxu1 %vm13147_vm15, %v12253_v15  ;;  %11938 = vmatprep.subr.mxu0 %v12251_v63 }
 0xac9   :  { %11971 = vmatprep.subr.mxu1 %v12251_v63  ;;  %11939 = vmatpush3.msk.msra.mxu0 %vm13183_vm0, %v12253_v15 }
 0xaca   :  { %11940 = vmatprep.mubr.msk.f32.mxu0 %vm12252_vm4, %v12251_v63  ;;  %11972 = vmatpush3.msk.msra.mxu1 %vm13183_vm0, %v12253_v15 }
 0xacb   :  { %11973 = vmatprep.mubr.msk.f32.mxu1 %vm12252_vm4, %v12251_v63  ;;  %11941 = vmatmul.mubr.f32.vlgmr.msra.gmra.mxu0 %v9107_v48 }
 0xacc   :  { %11954 = vmatprep.subr.mxu0 %v12251_v63  ;;  %11974 = vmatmul.mubr.f32.vlgmr.msra.gmra.mxu1 %v9105_v24 }
 0xacd   :  { %11987 = vmatprep.subr.mxu1 %v12251_v63  ;;  %11955 = vmatpush3.msra.mxu0 %v14604_v62 }
 0xace   :  { %11988 = vmatpush3.msk.msra.mxu1 %vm7630_vm3, %v13144_v35  ;;  %11956 = vmatprep.subr.mxu0 %v12251_v63  ;;  %v9543_v35 = vld [vmem:[#allocation17 + $0x10] sm:$0xff] }
 0xacf   :  { %11989 = vmatprep.subr.mxu1 %v12251_v63  ;;  %11957 = vmatpush3.msra.mxu0 %v13201_v0 }
 0xad0   :  { %11990 = vmatpush3.msk.msra.mxu1 %vm13130_vm14, %v12253_v15  ;;  %11958 = vmatprep.subr.mxu0 %v12251_v63 }
 0xad1   :  { %11991 = vmatprep.subr.mxu1 %v12251_v63  ;;  %11959 = vmatpush3.msra.mxu0 %v13216_v41  ;;  %v14779_v41 = vsub.f32 %v9556_v47, %v14773_v22 }
 0xad2   :  { %11992 = vmatpush3.msk.msra.mxu1 %vm13147_vm15, %v12253_v15  ;;  %11960 = vmatprep.subr.mxu0 %v12251_v63 }
 0xad3   :  { %11993 = vmatprep.subr.mxu1 %v12251_v63  ;;  %11961 = vmatpush3.msra.mxu0 %v13242_v40  ;;  %v9664_v40 = vand.u32 4294901760, %v14779_v41 }
 0xad4   :  { %11962 = vmatprep.mubr.msk.f32.mxu0 %vm12252_vm4, %v12251_v63  ;;  %11994 = vmatpush3.msk.msra.mxu1 %vm13183_vm0, %v12253_v15  ;;  %v14771_v15 = vand.u32 4294901760, %v9543_v35 }
 0xad5   :  { %11995 = vmatprep.mubr.msk.f32.mxu1 %vm12252_vm4, %v12251_v63  ;;  %11963 = vmatmul.mubr.f32.vlgmr.msra.gmra.mxu0 %v9104_v44 }
 0xad6   :  { %11976 = vmatprep.subr.mxu0 %v12251_v63  ;;  %11996 = vmatmul.mubr.f32.vlgmr.msra.gmra.mxu1 %v14668_v49  ;;  %v14776_v0 = vsub.f32 %v9543_v35, %v14771_v15 }
 0xad7   :  { %11977 = vmatpush3.msra.mxu0 %v14607_v57  ;;  %11984 = vmatprep.mubr.msk.f32.mxu0 %vm12252_vm4, %v12251_v63 }
 0xad8   :  { %11978 = vmatprep.subr.mxu0 %v12251_v63  ;;  %12009 = vmatprep.subr.mxu1 %v12251_v63 }
 0xad9   :  { %11979 = vmatpush3.msra.mxu0 %v13236_v12  ;;  %12017 = vmatprep.mubr.msk.f32.mxu1 %vm12252_vm4, %v12251_v63  ;;  %v9671_v12 = vand.u32 4294901760, %v14776_v0 }
 0xada   :  { %11980 = vmatprep.subr.mxu0 %v12251_v63 }
 0xadb   :  { %11981 = vmatpush3.msra.mxu0 %v13251_v28  ;;  %v9672_v28 = vsub.f32 %v14776_v0, %v9671_v12 }
 0xadc   :  { %11982 = vmatprep.subr.mxu0 %v12251_v63 }
 0xadd   :  { %11983 = vmatpush3.msra.mxu0 %v13272_v6  ;;  %v9665_v6 = vsub.f32 %v14779_v41, %v9664_v40  ;;  %v9673_v57 = vand.u32 4294901760, %v9672_v28 }
 0xade   :  { %11985 = vmatmul.mubr.f32.vlgmr.msra.gmra.mxu0 %v14668_v49  ;;  %11998 = vmatprep.subr.mxu0 %v12251_v63  ;;  %v9687_v49 = vand.u32 4294901760, %v9686_v4 }
 0xadf   :  { %12006 = vmatprep.mubr.msk.f32.mxu0 %vm12252_vm4, %v12251_v63  ;;  %11999 = vmatpush3.msra.mxu0 %v14773_v22  ;;  %v9666_v62 = vand.u32 4294901760, %v9665_v6 }
 0xae0   :  { %12000 = vmatprep.subr.mxu0 %v12251_v63 }
 0xae1   :  { %12001 = vmatpush3.msra.mxu0 %v14771_v15  ;;  %12010 = vmatpush3.msra.mxu1 %v9666_v62 }
 0xae2   :  { %12002 = vmatprep.subr.mxu0 %v12251_v63  ;;  %12011 = vmatprep.subr.mxu1 %v12251_v63 }
 0xae3   :  { %12012 = vmatpush3.msra.mxu1 %v9673_v57  ;;  %12003 = vmatpush3.msra.mxu0 %v14796_v1 }
 0xae4   :  { %12013 = vmatprep.subr.mxu1 %v12251_v63  ;;  %12004 = vmatprep.subr.mxu0 %v12251_v63 }
 0xae5   :  { %12005 = vmatpush3.msra.mxu0 %v14801_v20  ;;  %12014 = vmatpush3.msra.mxu1 %v9680_v14 }
 0xae6   :  { %12020 = vmatprep.subr.mxu0 %v12251_v63  ;;  %12015 = vmatprep.subr.mxu1 %v12251_v63 }
 0xae7   :  { %12016 = vmatpush3.msra.mxu1 %v9687_v49 }
 0xae8   :  { %12031 = vmatprep.subr.mxu1 %v12251_v63 }
 0xb66   :  { %v8712_v60 = vpop.f32.mrf.mxu1 }
 0xb68   :  { %v11887_v50 = vpop.f32.mrf.mxu1 }
 0xb6e   :  { %v8869_v61 = vpop.f32.mrf.mxu1 }
 0xb6f   :  { %v8621_v9 = vpop.f32.mrf.mxu0 }
 0xb70   :  { %v11909_v36 = vpop.f32.mrf.mxu1  ;;  %v8713_v7 = vadd.f32 %v8712_v60, %v8621_v9 }
 0xb71   :  { %v11876_v53 = vpop.f32.mrf.mxu0 }
 0xb77   :  { %v8792_v31 = vpop.f32.mrf.mxu0 }
 0xb78   :  { %v9027_v43 = vpop.f32.mrf.mxu1  ;;  %v8793_v5 = vadd.f32 %v8792_v31, %v8713_v7 }
 0xb79   :  { %v11898_v30 = vpop.f32.mrf.mxu0 }
 0xb7a   :  { %v11931_v58 = vpop.f32.mrf.mxu1  ;;  %v8870_v46 = vadd.f32 %v8869_v61, %v8793_v5 }
 0xb81   :  { %v8952_v29 = vpop.f32.mrf.mxu0 }
 0xb82   :  { %v8953_v10 = vadd.f32 %v8952_v29, %v8870_v46  ;;  %v9200_v32 = vpop.f32.mrf.mxu1 }
 0xb83   :  { %v11920_v25 = vpop.f32.mrf.mxu0 }
 0xb84   :  { %v9028_v45 = vadd.f32 %v9027_v43, %v8953_v10  ;;  %v11953_v19 = vpop.f32.mrf.mxu1 }
 0xb86   :  { %9520 = vst.msk [vmem:[#allocation2] sm:$0x3] %vm9519_vm6, %v9028_v45 }
 0xb8b   :  { %v9109_v17 = vpop.f32.mrf.mxu0 }
 0xb8c   :  { %v9357_v8 = vpop.f32.mrf.mxu1  ;;  %v9201_v52 = vadd.f32 %v9200_v32, %v9109_v17 }
 0xb8d   :  { %v11942_v26 = vpop.f32.mrf.mxu0  ;;  %v9524_v18 = vld [vmem:[#allocation2 + $0x1] sm:$0x1]  ;;  %v9522_v47 = vld [vmem:[#allocation2] sm:$0x1] }
 0xb8e   :  { %v11975_v13 = vpop.f32.mrf.mxu1 }
 0xb95   :  { %v9280_v16 = vpop.f32.mrf.mxu0 }
 0xb96   :  { %v9515_v33 = vpop.f32.mrf.mxu1  ;;  %v9281_v23 = vadd.f32 %v9280_v16, %v9201_v52 }
 0xb97   :  { %v11964_v34 = vpop.f32.mrf.mxu0 }
 0xb98   :  { %v11997_v11 = vpop.f32.mrf.mxu1  ;;  %v9358_v27 = vadd.f32 %v9357_v8, %v9281_v23 }
 0xb9e   :  { %v9440_v2 = vpop.f32.mrf.mxu0 }
 0xb9f   :  { %v9441_v56 = vadd.f32 %v9440_v2, %v9358_v27 }
 0xba0   :  { %v11986_v39 = vpop.f32.mrf.mxu0 }
 0xba1   :  { %v9516_v37 = vadd.f32 %v9515_v33, %v9441_v56 }
 0xba3   :  { %9521 = vst.msk [vmem:[#allocation2 + $0x2] sm:$0x3] %vm9519_vm6, %v9516_v37 }
 0xbaa   :  { %v9525_v44 = vld [vmem:[#allocation2 + $0x3] sm:$0x1]  ;;  %v9523_v54 = vld [vmem:[#allocation2 + $0x2] sm:$0x1] }
 0xbab   :  { %v9534_v24 = vrot.slane %v9525_v44, 7  ;;  %v9528_v35 = vrot.slane %v9523_v54, 7 }
 0xbad   :  { %v9535_v48 = vsel %vm9529_vm7, %v9534_v24, %v9524_v18  ;;  %v9530_v6 = vsel %vm9529_vm7, %v9528_v35, %v9522_v47 }
 0xbae   :  { %9536 = vrot.lane.b32.xlu0 %v9535_v48, %s12254_s7 }
 0xc20   :  { %v9537_v28 = vpop.permute.xlu0 %9536 }
 0xc21   :  { %v9540_v62 = vsel %vm9539_vm8, %v9530_v6, %v9537_v28 }
 0xc22   :  { %v9553_v57 = vsel %vm8539_vm5, %v9540_v62, 0 }
 0xc23   :  { %v9627_v60 = vand.u32 4294901760, %v9553_v57 }
 0xc25   :  { %v9628_v50 = vsub.f32 %v9553_v57, %v9627_v60  ;;  %12018 = vmatmul.mubr.f32.vlgmr.msra.gmra.mxu1 %v9627_v60 }
 0xc26   :  { %12032 = vmatpush3.msra.mxu1 %v14773_v22  ;;  %12039 = vmatprep.mubr.msk.f32.mxu1 %vm12252_vm4, %v12251_v63 }
 0xc27   :  { %12033 = vmatprep.subr.mxu1 %v12251_v63  ;;  %v9629_v61 = vand.u32 4294901760, %v9628_v50 }
 0xc28   :  { %12034 = vmatpush3.msra.mxu1 %v14771_v15 }
 0xc29   :  { %12035 = vmatprep.subr.mxu1 %v12251_v63  ;;  %v9630_v9 = vsub.f32 %v9628_v50, %v9629_v61 }
 0xc2a   :  { %12036 = vmatpush3.msra.mxu1 %v14796_v1 }
 0xc2b   :  { %12037 = vmatprep.subr.mxu1 %v12251_v63  ;;  %v9631_v36 = vand.u32 4294901760, %v9630_v9 }
 0xc2c   :  { %12038 = vmatpush3.msra.mxu1 %v14801_v20 }
 0xc2d   :  { %12040 = vmatmul.mubr.f32.vlgmr.msra.gmra.mxu1 %v9629_v61  ;;  %12053 = vmatprep.subr.mxu1 %v12251_v63 }
 0xc2e   :  { %12007 = vmatmul.mubr.f32.vlgmr.msra.gmra.mxu0 %v9631_v36  ;;  %12054 = vmatpush3.msra.mxu1 %v14773_v22 }
 0xc2f   :  { %12021 = vmatpush3.msra.mxu0 %v14779_v41  ;;  %12055 = vmatprep.subr.mxu1 %v12251_v63 }
 0xc30   :  { %12022 = vmatprep.subr.mxu0 %v12251_v63  ;;  %12056 = vmatpush3.msra.mxu1 %v14771_v15 }
 0xc31   :  { %12023 = vmatpush3.msra.mxu0 %v14776_v0  ;;  %12057 = vmatprep.subr.mxu1 %v12251_v63  ;;  %v10323_v0 = vld [vmem:[%s14880_s10] ss:$0 sm:$0xff] }
 0xc32   :  { %12024 = vmatprep.subr.mxu0 %v12251_v63  ;;  %12058 = vmatpush3.msra.mxu1 %v14796_v1 }
 0xc33   :  { %12025 = vmatpush3.msra.mxu0 %v14799_v42  ;;  %12059 = vmatprep.subr.mxu1 %v12251_v63 }
 0xc34   :  { %12026 = vmatprep.subr.mxu0 %v12251_v63  ;;  %12028 = vmatprep.mubr.msk.f32.mxu0 %vm12252_vm4, %v12251_v63 }
 0xc35   :  { %12027 = vmatpush3.msra.mxu0 %v14807_v3  ;;  %12060 = vmatpush3.msra.mxu1 %v14801_v20 }
 0xc36   :  { %12061 = vmatprep.mubr.msk.f32.mxu1 %vm12252_vm4, %v12251_v63  ;;  %12029 = vmatmul.mubr.f32.vlgmr.msra.gmra.mxu0 %v9628_v50 }
 0xc37   :  { %12042 = vmatprep.subr.mxu0 %v12251_v63  ;;  %12062 = vmatmul.mubr.f32.vlgmr.msra.gmra.mxu1 %v9627_v60 }
 0xc38   :  { %12043 = vmatpush3.msra.mxu0 %v9664_v40  ;;  %12050 = vmatprep.mubr.msk.f32.mxu0 %vm12252_vm4, %v12251_v63  ;;  %vm10043_vm4 = vcmask 254976  }
 0xc39   :  { %12044 = vmatprep.subr.mxu0 %v12251_v63 }
 0xc3a   :  { %12045 = vmatpush3.msra.mxu0 %v9671_v12 }
 0xc3b   :  { %12046 = vmatprep.subr.mxu0 %v12251_v63 }
 0xc3c   :  { %12047 = vmatpush3.msra.mxu0 %v9678_v51 }
 0xc3d   :  { %12048 = vmatprep.subr.mxu0 %v12251_v63 }
 0xc3e   :  { %12049 = vmatpush3.msra.mxu0 %v9685_v59 }
 0xc3f   :  { %12051 = vmatmul.mubr.f32.vlgmr.msra.gmra.mxu0 %v9627_v60 }
 0xce5   :  { %v9724_v15 = vpop.f32.mrf.mxu1 }
 0xce7   :  { %v12019_v22 = vpop.f32.mrf.mxu1 }
 0xced   :  { %v9881_v41 = vpop.f32.mrf.mxu1 }
 0xcee   :  { %v9633_v40 = vpop.f32.mrf.mxu0 }
 0xcef   :  { %v12041_v53 = vpop.f32.mrf.mxu1  ;;  %v9634_v12 = vadd.f32 %v10323_v0, %v9633_v40 }
 0xcf0   :  { %v12008_v31 = vpop.f32.mrf.mxu0 }
 0xcf1   :  { %v9725_v7 = vadd.f32 %v9724_v15, %v9634_v12 }
 0xcf6   :  { %v9804_v43 = vpop.f32.mrf.mxu0 }
 0xcf7   :  { %v10039_v30 = vpop.f32.mrf.mxu1  ;;  %v9805_v5 = vadd.f32 %v9804_v43, %v9725_v7 }
 0xcf8   :  { %v12030_v58 = vpop.f32.mrf.mxu0 }
 0xcf9   :  { %v12063_v63 = vpop.f32.mrf.mxu1  ;;  %v9882_v46 = vadd.f32 %v9881_v41, %v9805_v5 }
 0xcff   :  { %v9964_v29 = vpop.f32.mrf.mxu0 }
 0xd00   :  { %v9965_v10 = vadd.f32 %v9964_v29, %v9882_v46 }
 0xd01   :  { %v12052_v32 = vpop.f32.mrf.mxu0 }
 0xd02   :  { %v10040_v25 = vadd.f32 %v10039_v30, %v9965_v10 }
 0xd04   :  { %10044 = vst.msk [vmem:[#allocation19] sm:$0x3] %vm10043_vm4, %v10040_v25 }
 0xd05   :  { %12219 = shalt.err (!%p12216_p11)
}
 0xd06   :  { %10054 = dma.vmem_to_hbm [thread:$0]  %s10052_s13, 32, %s14881_s11, [#allocation8]  }
 0xd07   :  { %12238 = dma.done.wait [#allocation8], 32  }
 0xd08   :  { %12239 = vsyncadd [#allocation8], 4294967264 }
 0xd09   :  { %10058 = vsyncpa [#allocation7], 1 }
 0xd0a   :  { %10059 = vsyncpa [#allocation18], 1 }
 0xd0b   :  { %10060 = vsyncpa [#allocation8], 1 }
 0xd0c   :  { %10061 = vsyncpa [#allocation9], 1 }
 0xd0d   :  { %10062 = vsyncpa [#allocation12], 1 }
 0xd0e   :  { %10063 = vsyncpa [#allocation15], 1 }

</bundles_post_ra>
